<compile_context>
chip_gen: v7x
topology: tpu7x:2x2x1
jax: 0.10.0
libtpu: 0.0.40
codegen_flags: <defaults>
</compile_context>

<pallas_src>
import numpy as np
import jax
import jax.numpy as jnp
from jax import lax
from jax.experimental import pallas as pl
from jax.experimental.pallas import tpu as pltpu


LANE = 128     # TPU lane width
SUBLANE = 8    # f32 sublane count


def _round_up(x, m):
    return ((x + m - 1) // m) * m


def _choose_batch_tile(B):
    """Pick (b_tile, b_pad).

    Batch lives on the 128-lane axis inside the kernel, so a batch tile must be
    either a multiple of 128 or cover the whole (padded) batch.  For B > 128 we
    pad to a multiple of 128 -> grid >= 2 so both v7x TensorCores get work; for
    small B a single full tile avoids useless padded compute.
    """
    b8 = _round_up(max(B, 1), SUBLANE)
    if b8 <= LANE:
        return b8, b8
    b_pad = _round_up(B, LANE)
    return LANE, b_pad


# ----------------------------- Pallas kernel ------------------------------- #

def at_lstm_fused_kernel(gx_ref, xlen_ref, whh_ref, v_ref, wd_ref, bd_ref,
                         out_ref, hs_sc):
    """Fused LSTM recurrence + attention + dense for one batch tile.

    Feature-major layout: batch is the last (lane) axis everywhere.

    gx_ref  : (T, 4H, Bt) bf16  precomputed W_ih^T x + b, gate order [i, f, o, g]
    xlen_ref: (1, Bt)     int32 number of valid tokens per batch row
    whh_ref : (4H, H)     bf16  recurrent weights (transposed), order [i, f, o, g]
    v_ref   : (H, 1)      f32   attention vector (shift-reduced bi_linear score)
    wd_ref  : (P, H)      f32   dense weights (transposed)
    bd_ref  : (P, 1)      f32   dense bias
    out_ref : (P, Bt)     f32
    hs_sc   : (T, H, Bt)  f32   VMEM scratch, per-step hidden states
    """
    T = gx_ref.shape[0]
    Bt = gx_ref.shape[2]
    Hd = whh_ref.shape[1]

    whh = whh_ref[...]            # hoisted out of the time loop: loaded once

    h0 = jnp.zeros((Hd, Bt), jnp.float32)
    c0 = jnp.zeros((Hd, Bt), jnp.float32)

    # Serial recurrence.  Per step: one (4H,H)x(H,Bt) bf16 MXU call + f32 gate
    # math.  h/c are register-carried; only hs_sc[t] touches VMEM.  Gate slices
    # are sublane-group aligned (H rows each) -> no lane relayouts on the chain.
    # TODO(synk): hold W_hh stationary in the MXU across the unrolled loop via
    # pltpu.matmul_push_rhs / matmul_acc_lhs / matmul_pop.
    def step(t, carry):
        h, c = carry
        gates = (jnp.dot(whh, h.astype(whh.dtype),
                         preferred_element_type=jnp.float32)
                 + gx_ref[t].astype(jnp.float32))            # (4H, Bt) f32
        ifo = jax.nn.sigmoid(gates[:3 * Hd])                 # contiguous 3H sigmoid
        g = jnp.tanh(gates[3 * Hd:])                         # single H tanh
        i = ifo[:Hd]
        f = ifo[Hd:2 * Hd]
        o = ifo[2 * Hd:3 * Hd]
        c_new = f * c + i * g
        h_new = o * jnp.tanh(c_new)
        hs_sc[t] = h_new
        return (h_new, c_new)

    lax.fori_loop(0, T, step, (h0, c0), unroll=True)

    # Epilogue (once per tile): length mask built in-kernel, reduced bi_linear
    # attention, softmax over time, context, dense.  All arrays stay 3D
    # (T, ·, Bt) so no mid-dim reshapes are needed.
    t_iota = lax.broadcasted_iota(jnp.int32, (T, 1, Bt), 0)
    msk = (t_iota < xlen_ref[...][None, :, :]).astype(jnp.float32)    # (T, 1, Bt)
    hs_sc[...] = hs_sc[...] * msk                                      # mask in place

    logits = jnp.sum(hs_sc[...] * v_ref[...][None, :, :],
                     axis=1, keepdims=True)                            # (T, 1, Bt)
    m = jnp.max(logits, axis=0, keepdims=True)                         # (1, 1, Bt)
    e = jnp.exp(logits - m)
    denom = jnp.sum(e, axis=0, keepdims=True)                          # (1, 1, Bt)
    attn = e * pl.reciprocal(denom, approx=True)                       # (T, 1, Bt)
    ctx = jnp.sum(attn * hs_sc[...], axis=0)                           # (H, Bt)

    out_ref[...] = (jnp.dot(wd_ref[...], ctx,
                            preferred_element_type=jnp.float32) + bd_ref[...])


# ------------------------------- model glue -------------------------------- #

def init_params(key, vocab, embed_dim, hidden_dim, polarities_dim):
    D = hidden_dim + embed_dim
    ks = jax.random.split(key, 12)
    s = 0.1
    emb = jax.random.normal(ks[0], (vocab, embed_dim), jnp.float32) * s
    emb = emb.at[0].set(0.0)                        # padding row
    return dict(
        embedding=emb,
        w_ih=jax.random.normal(ks[1], (embed_dim, 4 * hidden_dim), jnp.float32) * s,
        w_hh=jax.random.normal(ks[2], (hidden_dim, 4 * hidden_dim), jnp.float32) * s,
        b_lstm=jax.random.normal(ks[3], (1, 4 * hidden_dim), jnp.float32) * s,
        w_k=jax.random.normal(ks[4], (D, D), jnp.float32) * s,
        b_k=jax.random.normal(ks[5], (1, D), jnp.float32) * s,
        w_q=jax.random.normal(ks[6], (D, D), jnp.float32) * s,
        b_q=jax.random.normal(ks[7], (1, D), jnp.float32) * s,
        q=jax.random.normal(ks[8], (1, D), jnp.float32) * s,
        w_bil=jax.random.normal(ks[9], (D, D), jnp.float32) * s,
        w_dense=jax.random.normal(ks[10], (hidden_dim, polarities_dim), jnp.float32) * s,
        b_dense=jax.random.normal(ks[11], (1, polarities_dim), jnp.float32) * s,
    )


def _embed_and_pool(params, text_idx, aspect_idx, x_len_max):
    emb = params["embedding"]
    x_len = jnp.sum(text_idx != 0, axis=-1)                              # (B,)
    # NOTE: aspect_len == 0 would NaN here, exactly like the PyTorch module.
    aspect_len = jnp.sum(aspect_idx != 0, axis=-1).astype(jnp.float32)   # (B,)

    x = jnp.take(emb, text_idx[:, :x_len_max], axis=0)                   # (B, T, E)
    mask = (jnp.arange(x_len_max)[None, :] < x_len[:, None]).astype(jnp.float32)
    x = x * mask[:, :, None]     # SqueezeEmbedding pad_packed zero-fill

    aspect = jnp.take(emb, aspect_idx, axis=0)                           # (B, La, E)
    aspect_pool = jnp.sum(aspect, axis=1) / aspect_len[:, None]          # (B, E)
    return x, mask, aspect_pool


def at_lstm_forward_pallas(params, text_idx, aspect_idx, x_len_max):
    H = params["w_hh"].shape[0]
    P = params["w_dense"].shape[1]
    B = text_idx.shape[0]
    T = int(x_len_max)
    G = 4 * H

    # aspect_pool only shifts the attention logits by a per-batch constant
    # (identical for every timestep) which cancels in the softmax — the kernel
    # does not need it (DCE'd by jit).  The mask is rebuilt in-kernel.
    x, _, _ = _embed_and_pool(params, text_idx, aspect_idx, x_len_max)
    x_len = jnp.sum(text_idx != 0, axis=-1).astype(jnp.int32)            # (B,)

    # Gate-column permutation [i, f, g, o] -> [i, f, o, g]: one contiguous 3H
    # sigmoid + one H tanh inside the kernel.
    perm = np.concatenate([np.arange(0, H), np.arange(H, 2 * H),
                           np.arange(3 * H, 4 * H), np.arange(2 * H, 3 * H)])
    w_ih_g = params["w_ih"][:, perm]
    w_hh_g = params["w_hh"][:, perm]
    b_g = params["b_lstm"][:, perm]

    # Hoisted input projection, emitted directly in the kernel's feature-major
    # (T, 4H, B) layout and stored as bf16 (MXU operand; the only O(B*T) HBM
    # stream — bf16 halves its bytes).
    gates_x = (jnp.einsum("bte,eg->tgb", x, w_ih_g)
               + b_g.T[None, :, :]).astype(jnp.bfloat16)                 # (T, 4H, B)

    b_tile, b_pad = _choose_batch_tile(B)
    if b_pad != B:
        gates_x = jnp.pad(gates_x, ((0, 0), (0, 0), (0, b_pad - B)))
        x_len = jnp.pad(x_len, (0, b_pad - B))    # padded rows: length 0 -> fully masked
    xlen_2d = x_len.reshape(1, b_pad)

    # Shift-reduced bi_linear attention vector: logits_t = h_t . v  (aspect and
    # b_k terms are constant over t and cancel in the softmax over time).
    qx = params["q"] @ params["w_q"] + params["b_q"]                     # (1, D)
    qw = qx @ params["w_bil"]                                            # (1, D)
    v_col = (qw @ params["w_k"][:H, :].T).T                              # (H, 1)

    whh_t = jnp.transpose(w_hh_g).astype(jnp.bfloat16)                   # (4H, H) bf16
    wd_t = jnp.transpose(params["w_dense"])                              # (P, H)
    bd_col = jnp.transpose(params["b_dense"])                            # (P, 1)

    out_pad = pl.pallas_call(
        at_lstm_fused_kernel,
        out_shape=jax.ShapeDtypeStruct((P, b_pad), jnp.float32),
        grid_spec=pltpu.PrefetchScalarGridSpec(
            num_scalar_prefetch=0,
            grid=(b_pad // b_tile,),
            in_specs=[
                pl.BlockSpec((T, G, b_tile), lambda b: (0, 0, b)),   # gates_x (bf16)
                pl.BlockSpec((1, b_tile), lambda b: (0, b)),         # x_len
                pl.BlockSpec((G, H), lambda b: (0, 0)),              # w_hh^T (bf16)
                pl.BlockSpec((H, 1), lambda b: (0, 0)),              # v
                pl.BlockSpec((P, H), lambda b: (0, 0)),              # w_dense^T
                pl.BlockSpec((P, 1), lambda b: (0, 0)),              # b_dense
            ],
            out_specs=pl.BlockSpec((P, b_tile), lambda b: (0, b)),
            scratch_shapes=[
                pltpu.VMEM((T, H, b_tile), jnp.float32),             # per-step h
            ]),
        compiler_params=pltpu.CompilerParams(
            dimension_semantics=("parallel",)),
    )(gates_x, xlen_2d, whh_t, v_col, wd_t, bd_col)

    return jnp.transpose(out_pad[:, :B])                                 # (B, P)


def at_lstm_forward_reference(params, text_idx, aspect_idx, x_len_max):
    """Pure-JAX f32 reference (no Pallas, un-simplified math) for correctness."""
    H = params["w_hh"].shape[0]
    B = text_idx.shape[0]
    x, mask, aspect_pool = _embed_and_pool(params, text_idx, aspect_idx, x_len_max)

    def cell(carry, inp):
        h, c = carry
        x_t, m_t = inp
        gates = x_t @ params["w_ih"] + h @ params["w_hh"] + params["b_lstm"]
        i, f, g, o = jnp.split(gates, 4, axis=-1)
        c = jax.nn.sigmoid(f) * c + jax.nn.sigmoid(i) * jnp.tanh(g)
        h = jax.nn.sigmoid(o) * jnp.tanh(c)
        return (h, c), h * m_t

    h0 = jnp.zeros((B, H), jnp.float32)
    c0 = jnp.zeros((B, H), jnp.float32)
    xs = (jnp.transpose(x, (1, 0, 2)), jnp.transpose(mask)[:, :, None])
    _, h_tm = lax.scan(cell, (h0, c0), xs)
    h = jnp.transpose(h_tm, (1, 0, 2))                     # (B, T, H)

    E = aspect_pool.shape[-1]
    ha = jnp.concatenate(
        [h, jnp.broadcast_to(aspect_pool[:, None, :], (B, x_len_max, E))], axis=-1)
    kx = jnp.einsum("btd,de->bte", ha, params["w_k"]) + params["b_k"]
    qx = params["q"] @ params["w_q"] + params["b_q"]
    qw = (qx @ params["w_bil"])[0]                         # (D,)
    logits = jnp.einsum("btd,d->bt", kx, qw)
    attn = jax.nn.softmax(logits, axis=-1)
    ctx = jnp.einsum("bt,bth->bh", attn, h)
    return ctx @ params["w_dense"] + params["b_dense"]


# ---------------------------------- main ----------------------------------- #

if __name__ == "__main__":
    VOCAB, EMBED_DIM, HIDDEN_DIM, POLARITIES = 50, 32, 32, 3
    B, L_TEXT, L_ASPECT = 4, 12, 4

    key = jax.random.PRNGKey(0)
    k_par, k_txt, k_asp = jax.random.split(key, 3)
    params = init_params(k_par, VOCAB, EMBED_DIM, HIDDEN_DIM, POLARITIES)

    # deterministic token indices with trailing-zero padding
    text_lens = np.array([10, 7, 5, 8])
    aspect_lens = np.array([2, 3, 1, 2])
    text_np = np.array(jax.random.randint(k_txt, (B, L_TEXT), 1, VOCAB))
    asp_np = np.array(jax.random.randint(k_asp, (B, L_ASPECT), 1, VOCAB))
    for b in range(B):
        text_np[b, text_lens[b]:] = 0
        asp_np[b, aspect_lens[b]:] = 0
    text_idx = jnp.asarray(text_np, jnp.int32)
    aspect_idx = jnp.asarray(asp_np, jnp.int32)

    # x_len_max is data-dependent in PyTorch; compute it host-side (static shape)
    x_len_max = int(np.max(np.sum(text_np != 0, axis=-1)))

    fwd = jax.jit(at_lstm_forward_pallas, static_argnums=(3,))
    out = jax.block_until_ready(fwd(params, text_idx, aspect_idx, x_len_max))

    ref = jax.block_until_ready(
        at_lstm_forward_reference(params, text_idx, aspect_idx, x_len_max))

    # Tolerance loosened vs v2 (1e-3 -> 1e-2): the kernel intentionally uses
    # bf16 MXU operands (gates_x storage, W_hh, h) and an approx reciprocal in
    # the softmax; the reference path is full f32.
    np.testing.assert_allclose(np.array(out), np.array(ref), rtol=1e-2, atol=1e-2)
    assert out.shape == (B, POLARITIES)
    print("KERNEL_OK")
</pallas_src>

<mosaic_0001>
module attributes {stable_mosaic.version = 11 : i64} {
  func.func @at_lstm_fused_kernel(%arg0: i32, %arg1: memref<10x128x8xbf16, #tpu.memory_space<vmem>>, %arg2: memref<1x8xi32, #tpu.memory_space<vmem>>, %arg3: memref<128x32xbf16, #tpu.memory_space<vmem>>, %arg4: memref<32x1xf32, #tpu.memory_space<vmem>>, %arg5: memref<3x32xf32, #tpu.memory_space<vmem>>, %arg6: memref<3x1xf32, #tpu.memory_space<vmem>>, %arg7: memref<3x8xf32, #tpu.memory_space<vmem>>, %arg8: memref<10x32x8xf32, #tpu.memory_space<vmem>>) attributes {dimension_semantics = [#tpu.dimension_semantics<parallel>], iteration_bounds = array<i64: 1>, scalar_prefetch = 0 : i64, scratch_operands = 1 : i64, tpu.core_type = #tpu.core_type<tc>, window_params = [{transform_indices = @transform_0, window_bounds = array<i64: 10, 128, 8>}, {transform_indices = @transform_1, window_bounds = array<i64: 1, 8>}, {pipeline_mode = #tpu.pipeline_mode<synchronous>, transform_indices = @transform_2, window_bounds = array<i64: 128, 32>}, {pipeline_mode = #tpu.pipeline_mode<synchronous>, transform_indices = @transform_3, window_bounds = array<i64: 32, 1>}, {pipeline_mode = #tpu.pipeline_mode<synchronous>, transform_indices = @transform_4, window_bounds = array<i64: 3, 32>}, {pipeline_mode = #tpu.pipeline_mode<synchronous>, transform_indices = @transform_5, window_bounds = array<i64: 3, 1>}, {transform_indices = @transform_6, window_bounds = array<i64: 3, 8>}]} {
    %c0 = arith.constant 0 : index
    %c0_0 = arith.constant 0 : index
    %0 = vector.load %arg3[%c0, %c0_0] : memref<128x32xbf16, #tpu.memory_space<vmem>>, vector<128x32xbf16>
    %cst = arith.constant 0.000000e+00 : f32
    %1 = vector.broadcast %cst : f32 to vector<32x8xf32>
    %cst_1 = arith.constant 0.000000e+00 : f32
    %2 = vector.broadcast %cst_1 : f32 to vector<32x8xf32>
    %c0_i32 = arith.constant 0 : i32
    %3 = arith.truncf %1 : vector<32x8xf32> to vector<32x8xbf16>
    %cst_2 = arith.constant dense<0.000000e+00> : vector<128x8xf32>
    %4 = tpu.matmul %0, %3, %cst_2 {dimension_numbers = #tpu.dot_dimension_numbers<[1], [0], [0], [1], [0, 0, 1, 1], [], []>} : vector<128x32xbf16>, vector<32x8xbf16>, vector<128x8xf32> -> vector<128x8xf32>
    %5 = arith.index_cast %c0_i32 : i32 to index
    %c0_3 = arith.constant 0 : index
    %c0_4 = arith.constant 0 : index
    %6 = vector.load %arg1[%5, %c0_3, %c0_4] : memref<10x128x8xbf16, #tpu.memory_space<vmem>>, vector<1x128x8xbf16>
    %7 = vector.shape_cast %6 : vector<1x128x8xbf16> to vector<128x8xbf16>
    %8 = arith.extf %7 : vector<128x8xbf16> to vector<128x8xf32>
    %9 = arith.addf %4, %8 : vector<128x8xf32>
    %10 = vector.extract_strided_slice %9 {offsets = [0, 0], sizes = [96, 8], strides = [1, 1]} : vector<128x8xf32> to vector<96x8xf32>
    %11 = arith.negf %10 : vector<96x8xf32>
    %12 = math.exp %11 : vector<96x8xf32>
    %cst_5 = arith.constant 1.000000e+00 : f32
    %13 = vector.broadcast %cst_5 : f32 to vector<96x8xf32>
    %14 = arith.addf %13, %12 : vector<96x8xf32>
    %15 = arith.divf %13, %14 : vector<96x8xf32>
    %16 = vector.extract_strided_slice %9 {offsets = [96, 0], sizes = [32, 8], strides = [1, 1]} : vector<128x8xf32> to vector<32x8xf32>
    %17 = math.tanh %16 : vector<32x8xf32>
    %18 = vector.extract_strided_slice %15 {offsets = [0, 0], sizes = [32, 8], strides = [1, 1]} : vector<96x8xf32> to vector<32x8xf32>
    %19 = vector.extract_strided_slice %15 {offsets = [32, 0], sizes = [32, 8], strides = [1, 1]} : vector<96x8xf32> to vector<32x8xf32>
    %20 = vector.extract_strided_slice %15 {offsets = [64, 0], sizes = [32, 8], strides = [1, 1]} : vector<96x8xf32> to vector<32x8xf32>
    %21 = arith.mulf %19, %2 : vector<32x8xf32>
    %22 = arith.mulf %18, %17 : vector<32x8xf32>
    %23 = arith.addf %21, %22 : vector<32x8xf32>
    %24 = math.tanh %23 : vector<32x8xf32>
    %25 = arith.mulf %20, %24 : vector<32x8xf32>
    %26 = arith.index_cast %c0_i32 : i32 to index
    %c0_6 = arith.constant 0 : index
    %c0_7 = arith.constant 0 : index
    %27 = vector.load %arg8[%26, %c0_6, %c0_7] : memref<10x32x8xf32, #tpu.memory_space<vmem>>, vector<1x32x8xf32>
    %28 = vector.shape_cast %27 : vector<1x32x8xf32> to vector<32x8xf32>
    %29 = vector.shape_cast %25 : vector<32x8xf32> to vector<1x32x8xf32>
    tpu.vector_store %arg8[%26, %c0_6, %c0_7], %29 {strides = array<i32>} : memref<10x32x8xf32, #tpu.memory_space<vmem>>, vector<1x32x8xf32>,
    %c1_i32 = arith.constant 1 : i32
    %30 = arith.truncf %25 : vector<32x8xf32> to vector<32x8xbf16>
    %cst_8 = arith.constant dense<0.000000e+00> : vector<128x8xf32>
    %31 = tpu.matmul %0, %30, %cst_8 {dimension_numbers = #tpu.dot_dimension_numbers<[1], [0], [0], [1], [0, 0, 1, 1], [], []>} : vector<128x32xbf16>, vector<32x8xbf16>, vector<128x8xf32> -> vector<128x8xf32>
    %32 = arith.index_cast %c1_i32 : i32 to index
    %c0_9 = arith.constant 0 : index
    %c0_10 = arith.constant 0 : index
    %33 = vector.load %arg1[%32, %c0_9, %c0_10] : memref<10x128x8xbf16, #tpu.memory_space<vmem>>, vector<1x128x8xbf16>
    %34 = vector.shape_cast %33 : vector<1x128x8xbf16> to vector<128x8xbf16>
    %35 = arith.extf %34 : vector<128x8xbf16> to vector<128x8xf32>
    %36 = arith.addf %31, %35 : vector<128x8xf32>
    %37 = vector.extract_strided_slice %36 {offsets = [0, 0], sizes = [96, 8], strides = [1, 1]} : vector<128x8xf32> to vector<96x8xf32>
    %38 = arith.negf %37 : vector<96x8xf32>
    %39 = math.exp %38 : vector<96x8xf32>
    %cst_11 = arith.constant 1.000000e+00 : f32
    %40 = vector.broadcast %cst_11 : f32 to vector<96x8xf32>
    %41 = arith.addf %40, %39 : vector<96x8xf32>
    %42 = arith.divf %40, %41 : vector<96x8xf32>
    %43 = vector.extract_strided_slice %36 {offsets = [96, 0], sizes = [32, 8], strides = [1, 1]} : vector<128x8xf32> to vector<32x8xf32>
    %44 = math.tanh %43 : vector<32x8xf32>
    %45 = vector.extract_strided_slice %42 {offsets = [0, 0], sizes = [32, 8], strides = [1, 1]} : vector<96x8xf32> to vector<32x8xf32>
    %46 = vector.extract_strided_slice %42 {offsets = [32, 0], sizes = [32, 8], strides = [1, 1]} : vector<96x8xf32> to vector<32x8xf32>
    %47 = vector.extract_strided_slice %42 {offsets = [64, 0], sizes = [32, 8], strides = [1, 1]} : vector<96x8xf32> to vector<32x8xf32>
    %48 = arith.mulf %46, %23 : vector<32x8xf32>
    %49 = arith.mulf %45, %44 : vector<32x8xf32>
    %50 = arith.addf %48, %49 : vector<32x8xf32>
    %51 = math.tanh %50 : vector<32x8xf32>
    %52 = arith.mulf %47, %51 : vector<32x8xf32>
    %53 = arith.index_cast %c1_i32 : i32 to index
    %c0_12 = arith.constant 0 : index
    %c0_13 = arith.constant 0 : index
    %54 = vector.load %arg8[%53, %c0_12, %c0_13] : memref<10x32x8xf32, #tpu.memory_space<vmem>>, vector<1x32x8xf32>
    %55 = vector.shape_cast %54 : vector<1x32x8xf32> to vector<32x8xf32>
    %56 = vector.shape_cast %52 : vector<32x8xf32> to vector<1x32x8xf32>
    tpu.vector_store %arg8[%53, %c0_12, %c0_13], %56 {strides = array<i32>} : memref<10x32x8xf32, #tpu.memory_space<vmem>>, vector<1x32x8xf32>,
    %c2_i32 = arith.constant 2 : i32
    %57 = arith.truncf %52 : vector<32x8xf32> to vector<32x8xbf16>
    %cst_14 = arith.constant dense<0.000000e+00> : vector<128x8xf32>
    %58 = tpu.matmul %0, %57, %cst_14 {dimension_numbers = #tpu.dot_dimension_numbers<[1], [0], [0], [1], [0, 0, 1, 1], [], []>} : vector<128x32xbf16>, vector<32x8xbf16>, vector<128x8xf32> -> vector<128x8xf32>
    %59 = arith.index_cast %c2_i32 : i32 to index
    %c0_15 = arith.constant 0 : index
    %c0_16 = arith.constant 0 : index
    %60 = vector.load %arg1[%59, %c0_15, %c0_16] : memref<10x128x8xbf16, #tpu.memory_space<vmem>>, vector<1x128x8xbf16>
    %61 = vector.shape_cast %60 : vector<1x128x8xbf16> to vector<128x8xbf16>
    %62 = arith.extf %61 : vector<128x8xbf16> to vector<128x8xf32>
    %63 = arith.addf %58, %62 : vector<128x8xf32>
    %64 = vector.extract_strided_slice %63 {offsets = [0, 0], sizes = [96, 8], strides = [1, 1]} : vector<128x8xf32> to vector<96x8xf32>
    %65 = arith.negf %64 : vector<96x8xf32>
    %66 = math.exp %65 : vector<96x8xf32>
    %cst_17 = arith.constant 1.000000e+00 : f32
    %67 = vector.broadcast %cst_17 : f32 to vector<96x8xf32>
    %68 = arith.addf %67, %66 : vector<96x8xf32>
    %69 = arith.divf %67, %68 : vector<96x8xf32>
    %70 = vector.extract_strided_slice %63 {offsets = [96, 0], sizes = [32, 8], strides = [1, 1]} : vector<128x8xf32> to vector<32x8xf32>
    %71 = math.tanh %70 : vector<32x8xf32>
    %72 = vector.extract_strided_slice %69 {offsets = [0, 0], sizes = [32, 8], strides = [1, 1]} : vector<96x8xf32> to vector<32x8xf32>
    %73 = vector.extract_strided_slice %69 {offsets = [32, 0], sizes = [32, 8], strides = [1, 1]} : vector<96x8xf32> to vector<32x8xf32>
    %74 = vector.extract_strided_slice %69 {offsets = [64, 0], sizes = [32, 8], strides = [1, 1]} : vector<96x8xf32> to vector<32x8xf32>
    %75 = arith.mulf %73, %50 : vector<32x8xf32>
    %76 = arith.mulf %72, %71 : vector<32x8xf32>
    %77 = arith.addf %75, %76 : vector<32x8xf32>
    %78 = math.tanh %77 : vector<32x8xf32>
    %79 = arith.mulf %74, %78 : vector<32x8xf32>
    %80 = arith.index_cast %c2_i32 : i32 to index
    %c0_18 = arith.constant 0 : index
    %c0_19 = arith.constant 0 : index
    %81 = vector.load %arg8[%80, %c0_18, %c0_19] : memref<10x32x8xf32, #tpu.memory_space<vmem>>, vector<1x32x8xf32>
    %82 = vector.shape_cast %81 : vector<1x32x8xf32> to vector<32x8xf32>
    %83 = vector.shape_cast %79 : vector<32x8xf32> to vector<1x32x8xf32>
    tpu.vector_store %arg8[%80, %c0_18, %c0_19], %83 {strides = array<i32>} : memref<10x32x8xf32, #tpu.memory_space<vmem>>, vector<1x32x8xf32>,
    %c3_i32 = arith.constant 3 : i32
    %84 = arith.truncf %79 : vector<32x8xf32> to vector<32x8xbf16>
    %cst_20 = arith.constant dense<0.000000e+00> : vector<128x8xf32>
    %85 = tpu.matmul %0, %84, %cst_20 {dimension_numbers = #tpu.dot_dimension_numbers<[1], [0], [0], [1], [0, 0, 1, 1], [], []>} : vector<128x32xbf16>, vector<32x8xbf16>, vector<128x8xf32> -> vector<128x8xf32>
    %86 = arith.index_cast %c3_i32 : i32 to index
    %c0_21 = arith.constant 0 : index
    %c0_22 = arith.constant 0 : index
    %87 = vector.load %arg1[%86, %c0_21, %c0_22] : memref<10x128x8xbf16, #tpu.memory_space<vmem>>, vector<1x128x8xbf16>
    %88 = vector.shape_cast %87 : vector<1x128x8xbf16> to vector<128x8xbf16>
    %89 = arith.extf %88 : vector<128x8xbf16> to vector<128x8xf32>
    %90 = arith.addf %85, %89 : vector<128x8xf32>
    %91 = vector.extract_strided_slice %90 {offsets = [0, 0], sizes = [96, 8], strides = [1, 1]} : vector<128x8xf32> to vector<96x8xf32>
    %92 = arith.negf %91 : vector<96x8xf32>
    %93 = math.exp %92 : vector<96x8xf32>
    %cst_23 = arith.constant 1.000000e+00 : f32
    %94 = vector.broadcast %cst_23 : f32 to vector<96x8xf32>
    %95 = arith.addf %94, %93 : vector<96x8xf32>
    %96 = arith.divf %94, %95 : vector<96x8xf32>
    %97 = vector.extract_strided_slice %90 {offsets = [96, 0], sizes = [32, 8], strides = [1, 1]} : vector<128x8xf32> to vector<32x8xf32>
    %98 = math.tanh %97 : vector<32x8xf32>
    %99 = vector.extract_strided_slice %96 {offsets = [0, 0], sizes = [32, 8], strides = [1, 1]} : vector<96x8xf32> to vector<32x8xf32>
    %100 = vector.extract_strided_slice %96 {offsets = [32, 0], sizes = [32, 8], strides = [1, 1]} : vector<96x8xf32> to vector<32x8xf32>
    %101 = vector.extract_strided_slice %96 {offsets = [64, 0], sizes = [32, 8], strides = [1, 1]} : vector<96x8xf32> to vector<32x8xf32>
    %102 = arith.mulf %100, %77 : vector<32x8xf32>
    %103 = arith.mulf %99, %98 : vector<32x8xf32>
    %104 = arith.addf %102, %103 : vector<32x8xf32>
    %105 = math.tanh %104 : vector<32x8xf32>
    %106 = arith.mulf %101, %105 : vector<32x8xf32>
    %107 = arith.index_cast %c3_i32 : i32 to index
    %c0_24 = arith.constant 0 : index
    %c0_25 = arith.constant 0 : index
    %108 = vector.load %arg8[%107, %c0_24, %c0_25] : memref<10x32x8xf32, #tpu.memory_space<vmem>>, vector<1x32x8xf32>
    %109 = vector.shape_cast %108 : vector<1x32x8xf32> to vector<32x8xf32>
    %110 = vector.shape_cast %106 : vector<32x8xf32> to vector<1x32x8xf32>
    tpu.vector_store %arg8[%107, %c0_24, %c0_25], %110 {strides = array<i32>} : memref<10x32x8xf32, #tpu.memory_space<vmem>>, vector<1x32x8xf32>,
    %c4_i32 = arith.constant 4 : i32
    %111 = arith.truncf %106 : vector<32x8xf32> to vector<32x8xbf16>
    %cst_26 = arith.constant dense<0.000000e+00> : vector<128x8xf32>
    %112 = tpu.matmul %0, %111, %cst_26 {dimension_numbers = #tpu.dot_dimension_numbers<[1], [0], [0], [1], [0, 0, 1, 1], [], []>} : vector<128x32xbf16>, vector<32x8xbf16>, vector<128x8xf32> -> vector<128x8xf32>
    %113 = arith.index_cast %c4_i32 : i32 to index
    %c0_27 = arith.constant 0 : index
    %c0_28 = arith.constant 0 : index
    %114 = vector.load %arg1[%113, %c0_27, %c0_28] : memref<10x128x8xbf16, #tpu.memory_space<vmem>>, vector<1x128x8xbf16>
    %115 = vector.shape_cast %114 : vector<1x128x8xbf16> to vector<128x8xbf16>
    %116 = arith.extf %115 : vector<128x8xbf16> to vector<128x8xf32>
    %117 = arith.addf %112, %116 : vector<128x8xf32>
    %118 = vector.extract_strided_slice %117 {offsets = [0, 0], sizes = [96, 8], strides = [1, 1]} : vector<128x8xf32> to vector<96x8xf32>
    %119 = arith.negf %118 : vector<96x8xf32>
    %120 = math.exp %119 : vector<96x8xf32>
    %cst_29 = arith.constant 1.000000e+00 : f32
    %121 = vector.broadcast %cst_29 : f32 to vector<96x8xf32>
    %122 = arith.addf %121, %120 : vector<96x8xf32>
    %123 = arith.divf %121, %122 : vector<96x8xf32>
    %124 = vector.extract_strided_slice %117 {offsets = [96, 0], sizes = [32, 8], strides = [1, 1]} : vector<128x8xf32> to vector<32x8xf32>
    %125 = math.tanh %124 : vector<32x8xf32>
    %126 = vector.extract_strided_slice %123 {offsets = [0, 0], sizes = [32, 8], strides = [1, 1]} : vector<96x8xf32> to vector<32x8xf32>
    %127 = vector.extract_strided_slice %123 {offsets = [32, 0], sizes = [32, 8], strides = [1, 1]} : vector<96x8xf32> to vector<32x8xf32>
    %128 = vector.extract_strided_slice %123 {offsets = [64, 0], sizes = [32, 8], strides = [1, 1]} : vector<96x8xf32> to vector<32x8xf32>
    %129 = arith.mulf %127, %104 : vector<32x8xf32>
    %130 = arith.mulf %126, %125 : vector<32x8xf32>
    %131 = arith.addf %129, %130 : vector<32x8xf32>
    %132 = math.tanh %131 : vector<32x8xf32>
    %133 = arith.mulf %128, %132 : vector<32x8xf32>
    %134 = arith.index_cast %c4_i32 : i32 to index
    %c0_30 = arith.constant 0 : index
    %c0_31 = arith.constant 0 : index
    %135 = vector.load %arg8[%134, %c0_30, %c0_31] : memref<10x32x8xf32, #tpu.memory_space<vmem>>, vector<1x32x8xf32>
    %136 = vector.shape_cast %135 : vector<1x32x8xf32> to vector<32x8xf32>
    %137 = vector.shape_cast %133 : vector<32x8xf32> to vector<1x32x8xf32>
    tpu.vector_store %arg8[%134, %c0_30, %c0_31], %137 {strides = array<i32>} : memref<10x32x8xf32, #tpu.memory_space<vmem>>, vector<1x32x8xf32>,
    %c5_i32 = arith.constant 5 : i32
    %138 = arith.truncf %133 : vector<32x8xf32> to vector<32x8xbf16>
    %cst_32 = arith.constant dense<0.000000e+00> : vector<128x8xf32>
    %139 = tpu.matmul %0, %138, %cst_32 {dimension_numbers = #tpu.dot_dimension_numbers<[1], [0], [0], [1], [0, 0, 1, 1], [], []>} : vector<128x32xbf16>, vector<32x8xbf16>, vector<128x8xf32> -> vector<128x8xf32>
    %140 = arith.index_cast %c5_i32 : i32 to index
    %c0_33 = arith.constant 0 : index
    %c0_34 = arith.constant 0 : index
    %141 = vector.load %arg1[%140, %c0_33, %c0_34] : memref<10x128x8xbf16, #tpu.memory_space<vmem>>, vector<1x128x8xbf16>
    %142 = vector.shape_cast %141 : vector<1x128x8xbf16> to vector<128x8xbf16>
    %143 = arith.extf %142 : vector<128x8xbf16> to vector<128x8xf32>
    %144 = arith.addf %139, %143 : vector<128x8xf32>
    %145 = vector.extract_strided_slice %144 {offsets = [0, 0], sizes = [96, 8], strides = [1, 1]} : vector<128x8xf32> to vector<96x8xf32>
    %146 = arith.negf %145 : vector<96x8xf32>
    %147 = math.exp %146 : vector<96x8xf32>
    %cst_35 = arith.constant 1.000000e+00 : f32
    %148 = vector.broadcast %cst_35 : f32 to vector<96x8xf32>
    %149 = arith.addf %148, %147 : vector<96x8xf32>
    %150 = arith.divf %148, %149 : vector<96x8xf32>
    %151 = vector.extract_strided_slice %144 {offsets = [96, 0], sizes = [32, 8], strides = [1, 1]} : vector<128x8xf32> to vector<32x8xf32>
    %152 = math.tanh %151 : vector<32x8xf32>
    %153 = vector.extract_strided_slice %150 {offsets = [0, 0], sizes = [32, 8], strides = [1, 1]} : vector<96x8xf32> to vector<32x8xf32>
    %154 = vector.extract_strided_slice %150 {offsets = [32, 0], sizes = [32, 8], strides = [1, 1]} : vector<96x8xf32> to vector<32x8xf32>
    %155 = vector.extract_strided_slice %150 {offsets = [64, 0], sizes = [32, 8], strides = [1, 1]} : vector<96x8xf32> to vector<32x8xf32>
    %156 = arith.mulf %154, %131 : vector<32x8xf32>
    %157 = arith.mulf %153, %152 : vector<32x8xf32>
    %158 = arith.addf %156, %157 : vector<32x8xf32>
    %159 = math.tanh %158 : vector<32x8xf32>
    %160 = arith.mulf %155, %159 : vector<32x8xf32>
    %161 = arith.index_cast %c5_i32 : i32 to index
    %c0_36 = arith.constant 0 : index
    %c0_37 = arith.constant 0 : index
    %162 = vector.load %arg8[%161, %c0_36, %c0_37] : memref<10x32x8xf32, #tpu.memory_space<vmem>>, vector<1x32x8xf32>
    %163 = vector.shape_cast %162 : vector<1x32x8xf32> to vector<32x8xf32>
    %164 = vector.shape_cast %160 : vector<32x8xf32> to vector<1x32x8xf32>
    tpu.vector_store %arg8[%161, %c0_36, %c0_37], %164 {strides = array<i32>} : memref<10x32x8xf32, #tpu.memory_space<vmem>>, vector<1x32x8xf32>,
    %c6_i32 = arith.constant 6 : i32
    %165 = arith.truncf %160 : vector<32x8xf32> to vector<32x8xbf16>
    %cst_38 = arith.constant dense<0.000000e+00> : vector<128x8xf32>
    %166 = tpu.matmul %0, %165, %cst_38 {dimension_numbers = #tpu.dot_dimension_numbers<[1], [0], [0], [1], [0, 0, 1, 1], [], []>} : vector<128x32xbf16>, vector<32x8xbf16>, vector<128x8xf32> -> vector<128x8xf32>
    %167 = arith.index_cast %c6_i32 : i32 to index
    %c0_39 = arith.constant 0 : index
    %c0_40 = arith.constant 0 : index
    %168 = vector.load %arg1[%167, %c0_39, %c0_40] : memref<10x128x8xbf16, #tpu.memory_space<vmem>>, vector<1x128x8xbf16>
    %169 = vector.shape_cast %168 : vector<1x128x8xbf16> to vector<128x8xbf16>
    %170 = arith.extf %169 : vector<128x8xbf16> to vector<128x8xf32>
    %171 = arith.addf %166, %170 : vector<128x8xf32>
    %172 = vector.extract_strided_slice %171 {offsets = [0, 0], sizes = [96, 8], strides = [1, 1]} : vector<128x8xf32> to vector<96x8xf32>
    %173 = arith.negf %172 : vector<96x8xf32>
    %174 = math.exp %173 : vector<96x8xf32>
    %cst_41 = arith.constant 1.000000e+00 : f32
    %175 = vector.broadcast %cst_41 : f32 to vector<96x8xf32>
    %176 = arith.addf %175, %174 : vector<96x8xf32>
    %177 = arith.divf %175, %176 : vector<96x8xf32>
    %178 = vector.extract_strided_slice %171 {offsets = [96, 0], sizes = [32, 8], strides = [1, 1]} : vector<128x8xf32> to vector<32x8xf32>
    %179 = math.tanh %178 : vector<32x8xf32>
    %180 = vector.extract_strided_slice %177 {offsets = [0, 0], sizes = [32, 8], strides = [1, 1]} : vector<96x8xf32> to vector<32x8xf32>
    %181 = vector.extract_strided_slice %177 {offsets = [32, 0], sizes = [32, 8], strides = [1, 1]} : vector<96x8xf32> to vector<32x8xf32>
    %182 = vector.extract_strided_slice %177 {offsets = [64, 0], sizes = [32, 8], strides = [1, 1]} : vector<96x8xf32> to vector<32x8xf32>
    %183 = arith.mulf %181, %158 : vector<32x8xf32>
    %184 = arith.mulf %180, %179 : vector<32x8xf32>
    %185 = arith.addf %183, %184 : vector<32x8xf32>
    %186 = math.tanh %185 : vector<32x8xf32>
    %187 = arith.mulf %182, %186 : vector<32x8xf32>
    %188 = arith.index_cast %c6_i32 : i32 to index
    %c0_42 = arith.constant 0 : index
    %c0_43 = arith.constant 0 : index
    %189 = vector.load %arg8[%188, %c0_42, %c0_43] : memref<10x32x8xf32, #tpu.memory_space<vmem>>, vector<1x32x8xf32>
    %190 = vector.shape_cast %189 : vector<1x32x8xf32> to vector<32x8xf32>
    %191 = vector.shape_cast %187 : vector<32x8xf32> to vector<1x32x8xf32>
    tpu.vector_store %arg8[%188, %c0_42, %c0_43], %191 {strides = array<i32>} : memref<10x32x8xf32, #tpu.memory_space<vmem>>, vector<1x32x8xf32>,
    %c7_i32 = arith.constant 7 : i32
    %192 = arith.truncf %187 : vector<32x8xf32> to vector<32x8xbf16>
    %cst_44 = arith.constant dense<0.000000e+00> : vector<128x8xf32>
    %193 = tpu.matmul %0, %192, %cst_44 {dimension_numbers = #tpu.dot_dimension_numbers<[1], [0], [0], [1], [0, 0, 1, 1], [], []>} : vector<128x32xbf16>, vector<32x8xbf16>, vector<128x8xf32> -> vector<128x8xf32>
    %194 = arith.index_cast %c7_i32 : i32 to index
    %c0_45 = arith.constant 0 : index
    %c0_46 = arith.constant 0 : index
    %195 = vector.load %arg1[%194, %c0_45, %c0_46] : memref<10x128x8xbf16, #tpu.memory_space<vmem>>, vector<1x128x8xbf16>
    %196 = vector.shape_cast %195 : vector<1x128x8xbf16> to vector<128x8xbf16>
    %197 = arith.extf %196 : vector<128x8xbf16> to vector<128x8xf32>
    %198 = arith.addf %193, %197 : vector<128x8xf32>
    %199 = vector.extract_strided_slice %198 {offsets = [0, 0], sizes = [96, 8], strides = [1, 1]} : vector<128x8xf32> to vector<96x8xf32>
    %200 = arith.negf %199 : vector<96x8xf32>
    %201 = math.exp %200 : vector<96x8xf32>
    %cst_47 = arith.constant 1.000000e+00 : f32
    %202 = vector.broadcast %cst_47 : f32 to vector<96x8xf32>
    %203 = arith.addf %202, %201 : vector<96x8xf32>
    %204 = arith.divf %202, %203 : vector<96x8xf32>
    %205 = vector.extract_strided_slice %198 {offsets = [96, 0], sizes = [32, 8], strides = [1, 1]} : vector<128x8xf32> to vector<32x8xf32>
    %206 = math.tanh %205 : vector<32x8xf32>
    %207 = vector.extract_strided_slice %204 {offsets = [0, 0], sizes = [32, 8], strides = [1, 1]} : vector<96x8xf32> to vector<32x8xf32>
    %208 = vector.extract_strided_slice %204 {offsets = [32, 0], sizes = [32, 8], strides = [1, 1]} : vector<96x8xf32> to vector<32x8xf32>
    %209 = vector.extract_strided_slice %204 {offsets = [64, 0], sizes = [32, 8], strides = [1, 1]} : vector<96x8xf32> to vector<32x8xf32>
    %210 = arith.mulf %208, %185 : vector<32x8xf32>
    %211 = arith.mulf %207, %206 : vector<32x8xf32>
    %212 = arith.addf %210, %211 : vector<32x8xf32>
    %213 = math.tanh %212 : vector<32x8xf32>
    %214 = arith.mulf %209, %213 : vector<32x8xf32>
    %215 = arith.index_cast %c7_i32 : i32 to index
    %c0_48 = arith.constant 0 : index
    %c0_49 = arith.constant 0 : index
    %216 = vector.load %arg8[%215, %c0_48, %c0_49] : memref<10x32x8xf32, #tpu.memory_space<vmem>>, vector<1x32x8xf32>
    %217 = vector.shape_cast %216 : vector<1x32x8xf32> to vector<32x8xf32>
    %218 = vector.shape_cast %214 : vector<32x8xf32> to vector<1x32x8xf32>
    tpu.vector_store %arg8[%215, %c0_48, %c0_49], %218 {strides = array<i32>} : memref<10x32x8xf32, #tpu.memory_space<vmem>>, vector<1x32x8xf32>,
    %c8_i32 = arith.constant 8 : i32
    %219 = arith.truncf %214 : vector<32x8xf32> to vector<32x8xbf16>
    %cst_50 = arith.constant dense<0.000000e+00> : vector<128x8xf32>
    %220 = tpu.matmul %0, %219, %cst_50 {dimension_numbers = #tpu.dot_dimension_numbers<[1], [0], [0], [1], [0, 0, 1, 1], [], []>} : vector<128x32xbf16>, vector<32x8xbf16>, vector<128x8xf32> -> vector<128x8xf32>
    %221 = arith.index_cast %c8_i32 : i32 to index
    %c0_51 = arith.constant 0 : index
    %c0_52 = arith.constant 0 : index
    %222 = vector.load %arg1[%221, %c0_51, %c0_52] : memref<10x128x8xbf16, #tpu.memory_space<vmem>>, vector<1x128x8xbf16>
    %223 = vector.shape_cast %222 : vector<1x128x8xbf16> to vector<128x8xbf16>
    %224 = arith.extf %223 : vector<128x8xbf16> to vector<128x8xf32>
    %225 = arith.addf %220, %224 : vector<128x8xf32>
    %226 = vector.extract_strided_slice %225 {offsets = [0, 0], sizes = [96, 8], strides = [1, 1]} : vector<128x8xf32> to vector<96x8xf32>
    %227 = arith.negf %226 : vector<96x8xf32>
    %228 = math.exp %227 : vector<96x8xf32>
    %cst_53 = arith.constant 1.000000e+00 : f32
    %229 = vector.broadcast %cst_53 : f32 to vector<96x8xf32>
    %230 = arith.addf %229, %228 : vector<96x8xf32>
    %231 = arith.divf %229, %230 : vector<96x8xf32>
    %232 = vector.extract_strided_slice %225 {offsets = [96, 0], sizes = [32, 8], strides = [1, 1]} : vector<128x8xf32> to vector<32x8xf32>
    %233 = math.tanh %232 : vector<32x8xf32>
    %234 = vector.extract_strided_slice %231 {offsets = [0, 0], sizes = [32, 8], strides = [1, 1]} : vector<96x8xf32> to vector<32x8xf32>
    %235 = vector.extract_strided_slice %231 {offsets = [32, 0], sizes = [32, 8], strides = [1, 1]} : vector<96x8xf32> to vector<32x8xf32>
    %236 = vector.extract_strided_slice %231 {offsets = [64, 0], sizes = [32, 8], strides = [1, 1]} : vector<96x8xf32> to vector<32x8xf32>
    %237 = arith.mulf %235, %212 : vector<32x8xf32>
    %238 = arith.mulf %234, %233 : vector<32x8xf32>
    %239 = arith.addf %237, %238 : vector<32x8xf32>
    %240 = math.tanh %239 : vector<32x8xf32>
    %241 = arith.mulf %236, %240 : vector<32x8xf32>
    %242 = arith.index_cast %c8_i32 : i32 to index
    %c0_54 = arith.constant 0 : index
    %c0_55 = arith.constant 0 : index
    %243 = vector.load %arg8[%242, %c0_54, %c0_55] : memref<10x32x8xf32, #tpu.memory_space<vmem>>, vector<1x32x8xf32>
    %244 = vector.shape_cast %243 : vector<1x32x8xf32> to vector<32x8xf32>
    %245 = vector.shape_cast %241 : vector<32x8xf32> to vector<1x32x8xf32>
    tpu.vector_store %arg8[%242, %c0_54, %c0_55], %245 {strides = array<i32>} : memref<10x32x8xf32, #tpu.memory_space<vmem>>, vector<1x32x8xf32>,
    %c9_i32 = arith.constant 9 : i32
    %246 = arith.truncf %241 : vector<32x8xf32> to vector<32x8xbf16>
    %cst_56 = arith.constant dense<0.000000e+00> : vector<128x8xf32>
    %247 = tpu.matmul %0, %246, %cst_56 {dimension_numbers = #tpu.dot_dimension_numbers<[1], [0], [0], [1], [0, 0, 1, 1], [], []>} : vector<128x32xbf16>, vector<32x8xbf16>, vector<128x8xf32> -> vector<128x8xf32>
    %248 = arith.index_cast %c9_i32 : i32 to index
    %c0_57 = arith.constant 0 : index
    %c0_58 = arith.constant 0 : index
    %249 = vector.load %arg1[%248, %c0_57, %c0_58] : memref<10x128x8xbf16, #tpu.memory_space<vmem>>, vector<1x128x8xbf16>
    %250 = vector.shape_cast %249 : vector<1x128x8xbf16> to vector<128x8xbf16>
    %251 = arith.extf %250 : vector<128x8xbf16> to vector<128x8xf32>
    %252 = arith.addf %247, %251 : vector<128x8xf32>
    %253 = vector.extract_strided_slice %252 {offsets = [0, 0], sizes = [96, 8], strides = [1, 1]} : vector<128x8xf32> to vector<96x8xf32>
    %254 = arith.negf %253 : vector<96x8xf32>
    %255 = math.exp %254 : vector<96x8xf32>
    %cst_59 = arith.constant 1.000000e+00 : f32
    %256 = vector.broadcast %cst_59 : f32 to vector<96x8xf32>
    %257 = arith.addf %256, %255 : vector<96x8xf32>
    %258 = arith.divf %256, %257 : vector<96x8xf32>
    %259 = vector.extract_strided_slice %252 {offsets = [96, 0], sizes = [32, 8], strides = [1, 1]} : vector<128x8xf32> to vector<32x8xf32>
    %260 = math.tanh %259 : vector<32x8xf32>
    %261 = vector.extract_strided_slice %258 {offsets = [0, 0], sizes = [32, 8], strides = [1, 1]} : vector<96x8xf32> to vector<32x8xf32>
    %262 = vector.extract_strided_slice %258 {offsets = [32, 0], sizes = [32, 8], strides = [1, 1]} : vector<96x8xf32> to vector<32x8xf32>
    %263 = vector.extract_strided_slice %258 {offsets = [64, 0], sizes = [32, 8], strides = [1, 1]} : vector<96x8xf32> to vector<32x8xf32>
    %264 = arith.mulf %262, %239 : vector<32x8xf32>
    %265 = arith.mulf %261, %260 : vector<32x8xf32>
    %266 = arith.addf %264, %265 : vector<32x8xf32>
    %267 = math.tanh %266 : vector<32x8xf32>
    %268 = arith.mulf %263, %267 : vector<32x8xf32>
    %269 = arith.index_cast %c9_i32 : i32 to index
    %c0_60 = arith.constant 0 : index
    %c0_61 = arith.constant 0 : index
    %270 = vector.load %arg8[%269, %c0_60, %c0_61] : memref<10x32x8xf32, #tpu.memory_space<vmem>>, vector<1x32x8xf32>
    %271 = vector.shape_cast %270 : vector<1x32x8xf32> to vector<32x8xf32>
    %272 = vector.shape_cast %268 : vector<32x8xf32> to vector<1x32x8xf32>
    tpu.vector_store %arg8[%269, %c0_60, %c0_61], %272 {strides = array<i32>} : memref<10x32x8xf32, #tpu.memory_space<vmem>>, vector<1x32x8xf32>,
    %c10_i32 = arith.constant 10 : i32
    %273 = tpu.iota {dimensions = array<i32: 0>} : vector<10x1x8xi32>
    %c0_62 = arith.constant 0 : index
    %c0_63 = arith.constant 0 : index
    %274 = vector.load %arg2[%c0_62, %c0_63] : memref<1x8xi32, #tpu.memory_space<vmem>>, vector<1x8xi32>
    %275 = vector.shape_cast %274 : vector<1x8xi32> to vector<1x1x8xi32>
    %276 = vector.broadcast %275 : vector<1x1x8xi32> to vector<10x1x8xi32>
    %277 = arith.cmpi slt, %273, %276 : vector<10x1x8xi32>
    %278 = arith.extui %277 : vector<10x1x8xi1> to vector<10x1x8xi32>
    %279 = arith.sitofp %278 : vector<10x1x8xi32> to vector<10x1x8xf32>
    %c0_64 = arith.constant 0 : index
    %c0_65 = arith.constant 0 : index
    %c0_66 = arith.constant 0 : index
    %280 = vector.load %arg8[%c0_64, %c0_65, %c0_66] : memref<10x32x8xf32, #tpu.memory_space<vmem>>, vector<10x32x8xf32>
    %281 = vector.broadcast %279 : vector<10x1x8xf32> to vector<10x32x8xf32>
    %282 = arith.mulf %280, %281 : vector<10x32x8xf32>
    %c0_67 = arith.constant 0 : index
    %c0_68 = arith.constant 0 : index
    %c0_69 = arith.constant 0 : index
    %283 = vector.load %arg8[%c0_67, %c0_68, %c0_69] : memref<10x32x8xf32, #tpu.memory_space<vmem>>, vector<10x32x8xf32>
    tpu.vector_store %arg8[%c0_67, %c0_68, %c0_69], %282 {strides = array<i32>} : memref<10x32x8xf32, #tpu.memory_space<vmem>>, vector<10x32x8xf32>,
    %c0_70 = arith.constant 0 : index
    %c0_71 = arith.constant 0 : index
    %c0_72 = arith.constant 0 : index
    %284 = vector.load %arg8[%c0_70, %c0_71, %c0_72] : memref<10x32x8xf32, #tpu.memory_space<vmem>>, vector<10x32x8xf32>
    %c0_73 = arith.constant 0 : index
    %c0_74 = arith.constant 0 : index
    %285 = vector.load %arg4[%c0_73, %c0_74] : memref<32x1xf32, #tpu.memory_space<vmem>>, vector<32x1xf32>
    %286 = vector.shape_cast %285 : vector<32x1xf32> to vector<1x32x1xf32>
    %287 = vector.broadcast %286 : vector<1x32x1xf32> to vector<10x32x8xf32>
    %288 = arith.mulf %284, %287 : vector<10x32x8xf32>
    %cst_75 = arith.constant dense<0.000000e+00> : vector<10x8xf32>
    %289 = vector.multi_reduction <add>, %288, %cst_75 [1] : vector<10x32x8xf32> to vector<10x8xf32>
    %290 = vector.shape_cast %289 : vector<10x8xf32> to vector<10x1x8xf32>
    %cst_76 = arith.constant dense<0xFF800000> : vector<1x8xf32>
    %291 = vector.multi_reduction <maximumf>, %290, %cst_76 [0] : vector<10x1x8xf32> to vector<1x8xf32>
    %292 = vector.shape_cast %291 : vector<1x8xf32> to vector<1x1x8xf32>
    %293 = vector.broadcast %292 : vector<1x1x8xf32> to vector<10x1x8xf32>
    %294 = arith.subf %290, %293 : vector<10x1x8xf32>
    %295 = math.exp %294 : vector<10x1x8xf32>
    %cst_77 = arith.constant dense<0.000000e+00> : vector<1x8xf32>
    %296 = vector.multi_reduction <add>, %295, %cst_77 [0] : vector<10x1x8xf32> to vector<1x8xf32>
    %297 = vector.shape_cast %296 : vector<1x8xf32> to vector<1x1x8xf32>
    %298 = tpu.reciprocal %297 {approx = true} : vector<1x1x8xf32> -> vector<1x1x8xf32>
    %299 = vector.broadcast %298 : vector<1x1x8xf32> to vector<10x1x8xf32>
    %300 = arith.mulf %295, %299 : vector<10x1x8xf32>
    %c0_78 = arith.constant 0 : index
    %c0_79 = arith.constant 0 : index
    %c0_80 = arith.constant 0 : index
    %301 = vector.load %arg8[%c0_78, %c0_79, %c0_80] : memref<10x32x8xf32, #tpu.memory_space<vmem>>, vector<10x32x8xf32>
    %302 = vector.broadcast %300 : vector<10x1x8xf32> to vector<10x32x8xf32>
    %303 = arith.mulf %302, %301 : vector<10x32x8xf32>
    %cst_81 = arith.constant dense<0.000000e+00> : vector<32x8xf32>
    %304 = vector.multi_reduction <add>, %303, %cst_81 [0] : vector<10x32x8xf32> to vector<32x8xf32>
    %c0_82 = arith.constant 0 : index
    %c0_83 = arith.constant 0 : index
    %305 = vector.load %arg5[%c0_82, %c0_83] : memref<3x32xf32, #tpu.memory_space<vmem>>, vector<3x32xf32>
    %cst_84 = arith.constant dense<0.000000e+00> : vector<3x8xf32>
    %306 = tpu.matmul %305, %304, %cst_84 {dimension_numbers = #tpu.dot_dimension_numbers<[1], [0], [0], [1], [0, 0, 1, 1], [], []>} : vector<3x32xf32>, vector<32x8xf32>, vector<3x8xf32> -> vector<3x8xf32>
    %c0_85 = arith.constant 0 : index
    %c0_86 = arith.constant 0 : index
    %307 = vector.load %arg6[%c0_85, %c0_86] : memref<3x1xf32, #tpu.memory_space<vmem>>, vector<3x1xf32>
    %308 = vector.broadcast %307 : vector<3x1xf32> to vector<3x8xf32>
    %309 = arith.addf %306, %308 : vector<3x8xf32>
    %c0_87 = arith.constant 0 : index
    %c0_88 = arith.constant 0 : index
    %310 = vector.load %arg7[%c0_87, %c0_88] : memref<3x8xf32, #tpu.memory_space<vmem>>, vector<3x8xf32>
    tpu.vector_store %arg7[%c0_87, %c0_88], %309 {strides = array<i32>} : memref<3x8xf32, #tpu.memory_space<vmem>>, vector<3x8xf32>,
    return
  }
  func.func @transform_0(%arg0: i32) -> (i32, i32, i32) {
    %c0_i32 = arith.constant 0 : i32
    %c0_i32_0 = arith.constant 0 : i32
    %c0_i32_1 = arith.constant 0 : i32
    return %c0_i32, %c0_i32_0, %arg0 : i32, i32, i32
  }
  func.func @transform_1(%arg0: i32) -> (i32, i32) {
    %c0_i32 = arith.constant 0 : i32
    %c0_i32_0 = arith.constant 0 : i32
    return %c0_i32, %arg0 : i32, i32
  }
  func.func @transform_2(%arg0: i32) -> (i32, i32) {
    %c0_i32 = arith.constant 0 : i32
    %c0_i32_0 = arith.constant 0 : i32
    %c0_i32_1 = arith.constant 0 : i32
    return %c0_i32, %c0_i32_0 : i32, i32
  }
  func.func @transform_3(%arg0: i32) -> (i32, i32) {
    %c0_i32 = arith.constant 0 : i32
    %c0_i32_0 = arith.constant 0 : i32
    %c0_i32_1 = arith.constant 0 : i32
    return %c0_i32, %c0_i32_0 : i32, i32
  }
  func.func @transform_4(%arg0: i32) -> (i32, i32) {
    %c0_i32 = arith.constant 0 : i32
    %c0_i32_0 = arith.constant 0 : i32
    %c0_i32_1 = arith.constant 0 : i32
    return %c0_i32, %c0_i32_0 : i32, i32
  }
  func.func @transform_5(%arg0: i32) -> (i32, i32) {
    %c0_i32 = arith.constant 0 : i32
    %c0_i32_0 = arith.constant 0 : i32
    %c0_i32_1 = arith.constant 0 : i32
    return %c0_i32, %c0_i32_0 : i32, i32
  }
  func.func @transform_6(%arg0: i32) -> (i32, i32) {
    %c0_i32 = arith.constant 0 : i32
    %c0_i32_0 = arith.constant 0 : i32
    return %c0_i32, %arg0 : i32, i32
  }
}

</mosaic_0001>

<bundles_post_ra>
// kernel: at_lstm_forward_pallas.1
= control target key start
LH: loop header
LB: loop body
LE: loop exit
PB: predicated region body
PF: predicated region fallthrough
CT: control target
= control target key end

     0   :  { %vm112_vm0 = vcmask 261120   ;;  %v4941_v0 = vmov 0   ;;  %vm330_vm1 = vcmask 64512   ;;  %vm4944_vm12 = vmmov 0   ;;  %s6192_s2 = inlined_call_operand.vmem [shape: bf16[128,32], index: 2, kind: input, shape index: {}]   ;;  %s6193_s3 = inlined_call_operand.vmem [shape: f32[32,1], index: 3, kind: input, shape index: {}]   ;;  %s6194_s0 = inlined_call_operand.vmem [shape: bf16[10,128,8], index: 0, kind: input, shape index: {}]   ;;  %s6195_s1 = inlined_call_operand.vmem [shape: s32[1,8], index: 1, kind: input, shape index: {}]   ;;  %s6196_s5 = inlined_call_operand.vmem [shape: f32[3,1], index: 5, kind: input, shape index: {}]   ;;  %s6197_s4 = inlined_call_operand.vmem [shape: f32[3,32], index: 4, kind: input, shape index: {}]   ;;  %s6198_s6 = inlined_call_operand.vmem [shape: f32[3,8], index: 6, kind: output, shape index: {}]  }
   0x1   :  { %4024 = vmatprep.subr.bf16.mxu0 %v4941_v0  ;;  %v4983_v1 = vld [vmem:[%s6192_s2] sm:$0xff]   ;;  %4244 = vset.pattern.permute.xlu1 %v4941_v0  ;;  %v4988_v2 = vld [vmem:[%s6192_s2 + $0x8] sm:$0xff]   ;;  %v4995_v3 = vld [vmem:[%s6192_s2 + $0x10] sm:$0xff]   ;;  %vm3152_vm13 = vcmask 59392  }
   0x2   :  { %4025 = vmatpush3.bf16.msra.mxu0 %v4941_v0  ;;  %4243 = vset.pattern.permute.xlu0 %v4941_v0  ;;  %v5006_v4 = vld [vmem:[%s6192_s2 + $0x18] sm:$0xff]   ;;  %v2685_v5 = vld [vmem:[%s6193_s3 + $0x10] sm:$0xff]  ;;  %v2683_v6 = vld [vmem:[%s6193_s3] sm:$0xff] }
   0x3   :  { %4026 = vmatprep.mubr.msk.bf16.mxu0 %vm112_vm0, %v4983_v1  ;;  %4046 = vmatprep.mubr.msk.bf16.mxu1 %vm112_vm0, %v4983_v1  ;;  %v5017_v7 = vld [vmem:[%s6192_s2 + $0x20] sm:$0xff]   ;;  %v2686_v8 = vld [vmem:[%s6193_s3 + $0x18] sm:$0xff]  ;;  %v2684_v9 = vld [vmem:[%s6193_s3 + $0x8] sm:$0xff] }
   0x4   :  { %2699 = vperm.xlu1 %4244, %v2685_v5   ;;  %2689 = vperm.xlu0 %4243, %v2683_v6   ;;  %v5032_v10 = vld [vmem:[%s6192_s2 + $0x28] sm:$0xff]   ;;  %v5037_v11 = vld [vmem:[%s6192_s2 + $0x30] sm:$0xff]   ;;  %v5046_v12 = vld [vmem:[%s6192_s2 + $0x38] sm:$0xff]  }
   0x5   :  { %4027 = vmatmul.mubr.msk.bf16.vlgmr.msra.gmra.mrb[0].mxu0 %vm112_vm0, %v4988_v2  ;;  %v3841_v13 = vld [vmem:[%s6194_s0 + $0x8] sm:$0xff]   ;;  %v3522_v14 = vld [vmem:[%s6194_s0] sm:$0xff]   ;;  %v3843_v24 = vld [vmem:[%s6194_s0 + $0x18] sm:$0xff]  }
   0x6   :  { %4030 = vmatprep.mubr.msk.bf16.mxu0 %vm112_vm0, %v4995_v3  ;;  %v3527_v15 = vunpack.c.l.bf16 %v3841_v13  ;;  %v3523_v16 = vunpack.c.l.bf16 %v3522_v14  ;;  %v3528_v17 = vunpack.c.h.bf16 %v3841_v13  ;;  %v3524_v19 = vunpack.c.h.bf16 %v3522_v14  ;;  %v3842_v28 = vld [vmem:[%s6194_s0 + $0x10] sm:$0xff]   ;;  %v3845_v42 = vld [vmem:[%s6194_s0 + $0x28] sm:$0xff]   ;;  %v3844_v46 = vld [vmem:[%s6194_s0 + $0x20] sm:$0xff]  }
   0x7   :  { %v3535_v32 = vunpack.c.l.bf16 %v3843_v24  ;;  %v3531_v34 = vunpack.c.l.bf16 %v3842_v28  ;;  %v3536_v35 = vunpack.c.h.bf16 %v3843_v24  ;;  %v3532_v37 = vunpack.c.h.bf16 %v3842_v28 }
   0x8   :  { %2704 = vperm.xlu1 %4244, %v2686_v8   ;;  %2694 = vperm.xlu0 %4243, %v2684_v9   ;;  %v3543_v50 = vunpack.c.l.bf16 %v3845_v42  ;;  %v3539_v52 = vunpack.c.l.bf16 %v3844_v46  ;;  %v3544_v54 = vunpack.c.h.bf16 %v3845_v42  ;;  %v3540_v58 = vunpack.c.h.bf16 %v3844_v46 }
   0xd   :  { %4031 = vmatmul.mubr.msk.bf16.gmra.mrb[4].mxu0 %vm112_vm0, %v5006_v4 }
   0xe   :  { %4034 = vmatprep.mubr.msk.bf16.mxu0 %vm112_vm0, %v5017_v7 }
  0x15   :  { %4035 = vmatmul.mubr.msk.bf16.gmra.mrb[8].mxu0 %vm112_vm0, %v5032_v10 }
  0x16   :  { %4038 = vmatprep.mubr.msk.bf16.mxu0 %vm112_vm0, %v5037_v11 }
  0x1d   :  { %4039 = vmatmul.mubr.msk.bf16.gmra.mrb[12].mxu0 %vm112_vm0, %v5046_v12 }
  0x1e   :  { %4066 = vmatprep.mubr.msk.bf16.mxu0 %vm112_vm0, %v4983_v1 }
  0xd8   :  { %v4028_v18 = vpop.f32.mrb[0].mxu0 }
  0xd9   :  { %v180_v20 = vadd.f32 %v4028_v18, %v3527_v15  ;;  %v171_v21 = vpop.f32.mrb[1].mxu0  ;;  %v3847_v15 = vld [vmem:[%s6194_s0 + $0x38] sm:$0xff]   ;;  %v3846_v18 = vld [vmem:[%s6194_s0 + $0x30] sm:$0xff]  }
  0xda   :  { %v172_v22 = vadd.f32 %v3523_v16, %v171_v21  ;;  %v4029_v23 = vpop.f32.mrb[2].mxu0  ;;  %v3551_v21 = vunpack.c.l.bf16 %v3847_v15 }
  0xdb   :  { %v3176_v25 = vmul.f32 -1.442695, %v180_v20  ;;  %v183_v26 = vadd.f32 %v4029_v23, %v3528_v17  ;;  %v174_v27 = vpop.f32.mrb[3].mxu0  ;;  %v3547_v23 = vunpack.c.l.bf16 %v3846_v18 }
  0xdc   :  { %v3174_v29 = vmul.f32 -1.442695, %v172_v22  ;;  %v175_v30 = vadd.f32 %v3524_v19, %v174_v27  ;;  %v3552_v27 = vunpack.c.h.bf16 %v3847_v15 }
  0xdd   :  { %4253 = vpow2.f32 %v3176_v25  ;;  %v3177_v31 = vmul.f32 -1.442695, %v183_v26 }
  0xde   :  { %4255 = vpow2.f32 %v3174_v29  ;;  %v3175_v33 = vmul.f32 -1.442695, %v175_v30 }
  0xdf   :  { %4257 = vpow2.f32 %v3177_v31  ;;  %v3548_v31 = vunpack.c.h.bf16 %v3846_v18 }
  0xe0   :  { %4259 = vpow2.f32 %v3175_v33  ;;  %v4032_v36 = vpop.f32.mrb[4].mxu0 }
  0xe1   :  { %v196_v38 = vadd.f32 %v4032_v36, %v3535_v32  ;;  %v187_v39 = vpop.f32.mrb[5].mxu0 }
  0xe2   :  { %v188_v40 = vadd.f32 %v3531_v34, %v187_v39  ;;  %v4033_v41 = vpop.f32.mrb[6].mxu0 }
  0xe3   :  { %v3180_v43 = vmul.f32 -1.442695, %v196_v38  ;;  %v199_v44 = vadd.f32 %v4033_v41, %v3536_v35  ;;  %v190_v45 = vpop.f32.mrb[7].mxu0 }
  0xe4   :  { %v3178_v47 = vmul.f32 -1.442695, %v188_v40  ;;  %v191_v48 = vadd.f32 %v3532_v37, %v190_v45 }
  0xe5   :  { %4261 = vpow2.f32 %v3180_v43  ;;  %v3181_v49 = vmul.f32 -1.442695, %v199_v44 }
  0xe6   :  { %4263 = vpow2.f32 %v3178_v47  ;;  %v3179_v51 = vmul.f32 -1.442695, %v191_v48 }
  0xe7   :  { %v4254_v53 = vpop.eup %4253  ;;  %4265 = vpow2.f32 %v3181_v49 }
  0xe8   :  { %v4256_v55 = vpop.eup %4255  ;;  %v272_v56 = vadd.f32 1.0, %v4254_v53  ;;  %4267 = vpow2.f32 %v3179_v51  ;;  %v4036_v57 = vpop.f32.mrb[8].mxu0 }
  0xe9   :  { %v4258_v59 = vpop.eup %4257  ;;  %v270_v60 = vadd.f32 1.0, %v4256_v55  ;;  %v212_v61 = vadd.f32 %v4036_v57, %v3543_v50  ;;  %v203_v62 = vpop.f32.mrb[9].mxu0 }
  0xea   :  { %v4260_v63 = vpop.eup %4259  ;;  %4269 = vrcp.f32 %v272_v56  ;;  %v273_v0 = vadd.f32 1.0, %v4258_v59  ;;  %v204_v5 = vadd.f32 %v3539_v52, %v203_v62  ;;  %v4037_v6 = vpop.f32.mrb[10].mxu0 }
  0xeb   :  { %4271 = vrcp.f32 %v270_v60  ;;  %v271_v8 = vadd.f32 1.0, %v4260_v63  ;;  %v3184_v9 = vmul.f32 -1.442695, %v212_v61  ;;  %v215_v13 = vadd.f32 %v4037_v6, %v3544_v54  ;;  %v206_v14 = vpop.f32.mrb[11].mxu0 }
  0xec   :  { %4273 = vrcp.f32 %v273_v0  ;;  %v3182_v16 = vmul.f32 -1.442695, %v204_v5  ;;  %v207_v17 = vadd.f32 %v3540_v58, %v206_v14 }
  0xed   :  { %4275 = vrcp.f32 %v271_v8  ;;  %v3185_v19 = vmul.f32 -1.442695, %v215_v13 }
  0xee   :  { %4277 = vpow2.f32 %v3184_v9  ;;  %v3183_v20 = vmul.f32 -1.442695, %v207_v17  ;;  %v2513_v17 = vlaneseq }
  0xef   :  { %v4262_v22 = vpop.eup %4261  ;;  %4279 = vpow2.f32 %v3182_v16 }
  0xf0   :  { %v4264_v24 = vpop.eup %4263  ;;  %v276_v25 = vadd.f32 1.0, %v4262_v22  ;;  %4281 = vpow2.f32 %v3185_v19  ;;  %v4040_v26 = vpop.f32.mrb[12].mxu0 }
  0xf1   :  { %v4266_v28 = vpop.eup %4265  ;;  %v274_v29 = vadd.f32 1.0, %v4264_v24  ;;  %4283 = vpow2.f32 %v3183_v20  ;;  %v219_v30 = vpop.f32.mrb[13].mxu0  ;;  %v228_v34 = vadd.f32 %v4040_v26, %v3551_v21  ;;  %v5091_v21 = vld [vmem:[%s6195_s1] sm:$0x1] }
  0xf2   :  { %v4268_v32 = vpop.eup %4267  ;;  %4285 = vrcp.f32 %v276_v25  ;;  %v277_v33 = vadd.f32 1.0, %v4266_v28  ;;  %v4041_v35 = vpop.f32.mrb[14].mxu0  ;;  %v220_v37 = vadd.f32 %v3547_v23, %v219_v30  ;;  %v2514_v23 = vshrl.u32 %v2513_v17, 7 }
  0xf3   :  { %4287 = vrcp.f32 %v274_v29  ;;  %v275_v36 = vadd.f32 1.0, %v4268_v32  ;;  %v222_v38 = vpop.f32.mrb[15].mxu0  ;;  %v231_v40 = vadd.f32 %v4041_v35, %v3552_v27  ;;  %vm2433_vm2 = vcmp.gt.s32.totalorder %v5091_v21, 0 }
  0xf4   :  { %v4270_v39 = vpop.eup %4269  ;;  %4289 = vrcp.f32 %v277_v33  ;;  %v223_v42 = vadd.f32 %v3548_v31, %v222_v38  ;;  %v5094_v30 = vsub.s32 0, %v2514_v23  ;;  %v6200_v33 = vmov 0.0  }
  0xf5   :  { %v4272_v41 = vpop.eup %4271  ;;  %4291 = vrcp.f32 %v275_v36  ;;  %vm2434_vm3 = vcmp.gt.s32.totalorder %v5091_v21, 1  ;;  %vm2435_vm4 = vcmp.gt.s32.totalorder %v5091_v21, 2 }
  0xf6   :  { %v4274_v43 = vpop.eup %4273  ;;  %4293 = vtanh.f32 %v228_v34  ;;  %v3510_v34 = vsel %vm2433_vm2, 1.0, %v6200_v33 }
  0xf7   :  { %v4276_v44 = vpop.eup %4275  ;;  %4295 = vtanh.f32 %v220_v37  ;;  %v2516_v37 = vrot.slane %v3510_v34, %v5094_v30 }
  0xf8   :  { %v4278_v45 = vpop.eup %4277  ;;  %4297 = vtanh.f32 %v231_v40 }
  0xf9   :  { %v4280_v46 = vpop.eup %4279  ;;  %4299 = vtanh.f32 %v223_v42  ;;  %v280_v51 = vadd.f32 1.0, %v4278_v45 }
  0xfa   :  { %v4282_v47 = vpop.eup %4281  ;;  %v278_v53 = vadd.f32 1.0, %v4280_v46  ;;  %v3849_v46 = vld [vmem:[%s6194_s0 + $0x48] sm:$0xff]  }
  0xfb   :  { %v4284_v48 = vpop.eup %4283  ;;  %v281_v56 = vadd.f32 1.0, %v4282_v47  ;;  %4301 = vrcp.f32 %v280_v51  ;;  %v3848_v47 = vld [vmem:[%s6194_s0 + $0x40] sm:$0xff]  }
  0xfc   :  { %v4286_v49 = vpop.eup %4285  ;;  %v279_v59 = vadd.f32 1.0, %v4284_v48  ;;  %4303 = vrcp.f32 %v278_v53  ;;  %v3559_v48 = vunpack.c.l.bf16 %v3849_v46 }
  0xfd   :  { %v4288_v50 = vpop.eup %4287  ;;  %v312_v55 = vmul.f32 0.0, %v4286_v49  ;;  %4305 = vrcp.f32 %v281_v56  ;;  %v3555_v49 = vunpack.c.l.bf16 %v3848_v47 }
  0xfe   :  { %v4290_v52 = vpop.eup %4289  ;;  %v310_v58 = vmul.f32 0.0, %v4288_v50  ;;  %4307 = vrcp.f32 %v279_v59  ;;  %v3560_v50 = vunpack.c.h.bf16 %v3849_v46 }
  0xff   :  { %v4292_v54 = vpop.eup %4291  ;;  %v313_v61 = vmul.f32 0.0, %v4290_v52  ;;  %v3556_v52 = vunpack.c.h.bf16 %v3848_v47 }
 0x100   :  { %v4294_v57 = vpop.eup %4293  ;;  %v311_v0 = vmul.f32 0.0, %v4292_v54 }
 0x101   :  { %v4296_v60 = vpop.eup %4295  ;;  %v316_v62 = vmul.f32 %v4294_v57, %v4270_v39  ;;  %v3851_v57 = vld [vmem:[%s6194_s0 + $0x58] sm:$0xff]  }
 0x102   :  { %v4298_v63 = vpop.eup %4297  ;;  %v314_v5 = vmul.f32 %v4296_v60, %v4272_v41 }
 0x103   :  { %v4300_v6 = vpop.eup %4299  ;;  %v5076_v8 = vadd.f32 %v316_v62, %v312_v55  ;;  %v317_v9 = vmul.f32 %v4298_v63, %v4274_v43 }
 0x104   :  { %v5078_v13 = vadd.f32 %v314_v5, %v310_v58  ;;  %v315_v14 = vmul.f32 %v4300_v6, %v4276_v44  ;;  %v3567_v5 = vunpack.c.l.bf16 %v3851_v57 }
 0x105   :  { %4309 = vtanh.f32 %v5076_v8  ;;  %v5081_v15 = vadd.f32 %v317_v9, %v313_v61  ;;  %v4302_v18 = vpop.eup %4301  ;;  %v3850_v61 = vld [vmem:[%s6194_s0 + $0x50] sm:$0xff]  }
 0x106   :  { %v5083_v16 = vadd.f32 %v315_v14, %v311_v0  ;;  %4311 = vtanh.f32 %v5078_v13  ;;  %v4304_v19 = vpop.eup %4303  ;;  %v3563_v9 = vunpack.c.l.bf16 %v3850_v61  ;;  %v3568_v14 = vunpack.c.h.bf16 %v3851_v57 }
 0x107   :  { %4313 = vtanh.f32 %v5081_v15  ;;  %v4306_v20 = vpop.eup %4305 }
 0x108   :  { %4315 = vtanh.f32 %v5083_v16  ;;  %v4308_v22 = vpop.eup %4307 }
 0x10f   :  { %v4310_v24 = vpop.eup %4309 }
 0x110   :  { %v4312_v25 = vpop.eup %4311  ;;  %v328_v26 = vmul.f32 %v4310_v24, %v4302_v18  ;;  %v3564_v18 = vunpack.c.h.bf16 %v3850_v61  ;;  %v3853_v24 = vld [vmem:[%s6194_s0 + $0x68] sm:$0xff]  }
 0x111   :  { %v4314_v27 = vpop.eup %4313  ;;  %v326_v28 = vmul.f32 %v4312_v25, %v4304_v19  ;;  %v3575_v34 = vunpack.c.l.bf16 %v3853_v24 }
 0x112   :  { %v4316_v29 = vpop.eup %4315  ;;  %v329_v31 = vmul.f32 %v4314_v27, %v4306_v20  ;;  %333 = vst.msk [vmem:[#allocation2 + $0x10] sm:$0xff] %vm330_vm1, %v328_v26 }
 0x113   :  { %v327_v32 = vmul.f32 %v4316_v29, %v4308_v22  ;;  %331 = vst.msk [vmem:[#allocation2] sm:$0xff] %vm330_vm1, %v326_v28 }
 0x114   :  { %334 = vst.msk [vmem:[#allocation2 + $0x18] sm:$0xff] %vm330_vm1, %v329_v31  ;;  %v336_v35 = vpack.c.bf16 %v329_v31, %v328_v26 }
 0x115   :  { %332 = vst.msk [vmem:[#allocation2 + $0x8] sm:$0xff] %vm330_vm1, %v327_v32  ;;  %v335_v36 = vpack.c.bf16 %v327_v32, %v326_v28  ;;  %v3852_v28 = vld [vmem:[%s6194_s0 + $0x60] sm:$0xff]  }
 0x117   :  { %4042 = vmatprep.subr.bf16.mxu1 %v335_v36 }
 0x118   :  { %4043 = vmatpush3.bf16.msra.mxu1 %v335_v36  ;;  %v3571_v36 = vunpack.c.l.bf16 %v3852_v28 }
 0x119   :  { %4044 = vmatprep.subr.bf16.mxu1 %v336_v35  ;;  %v2465_v38 = vld [vmem:[#allocation2 + $0x10] sm:$0xff] }
 0x11a   :  { %v2463_v39 = vld [vmem:[#allocation2] sm:$0xff]  ;;  %v2565_v40 = vmul.f32 %v2516_v37, %v2465_v38  ;;  %v3576_v38 = vunpack.c.h.bf16 %v3853_v24 }
 0x11b   :  { %v2563_v41 = vmul.f32 %v2516_v37, %v2463_v39  ;;  %v2466_v42 = vld [vmem:[#allocation2 + $0x18] sm:$0xff] }
 0x11c   :  { %v2464_v43 = vld [vmem:[#allocation2 + $0x8] sm:$0xff]  ;;  %v2566_v44 = vmul.f32 %v2516_v37, %v2466_v42  ;;  %2605 = vst.msk [vmem:[#allocation2 + $0x10] sm:$0xff] %vm330_vm1, %v2565_v40  ;;  %4045 = vmatpush3.bf16.msra.mxu1 %v336_v35  ;;  %v3572_v42 = vunpack.c.h.bf16 %v3852_v28 }
 0x11d   :  { %v2564_v45 = vmul.f32 %v2516_v37, %v2464_v43  ;;  %2603 = vst.msk [vmem:[#allocation2] sm:$0xff] %vm330_vm1, %v2563_v41 }
 0x11e   :  { %2606 = vst.msk [vmem:[#allocation2 + $0x18] sm:$0xff] %vm330_vm1, %v2566_v44 }
 0x11f   :  { %2604 = vst.msk [vmem:[#allocation2 + $0x8] sm:$0xff] %vm330_vm1, %v2564_v45  ;;  %4047 = vmatmul.mubr.msk.bf16.vlgmr.msra.gmra.mrb[0].mxu1 %vm112_vm0, %v4988_v2 }
 0x120   :  { %4050 = vmatprep.mubr.msk.bf16.mxu1 %vm112_vm0, %v4995_v3 }
 0x127   :  { %4051 = vmatmul.mubr.msk.bf16.gmra.mrb[4].mxu1 %vm112_vm0, %v5006_v4 }
 0x128   :  { %4054 = vmatprep.mubr.msk.bf16.mxu1 %vm112_vm0, %v5017_v7 }
 0x12f   :  { %4055 = vmatmul.mubr.msk.bf16.gmra.mrb[8].mxu1 %vm112_vm0, %v5032_v10 }
 0x130   :  { %4058 = vmatprep.mubr.msk.bf16.mxu1 %vm112_vm0, %v5037_v11 }
 0x137   :  { %4059 = vmatmul.mubr.msk.bf16.gmra.mrb[12].mxu1 %vm112_vm0, %v5046_v12 }
 0x138   :  { %4086 = vmatprep.mubr.msk.bf16.mxu1 %vm112_vm0, %v4983_v1 }
 0x1f2   :  { %v4048_v51 = vpop.f32.mrb[0].mxu1 }
 0x1f3   :  { %v413_v53 = vadd.f32 %v4048_v51, %v3559_v48  ;;  %v404_v54 = vpop.f32.mrb[1].mxu1 }
 0x1f4   :  { %v405_v55 = vadd.f32 %v3555_v49, %v404_v54  ;;  %v4049_v56 = vpop.f32.mrb[2].mxu1 }
 0x1f5   :  { %v3212_v58 = vmul.f32 -1.442695, %v413_v53  ;;  %v416_v59 = vadd.f32 %v4049_v56, %v3560_v50  ;;  %v407_v60 = vpop.f32.mrb[3].mxu1 }
 0x1f6   :  { %v3210_v62 = vmul.f32 -1.442695, %v405_v55  ;;  %v408_v63 = vadd.f32 %v3556_v52, %v407_v60  ;;  %v3855_v55 = vld [vmem:[%s6194_s0 + $0x78] sm:$0xff]  }
 0x1f7   :  { %4317 = vpow2.f32 %v3212_v58  ;;  %v3213_v0 = vmul.f32 -1.442695, %v416_v59  ;;  %v3854_v58 = vld [vmem:[%s6194_s0 + $0x70] sm:$0xff]   ;;  %v3583_v61 = vunpack.c.l.bf16 %v3855_v55 }
 0x1f8   :  { %4319 = vpow2.f32 %v3210_v62  ;;  %v3211_v6 = vmul.f32 -1.442695, %v408_v63  ;;  %v3579_v63 = vunpack.c.l.bf16 %v3854_v58 }
 0x1f9   :  { %4321 = vpow2.f32 %v3213_v0 }
 0x1fa   :  { %4323 = vpow2.f32 %v3211_v6  ;;  %v4052_v17 = vpop.f32.mrb[4].mxu1 }
 0x1fb   :  { %v429_v19 = vadd.f32 %v4052_v17, %v3567_v5  ;;  %v420_v20 = vpop.f32.mrb[5].mxu1 }
 0x1fc   :  { %v421_v22 = vadd.f32 %v3563_v9, %v420_v20  ;;  %v4053_v23 = vpop.f32.mrb[6].mxu1  ;;  %v3584_v9 = vunpack.c.h.bf16 %v3855_v55 }
 0x1fd   :  { %v3216_v25 = vmul.f32 -1.442695, %v429_v19  ;;  %v432_v26 = vadd.f32 %v4053_v23, %v3568_v14  ;;  %v423_v27 = vpop.f32.mrb[7].mxu1  ;;  %v3580_v19 = vunpack.c.h.bf16 %v3854_v58 }
 0x1fe   :  { %v3214_v29 = vmul.f32 -1.442695, %v421_v22  ;;  %v424_v31 = vadd.f32 %v3564_v18, %v423_v27 }
 0x1ff   :  { %4325 = vpow2.f32 %v3216_v25  ;;  %v3217_v32 = vmul.f32 -1.442695, %v432_v26 }
 0x200   :  { %4327 = vpow2.f32 %v3214_v29  ;;  %v3215_v35 = vmul.f32 -1.442695, %v424_v31 }
 0x201   :  { %v4318_v37 = vpop.eup %4317  ;;  %4329 = vpow2.f32 %v3217_v32 }
 0x202   :  { %v4320_v39 = vpop.eup %4319  ;;  %v505_v40 = vadd.f32 1.0, %v4318_v37  ;;  %4331 = vpow2.f32 %v3215_v35  ;;  %v4056_v41 = vpop.f32.mrb[8].mxu1 }
 0x203   :  { %v4322_v43 = vpop.eup %4321  ;;  %v503_v44 = vadd.f32 1.0, %v4320_v39  ;;  %v445_v45 = vadd.f32 %v4056_v41, %v3575_v34  ;;  %v436_v46 = vpop.f32.mrb[9].mxu1 }
 0x204   :  { %v4324_v47 = vpop.eup %4323  ;;  %4333 = vrcp.f32 %v505_v40  ;;  %v506_v48 = vadd.f32 1.0, %v4322_v43  ;;  %v437_v49 = vadd.f32 %v3571_v36, %v436_v46  ;;  %v4057_v50 = vpop.f32.mrb[10].mxu1 }
 0x205   :  { %4335 = vrcp.f32 %v503_v44  ;;  %v504_v51 = vadd.f32 1.0, %v4324_v47  ;;  %v3220_v52 = vmul.f32 -1.442695, %v445_v45  ;;  %v448_v53 = vadd.f32 %v4057_v50, %v3576_v38  ;;  %v439_v54 = vpop.f32.mrb[11].mxu1 }
 0x206   :  { %4337 = vrcp.f32 %v506_v48  ;;  %v3218_v56 = vmul.f32 -1.442695, %v437_v49  ;;  %v440_v57 = vadd.f32 %v3572_v42, %v439_v54 }
 0x207   :  { %4339 = vrcp.f32 %v504_v51  ;;  %v3221_v59 = vmul.f32 -1.442695, %v448_v53 }
 0x208   :  { %4341 = vpow2.f32 %v3220_v52  ;;  %v3219_v60 = vmul.f32 -1.442695, %v440_v57 }
 0x209   :  { %v4326_v62 = vpop.eup %4325  ;;  %4343 = vpow2.f32 %v3218_v56 }
 0x20a   :  { %v4328_v0 = vpop.eup %4327  ;;  %v509_v5 = vadd.f32 1.0, %v4326_v62  ;;  %4345 = vpow2.f32 %v3221_v59  ;;  %v4060_v6 = vpop.f32.mrb[12].mxu1 }
 0x20b   :  { %v4330_v14 = vpop.eup %4329  ;;  %v507_v17 = vadd.f32 1.0, %v4328_v0  ;;  %4347 = vpow2.f32 %v3219_v60  ;;  %v452_v18 = vpop.f32.mrb[13].mxu1  ;;  %v461_v23 = vadd.f32 %v4060_v6, %v3583_v61 }
 0x20c   :  { %v4332_v20 = vpop.eup %4331  ;;  %4349 = vrcp.f32 %v509_v5  ;;  %v510_v22 = vadd.f32 1.0, %v4330_v14  ;;  %v4061_v24 = vpop.f32.mrb[14].mxu1  ;;  %v453_v26 = vadd.f32 %v3579_v63, %v452_v18 }
 0x20d   :  { %4351 = vrcp.f32 %v507_v17  ;;  %v508_v25 = vadd.f32 1.0, %v4332_v20  ;;  %v455_v27 = vpop.f32.mrb[15].mxu1  ;;  %v464_v29 = vadd.f32 %v4061_v24, %v3584_v9  ;;  %v3511_v20 = vsel %vm2434_vm3, 1.0, %v6200_v33 }
 0x20e   :  { %v4334_v28 = vpop.eup %4333  ;;  %4353 = vrcp.f32 %v510_v22  ;;  %v456_v32 = vadd.f32 %v3580_v19, %v455_v27  ;;  %v2520_v24 = vrot.slane %v3511_v20, %v5094_v30 }
 0x20f   :  { %v4336_v31 = vpop.eup %4335  ;;  %4355 = vrcp.f32 %v508_v25 }
 0x210   :  { %v4338_v34 = vpop.eup %4337  ;;  %4357 = vtanh.f32 %v461_v23 }
 0x211   :  { %v4340_v35 = vpop.eup %4339  ;;  %4359 = vtanh.f32 %v453_v26 }
 0x212   :  { %v4342_v36 = vpop.eup %4341  ;;  %4361 = vtanh.f32 %v464_v29 }
 0x213   :  { %v4344_v37 = vpop.eup %4343  ;;  %4363 = vtanh.f32 %v456_v32  ;;  %v513_v42 = vadd.f32 1.0, %v4342_v36 }
 0x214   :  { %v4346_v38 = vpop.eup %4345  ;;  %v511_v44 = vadd.f32 1.0, %v4344_v37 }
 0x215   :  { %v4348_v39 = vpop.eup %4347  ;;  %v514_v47 = vadd.f32 1.0, %v4346_v38  ;;  %4365 = vrcp.f32 %v513_v42  ;;  %v3858_v42 = vld [vmem:[%s6194_s0 + $0x90] sm:$0xff]  }
 0x216   :  { %v4350_v40 = vpop.eup %4349  ;;  %v512_v50 = vadd.f32 1.0, %v4348_v39  ;;  %4367 = vrcp.f32 %v511_v44 }
 0x217   :  { %v4352_v41 = vpop.eup %4351  ;;  %v545_v46 = vmul.f32 %v4350_v40, %v5076_v8  ;;  %4369 = vrcp.f32 %v514_v47 }
 0x218   :  { %v4354_v43 = vpop.eup %4353  ;;  %v543_v49 = vmul.f32 %v4352_v41, %v5078_v13  ;;  %4371 = vrcp.f32 %v512_v50 }
 0x219   :  { %v4356_v45 = vpop.eup %4355  ;;  %v546_v52 = vmul.f32 %v4354_v43, %v5081_v15 }
 0x21a   :  { %v4358_v48 = vpop.eup %4357  ;;  %v544_v55 = vmul.f32 %v4356_v45, %v5083_v16 }
 0x21b   :  { %v4360_v51 = vpop.eup %4359  ;;  %v549_v53 = vmul.f32 %v4358_v48, %v4334_v28  ;;  %v3595_v48 = vunpack.c.l.bf16 %v3858_v42 }
 0x21c   :  { %v4362_v54 = vpop.eup %4361  ;;  %v547_v56 = vmul.f32 %v4360_v51, %v4336_v31  ;;  %v3596_v51 = vunpack.c.h.bf16 %v3858_v42 }
 0x21d   :  { %v4364_v57 = vpop.eup %4363  ;;  %v5150_v58 = vadd.f32 %v549_v53, %v545_v46  ;;  %v550_v8 = vmul.f32 %v4362_v54, %v4338_v34 }
 0x21e   :  { %v5152_v59 = vadd.f32 %v547_v56, %v543_v49  ;;  %v548_v13 = vmul.f32 %v4364_v57, %v4340_v35  ;;  %v3861_v56 = vld [vmem:[%s6194_s0 + $0xa8] sm:$0xff]  }
 0x21f   :  { %4373 = vtanh.f32 %v5150_v58  ;;  %v5155_v60 = vadd.f32 %v550_v8, %v546_v52  ;;  %v4366_v16 = vpop.eup %4365 }
 0x220   :  { %4375 = vtanh.f32 %v5152_v59  ;;  %v5158_v15 = vadd.f32 %v548_v13, %v544_v55  ;;  %v4368_v61 = vpop.eup %4367 }
 0x221   :  { %4377 = vtanh.f32 %v5155_v60  ;;  %v4370_v62 = vpop.eup %4369 }
 0x222   :  { %4379 = vtanh.f32 %v5158_v15  ;;  %v4372_v63 = vpop.eup %4371 }
 0x229   :  { %v4374_v0 = vpop.eup %4373 }
 0x22a   :  { %v4376_v5 = vpop.eup %4375  ;;  %v561_v6 = vmul.f32 %v4374_v0, %v4366_v16  ;;  %v3860_v16 = vld [vmem:[%s6194_s0 + $0xa0] sm:$0xff]   ;;  %v3607_v0 = vunpack.c.l.bf16 %v3861_v56 }
 0x22b   :  { %v4378_v9 = vpop.eup %4377  ;;  %v559_v14 = vmul.f32 %v4376_v5, %v4368_v61  ;;  %v3604_v20 = vunpack.c.h.bf16 %v3860_v16 }
 0x22c   :  { %v4380_v17 = vpop.eup %4379  ;;  %v562_v18 = vmul.f32 %v4378_v9, %v4370_v62  ;;  %566 = vst.msk [vmem:[#allocation2 + $0x30] sm:$0xff] %vm330_vm1, %v561_v6 }
 0x22d   :  { %v560_v19 = vmul.f32 %v4380_v17, %v4372_v63  ;;  %564 = vst.msk [vmem:[#allocation2 + $0x20] sm:$0xff] %vm330_vm1, %v559_v14 }
 0x22e   :  { %567 = vst.msk [vmem:[#allocation2 + $0x38] sm:$0xff] %vm330_vm1, %v562_v18  ;;  %v569_v22 = vpack.c.bf16 %v562_v18, %v561_v6  ;;  %v3603_v6 = vunpack.c.l.bf16 %v3860_v16 }
 0x22f   :  { %565 = vst.msk [vmem:[#allocation2 + $0x28] sm:$0xff] %vm330_vm1, %v560_v19  ;;  %v568_v23 = vpack.c.bf16 %v560_v19, %v559_v14  ;;  %v3608_v14 = vunpack.c.h.bf16 %v3861_v56 }
 0x231   :  { %4062 = vmatprep.subr.bf16.mxu0 %v568_v23 }
 0x232   :  { %4063 = vmatpush3.bf16.msra.mxu0 %v568_v23 }
 0x233   :  { %4064 = vmatprep.subr.bf16.mxu0 %v569_v22  ;;  %v2469_v25 = vld [vmem:[#allocation2 + $0x30] sm:$0xff] }
 0x234   :  { %v2467_v26 = vld [vmem:[#allocation2 + $0x20] sm:$0xff]  ;;  %v2569_v27 = vmul.f32 %v2520_v24, %v2469_v25 }
 0x235   :  { %v2567_v28 = vmul.f32 %v2520_v24, %v2467_v26  ;;  %v2470_v29 = vld [vmem:[#allocation2 + $0x38] sm:$0xff] }
 0x236   :  { %v2468_v31 = vld [vmem:[#allocation2 + $0x28] sm:$0xff]  ;;  %v2570_v32 = vmul.f32 %v2520_v24, %v2470_v29  ;;  %2609 = vst.msk [vmem:[#allocation2 + $0x30] sm:$0xff] %vm330_vm1, %v2569_v27  ;;  %4065 = vmatpush3.bf16.msra.mxu0 %v569_v22 }
 0x237   :  { %v2568_v34 = vmul.f32 %v2520_v24, %v2468_v31  ;;  %2607 = vst.msk [vmem:[#allocation2 + $0x20] sm:$0xff] %vm330_vm1, %v2567_v28 }
 0x238   :  { %2610 = vst.msk [vmem:[#allocation2 + $0x38] sm:$0xff] %vm330_vm1, %v2570_v32 }
 0x239   :  { %2608 = vst.msk [vmem:[#allocation2 + $0x28] sm:$0xff] %vm330_vm1, %v2568_v34  ;;  %4067 = vmatmul.mubr.msk.bf16.vlgmr.msra.gmra.mrb[16].mxu0 %vm112_vm0, %v4988_v2  ;;  %v3857_v2 = vld [vmem:[%s6194_s0 + $0x88] sm:$0xff]  }
 0x23a   :  { %4070 = vmatprep.mubr.msk.bf16.mxu0 %vm112_vm0, %v4995_v3  ;;  %v3856_v3 = vld [vmem:[%s6194_s0 + $0x80] sm:$0xff]  }
 0x23b   :  { %v3588_v36 = vunpack.c.h.bf16 %v3856_v3 }
 0x241   :  { %4071 = vmatmul.mubr.msk.bf16.gmra.mrb[20].mxu0 %vm112_vm0, %v5006_v4  ;;  %v3591_v4 = vunpack.c.l.bf16 %v3857_v2 }
 0x242   :  { %4074 = vmatprep.mubr.msk.bf16.mxu0 %vm112_vm0, %v5017_v7  ;;  %v3587_v7 = vunpack.c.l.bf16 %v3856_v3  ;;  %v3863_v3 = vld [vmem:[%s6194_s0 + $0xb8] sm:$0xff]  }
 0x249   :  { %4075 = vmatmul.mubr.msk.bf16.gmra.mrb[24].mxu0 %vm112_vm0, %v5032_v10  ;;  %v3592_v10 = vunpack.c.h.bf16 %v3857_v2 }
 0x24a   :  { %4078 = vmatprep.mubr.msk.bf16.mxu0 %vm112_vm0, %v5037_v11 }
 0x251   :  { %4079 = vmatmul.mubr.msk.bf16.gmra.mrb[28].mxu0 %vm112_vm0, %v5046_v12 }
 0x252   :  { %4106 = vmatprep.mubr.msk.bf16.mxu0 %vm112_vm0, %v4983_v1  ;;  %v3859_v1 = vld [vmem:[%s6194_s0 + $0x98] sm:$0xff]  }
 0x253   :  { %v3599_v46 = vunpack.c.l.bf16 %v3859_v1  ;;  %v3600_v49 = vunpack.c.h.bf16 %v3859_v1 }
 0x30c   :  { %v4068_v35 = vpop.f32.mrb[16].mxu0 }
 0x30d   :  { %v646_v11 = vadd.f32 %v4068_v35, %v3591_v4  ;;  %v637_v37 = vpop.f32.mrb[17].mxu0 }
 0x30e   :  { %v638_v38 = vadd.f32 %v3587_v7, %v637_v37  ;;  %v4069_v12 = vpop.f32.mrb[18].mxu0 }
 0x30f   :  { %v3248_v39 = vmul.f32 -1.442695, %v646_v11  ;;  %v649_v40 = vadd.f32 %v4069_v12, %v3592_v10  ;;  %v640_v41 = vpop.f32.mrb[19].mxu0  ;;  %v3862_v10 = vld [vmem:[%s6194_s0 + $0xb0] sm:$0xff]   ;;  %v3615_v11 = vunpack.c.l.bf16 %v3863_v3 }
 0x310   :  { %v3246_v43 = vmul.f32 -1.442695, %v638_v38  ;;  %v641_v44 = vadd.f32 %v3588_v36, %v640_v41  ;;  %v3611_v38 = vunpack.c.l.bf16 %v3862_v10 }
 0x311   :  { %4381 = vpow2.f32 %v3248_v39  ;;  %v3249_v45 = vmul.f32 -1.442695, %v649_v40  ;;  %v3616_v40 = vunpack.c.h.bf16 %v3863_v3 }
 0x312   :  { %4383 = vpow2.f32 %v3246_v43  ;;  %v3247_v47 = vmul.f32 -1.442695, %v641_v44  ;;  %v3612_v44 = vunpack.c.h.bf16 %v3862_v10 }
 0x313   :  { %4385 = vpow2.f32 %v3249_v45 }
 0x314   :  { %4387 = vpow2.f32 %v3247_v47  ;;  %v4072_v50 = vpop.f32.mrb[20].mxu0 }
 0x315   :  { %v662_v52 = vadd.f32 %v4072_v50, %v3599_v46  ;;  %v653_v53 = vpop.f32.mrb[21].mxu0 }
 0x316   :  { %v654_v54 = vadd.f32 %v3595_v48, %v653_v53  ;;  %v4073_v55 = vpop.f32.mrb[22].mxu0 }
 0x317   :  { %v3252_v57 = vmul.f32 -1.442695, %v662_v52  ;;  %v665_v8 = vadd.f32 %v4073_v55, %v3600_v49  ;;  %v656_v13 = vpop.f32.mrb[23].mxu0 }
 0x318   :  { %v3250_v61 = vmul.f32 -1.442695, %v654_v54  ;;  %v657_v62 = vadd.f32 %v3596_v51, %v656_v13 }
 0x319   :  { %4389 = vpow2.f32 %v3252_v57  ;;  %v3253_v63 = vmul.f32 -1.442695, %v665_v8 }
 0x31a   :  { %4391 = vpow2.f32 %v3250_v61  ;;  %v3251_v5 = vmul.f32 -1.442695, %v657_v62 }
 0x31b   :  { %v4382_v9 = vpop.eup %4381  ;;  %4393 = vpow2.f32 %v3253_v63 }
 0x31c   :  { %v4384_v17 = vpop.eup %4383  ;;  %v738_v18 = vadd.f32 1.0, %v4382_v9  ;;  %4395 = vpow2.f32 %v3251_v5  ;;  %v4076_v19 = vpop.f32.mrb[24].mxu0 }
 0x31d   :  { %v4386_v22 = vpop.eup %4385  ;;  %v736_v23 = vadd.f32 1.0, %v4384_v17  ;;  %v678_v24 = vadd.f32 %v4076_v19, %v3607_v0  ;;  %v669_v25 = vpop.f32.mrb[25].mxu0 }
 0x31e   :  { %v4388_v26 = vpop.eup %4387  ;;  %4397 = vrcp.f32 %v738_v18  ;;  %v739_v27 = vadd.f32 1.0, %v4386_v22  ;;  %v670_v28 = vadd.f32 %v3603_v6, %v669_v25  ;;  %v4077_v29 = vpop.f32.mrb[26].mxu0 }
 0x31f   :  { %4399 = vrcp.f32 %v736_v23  ;;  %v737_v31 = vadd.f32 1.0, %v4388_v26  ;;  %v3256_v32 = vmul.f32 -1.442695, %v678_v24  ;;  %v681_v34 = vadd.f32 %v4077_v29, %v3608_v14  ;;  %v672_v2 = vpop.f32.mrb[27].mxu0 }
 0x320   :  { %4401 = vrcp.f32 %v739_v27  ;;  %v3254_v4 = vmul.f32 -1.442695, %v670_v28  ;;  %v673_v7 = vadd.f32 %v3604_v20, %v672_v2 }
 0x321   :  { %4403 = vrcp.f32 %v737_v31  ;;  %v3257_v35 = vmul.f32 -1.442695, %v681_v34 }
 0x322   :  { %4405 = vpow2.f32 %v3256_v32  ;;  %v3255_v36 = vmul.f32 -1.442695, %v673_v7 }
 0x323   :  { %v4390_v37 = vpop.eup %4389  ;;  %4407 = vpow2.f32 %v3254_v4 }
 0x324   :  { %v4392_v12 = vpop.eup %4391  ;;  %v742_v1 = vadd.f32 1.0, %v4390_v37  ;;  %4409 = vpow2.f32 %v3257_v35  ;;  %v4080_v39 = vpop.f32.mrb[28].mxu0 }
 0x325   :  { %v4394_v41 = vpop.eup %4393  ;;  %v740_v42 = vadd.f32 1.0, %v4392_v12  ;;  %4411 = vpow2.f32 %v3255_v36  ;;  %v685_v43 = vpop.f32.mrb[29].mxu0  ;;  %v694_v47 = vadd.f32 %v4080_v39, %v3615_v11  ;;  %v3512_v12 = vsel %vm2435_vm4, 1.0, %v6200_v33 }
 0x326   :  { %v4396_v45 = vpop.eup %4395  ;;  %4413 = vrcp.f32 %v742_v1  ;;  %v743_v46 = vadd.f32 1.0, %v4394_v41  ;;  %v4081_v48 = vpop.f32.mrb[30].mxu0  ;;  %v686_v50 = vadd.f32 %v3611_v38, %v685_v43  ;;  %v2524_v21 = vrot.slane %v3512_v12, %v5094_v30 }
 0x327   :  { %4415 = vrcp.f32 %v740_v42  ;;  %v741_v49 = vadd.f32 1.0, %v4396_v45  ;;  %v688_v51 = vpop.f32.mrb[31].mxu0  ;;  %v697_v53 = vadd.f32 %v4081_v48, %v3616_v40  ;;  %v5243_v48 = vld [vmem:[%s6192_s2 + $0x8] sm:$0xff]  }
 0x328   :  { %v4398_v52 = vpop.eup %4397  ;;  %4417 = vrcp.f32 %v743_v46  ;;  %v689_v55 = vadd.f32 %v3612_v44, %v688_v51  ;;  %v5264_v51 = vld [vmem:[%s6192_s2 + $0x20] sm:$0xff]  }
 0x329   :  { %v4400_v54 = vpop.eup %4399  ;;  %4419 = vrcp.f32 %v741_v49  ;;  %v5250_v49 = vld [vmem:[%s6192_s2 + $0x10] sm:$0xff]  }
 0x32a   :  { %v4402_v56 = vpop.eup %4401  ;;  %4421 = vtanh.f32 %v694_v47 }
 0x32b   :  { %v4404_v57 = vpop.eup %4403  ;;  %4423 = vtanh.f32 %v686_v50  ;;  %v5257_v50 = vld [vmem:[%s6192_s2 + $0x18] sm:$0xff]  }
 0x32c   :  { %v4406_v8 = vpop.eup %4405  ;;  %4425 = vtanh.f32 %v697_v53  ;;  %v5278_v53 = vld [vmem:[%s6192_s2 + $0x30] sm:$0xff]  }
 0x32d   :  { %v4408_v13 = vpop.eup %4407  ;;  %4427 = vtanh.f32 %v689_v55  ;;  %v746_v0 = vadd.f32 1.0, %v4406_v8  ;;  %v5292_v55 = vld [vmem:[%s6192_s2] sm:$0xff]  }
 0x32e   :  { %v4410_v16 = vpop.eup %4409  ;;  %v744_v6 = vadd.f32 1.0, %v4408_v13 }
 0x32f   :  { %v4412_v61 = vpop.eup %4411  ;;  %v747_v17 = vadd.f32 1.0, %v4410_v16  ;;  %4429 = vrcp.f32 %v746_v0 }
 0x330   :  { %v4414_v62 = vpop.eup %4413  ;;  %v745_v20 = vadd.f32 1.0, %v4412_v61  ;;  %4431 = vrcp.f32 %v744_v6 }
 0x331   :  { %v4416_v63 = vpop.eup %4415  ;;  %v778_v14 = vmul.f32 %v4414_v62, %v5150_v58  ;;  %4433 = vrcp.f32 %v747_v17 }
 0x332   :  { %v4418_v5 = vpop.eup %4417  ;;  %v776_v19 = vmul.f32 %v4416_v63, %v5152_v59  ;;  %4435 = vrcp.f32 %v745_v20 }
 0x333   :  { %v4420_v9 = vpop.eup %4419  ;;  %v779_v23 = vmul.f32 %v4418_v5, %v5155_v60 }
 0x334   :  { %v4422_v18 = vpop.eup %4421  ;;  %v777_v26 = vmul.f32 %v4420_v9, %v5158_v15  ;;  %v3867_v9 = vld [vmem:[%s6194_s0 + $0xd8] sm:$0xff]  }
 0x335   :  { %v4424_v22 = vpop.eup %4423  ;;  %v782_v24 = vmul.f32 %v4422_v18, %v4398_v52  ;;  %v5271_v52 = vld [vmem:[%s6192_s2 + $0x28] sm:$0xff]  }
 0x336   :  { %v4426_v25 = vpop.eup %4425  ;;  %v780_v27 = vmul.f32 %v4424_v22, %v4400_v54  ;;  %v5285_v54 = vld [vmem:[%s6192_s2 + $0x38] sm:$0xff]  }
 0x337   :  { %v4428_v28 = vpop.eup %4427  ;;  %v5217_v29 = vadd.f32 %v782_v24, %v778_v14  ;;  %v783_v58 = vmul.f32 %v4426_v25, %v4402_v56  ;;  %v3865_v56 = vld [vmem:[%s6194_s0 + $0xc8] sm:$0xff]   ;;  %v3631_v24 = vunpack.c.l.bf16 %v3867_v9 }
 0x338   :  { %v5219_v31 = vadd.f32 %v780_v27, %v776_v19  ;;  %v781_v59 = vmul.f32 %v4428_v28, %v4404_v57  ;;  %v3864_v57 = vld [vmem:[%s6194_s0 + $0xc0] sm:$0xff]   ;;  %v3623_v8 = vunpack.c.l.bf16 %v3865_v56  ;;  %v3624_v16 = vunpack.c.h.bf16 %v3865_v56  ;;  %v3866_v19 = vld [vmem:[%s6194_s0 + $0xd0] sm:$0xff]  }
 0x339   :  { %4437 = vtanh.f32 %v5217_v29  ;;  %v5222_v32 = vadd.f32 %v783_v58, %v779_v23  ;;  %v4430_v15 = vpop.eup %4429  ;;  %v3619_v13 = vunpack.c.l.bf16 %v3864_v57  ;;  %v3620_v62 = vunpack.c.h.bf16 %v3864_v57 }
 0x33a   :  { %4439 = vtanh.f32 %v5219_v31  ;;  %v5225_v60 = vadd.f32 %v781_v59, %v777_v26  ;;  %v4432_v34 = vpop.eup %4431  ;;  %v3627_v26 = vunpack.c.l.bf16 %v3866_v19  ;;  %v3632_v27 = vunpack.c.h.bf16 %v3867_v9  ;;  %v3870_v9 = vld [vmem:[%s6194_s0 + $0xf0] sm:$0xff]  }
 0x33b   :  { %4441 = vtanh.f32 %v5222_v32  ;;  %v4434_v2 = vpop.eup %4433  ;;  %v3628_v58 = vunpack.c.h.bf16 %v3866_v19 }
 0x33c   :  { %4443 = vtanh.f32 %v5225_v60  ;;  %v4436_v3 = vpop.eup %4435 }
 0x343   :  { %v4438_v4 = vpop.eup %4437 }
 0x344   :  { %v4440_v7 = vpop.eup %4439  ;;  %v794_v10 = vmul.f32 %v4438_v4, %v4430_v15 }
 0x345   :  { %v4442_v35 = vpop.eup %4441  ;;  %v792_v36 = vmul.f32 %v4440_v7, %v4432_v34 }
 0x346   :  { %v4444_v11 = vpop.eup %4443  ;;  %v795_v37 = vmul.f32 %v4442_v35, %v4434_v2  ;;  %799 = vst.msk [vmem:[#allocation2 + $0x50] sm:$0xff] %vm330_vm1, %v794_v10  ;;  %v3868_v35 = vld [vmem:[%s6194_s0 + $0xe0] sm:$0xff]  }
 0x347   :  { %v793_v38 = vmul.f32 %v4444_v11, %v4436_v3  ;;  %797 = vst.msk [vmem:[#allocation2 + $0x40] sm:$0xff] %vm330_vm1, %v792_v36  ;;  %v3869_v3 = vld [vmem:[%s6194_s0 + $0xe8] sm:$0xff]  }
 0x348   :  { %800 = vst.msk [vmem:[#allocation2 + $0x58] sm:$0xff] %vm330_vm1, %v795_v37  ;;  %v802_v1 = vpack.c.bf16 %v795_v37, %v794_v10 }
 0x349   :  { %798 = vst.msk [vmem:[#allocation2 + $0x48] sm:$0xff] %vm330_vm1, %v793_v38  ;;  %v801_v39 = vpack.c.bf16 %v793_v38, %v792_v36  ;;  %v3639_v38 = vunpack.c.l.bf16 %v3869_v3 }
 0x34b   :  { %4082 = vmatprep.subr.bf16.mxu1 %v801_v39 }
 0x34c   :  { %4083 = vmatpush3.bf16.msra.mxu1 %v801_v39 }
 0x34d   :  { %4084 = vmatprep.subr.bf16.mxu1 %v802_v1  ;;  %v2473_v40 = vld [vmem:[#allocation2 + $0x50] sm:$0xff] }
 0x34e   :  { %v2471_v41 = vld [vmem:[#allocation2 + $0x40] sm:$0xff]  ;;  %v2573_v42 = vmul.f32 %v2524_v21, %v2473_v40 }
 0x34f   :  { %v2571_v43 = vmul.f32 %v2524_v21, %v2471_v41  ;;  %v2474_v44 = vld [vmem:[#allocation2 + $0x58] sm:$0xff] }
 0x350   :  { %v2472_v45 = vld [vmem:[#allocation2 + $0x48] sm:$0xff]  ;;  %v2574_v46 = vmul.f32 %v2524_v21, %v2474_v44  ;;  %2613 = vst.msk [vmem:[#allocation2 + $0x50] sm:$0xff] %vm330_vm1, %v2573_v42  ;;  %4085 = vmatpush3.bf16.msra.mxu1 %v802_v1  ;;  %v3635_v1 = vunpack.c.l.bf16 %v3868_v35 }
 0x351   :  { %v2572_v47 = vmul.f32 %v2524_v21, %v2472_v45  ;;  %2611 = vst.msk [vmem:[#allocation2 + $0x40] sm:$0xff] %vm330_vm1, %v2571_v43  ;;  %v3640_v21 = vunpack.c.h.bf16 %v3869_v3  ;;  %v3636_v43 = vunpack.c.h.bf16 %v3868_v35 }
 0x352   :  { %2614 = vst.msk [vmem:[#allocation2 + $0x58] sm:$0xff] %vm330_vm1, %v2574_v46 }
 0x353   :  { %2612 = vst.msk [vmem:[#allocation2 + $0x48] sm:$0xff] %vm330_vm1, %v2572_v47  ;;  %4087 = vmatmul.mubr.msk.bf16.vlgmr.msra.gmra.mrb[16].mxu1 %vm112_vm0, %v5243_v48 }
 0x354   :  { %4090 = vmatprep.mubr.msk.bf16.mxu1 %vm112_vm0, %v5250_v49 }
 0x35b   :  { %4091 = vmatmul.mubr.msk.bf16.gmra.mrb[20].mxu1 %vm112_vm0, %v5257_v50 }
 0x35c   :  { %4094 = vmatprep.mubr.msk.bf16.mxu1 %vm112_vm0, %v5264_v51 }
 0x363   :  { %4095 = vmatmul.mubr.msk.bf16.gmra.mrb[24].mxu1 %vm112_vm0, %v5271_v52 }
 0x364   :  { %4098 = vmatprep.mubr.msk.bf16.mxu1 %vm112_vm0, %v5278_v53 }
 0x36b   :  { %4099 = vmatmul.mubr.msk.bf16.gmra.mrb[28].mxu1 %vm112_vm0, %v5285_v54 }
 0x36c   :  { %4126 = vmatprep.mubr.msk.bf16.mxu1 %vm112_vm0, %v5292_v55 }
 0x426   :  { %v4088_v61 = vpop.f32.mrb[16].mxu1 }
 0x427   :  { %v879_v63 = vadd.f32 %v4088_v61, %v3623_v8  ;;  %v870_v0 = vpop.f32.mrb[17].mxu1 }
 0x428   :  { %v871_v5 = vadd.f32 %v3619_v13, %v870_v0  ;;  %v4089_v6 = vpop.f32.mrb[18].mxu1  ;;  %v3871_v0 = vld [vmem:[%s6194_s0 + $0xf8] sm:$0xff]  }
 0x429   :  { %v3284_v14 = vmul.f32 -1.442695, %v879_v63  ;;  %v882_v17 = vadd.f32 %v4089_v6, %v3624_v16  ;;  %v873_v18 = vpop.f32.mrb[19].mxu1 }
 0x42a   :  { %v3282_v20 = vmul.f32 -1.442695, %v871_v5  ;;  %v874_v22 = vadd.f32 %v3620_v62, %v873_v18  ;;  %v3647_v18 = vunpack.c.l.bf16 %v3871_v0 }
 0x42b   :  { %4445 = vpow2.f32 %v3284_v14  ;;  %v3285_v23 = vmul.f32 -1.442695, %v882_v17 }
 0x42c   :  { %4447 = vpow2.f32 %v3282_v20  ;;  %v3283_v25 = vmul.f32 -1.442695, %v874_v22  ;;  %v3643_v20 = vunpack.c.l.bf16 %v3870_v9 }
 0x42d   :  { %4449 = vpow2.f32 %v3285_v23 }
 0x42e   :  { %4451 = vpow2.f32 %v3283_v25  ;;  %v4092_v28 = vpop.f32.mrb[20].mxu1  ;;  %v3648_v25 = vunpack.c.h.bf16 %v3871_v0 }
 0x42f   :  { %v895_v59 = vadd.f32 %v4092_v28, %v3631_v24  ;;  %v886_v15 = vpop.f32.mrb[21].mxu1 }
 0x430   :  { %v887_v34 = vadd.f32 %v3627_v26, %v886_v15  ;;  %v4093_v2 = vpop.f32.mrb[22].mxu1 }
 0x431   :  { %v3288_v4 = vmul.f32 -1.442695, %v895_v59  ;;  %v898_v7 = vadd.f32 %v4093_v2, %v3632_v27  ;;  %v889_v10 = vpop.f32.mrb[23].mxu1 }
 0x432   :  { %v3286_v36 = vmul.f32 -1.442695, %v887_v34  ;;  %v890_v11 = vadd.f32 %v3628_v58, %v889_v10  ;;  %v3644_v58 = vunpack.c.h.bf16 %v3870_v9 }
 0x433   :  { %4453 = vpow2.f32 %v3288_v4  ;;  %v3289_v37 = vmul.f32 -1.442695, %v898_v7 }
 0x434   :  { %4455 = vpow2.f32 %v3286_v36  ;;  %v3287_v12 = vmul.f32 -1.442695, %v890_v11 }
 0x435   :  { %v4446_v39 = vpop.eup %4445  ;;  %4457 = vpow2.f32 %v3289_v37 }
 0x436   :  { %v4448_v40 = vpop.eup %4447  ;;  %v971_v41 = vadd.f32 1.0, %v4446_v39  ;;  %4459 = vpow2.f32 %v3287_v12  ;;  %v4096_v42 = vpop.f32.mrb[24].mxu1 }
 0x437   :  { %v4450_v44 = vpop.eup %4449  ;;  %v969_v45 = vadd.f32 1.0, %v4448_v40  ;;  %v911_v46 = vadd.f32 %v4096_v42, %v3639_v38  ;;  %v902_v47 = vpop.f32.mrb[25].mxu1 }
 0x438   :  { %v4452_v56 = vpop.eup %4451  ;;  %4461 = vrcp.f32 %v971_v41  ;;  %v972_v57 = vadd.f32 1.0, %v4450_v44  ;;  %v903_v8 = vadd.f32 %v3635_v1, %v902_v47  ;;  %v4097_v13 = vpop.f32.mrb[26].mxu1 }
 0x439   :  { %4463 = vrcp.f32 %v969_v45  ;;  %v970_v16 = vadd.f32 1.0, %v4452_v56  ;;  %v3292_v61 = vmul.f32 -1.442695, %v911_v46  ;;  %v914_v62 = vadd.f32 %v4097_v13, %v3640_v21  ;;  %v905_v63 = vpop.f32.mrb[27].mxu1 }
 0x43a   :  { %4465 = vrcp.f32 %v972_v57  ;;  %v3290_v5 = vmul.f32 -1.442695, %v903_v8  ;;  %v906_v6 = vadd.f32 %v3636_v43, %v905_v63 }
 0x43b   :  { %4467 = vrcp.f32 %v970_v16  ;;  %v3293_v14 = vmul.f32 -1.442695, %v914_v62 }
 0x43c   :  { %4469 = vpow2.f32 %v3292_v61  ;;  %v3291_v17 = vmul.f32 -1.442695, %v906_v6 }
 0x43d   :  { %v4454_v19 = vpop.eup %4453  ;;  %4471 = vpow2.f32 %v3290_v5 }
 0x43e   :  { %v4456_v22 = vpop.eup %4455  ;;  %v975_v23 = vadd.f32 1.0, %v4454_v19  ;;  %4473 = vpow2.f32 %v3293_v14  ;;  %v4100_v24 = vpop.f32.mrb[28].mxu1 }
 0x43f   :  { %v4458_v26 = vpop.eup %4457  ;;  %v973_v27 = vadd.f32 1.0, %v4456_v22  ;;  %4475 = vpow2.f32 %v3291_v17  ;;  %v918_v28 = vpop.f32.mrb[29].mxu1  ;;  %v927_v34 = vadd.f32 %v4100_v24, %v3647_v18 }
 0x440   :  { %v4460_v59 = vpop.eup %4459  ;;  %4477 = vrcp.f32 %v975_v23  ;;  %v976_v15 = vadd.f32 1.0, %v4458_v26  ;;  %v4101_v2 = vpop.f32.mrb[30].mxu1  ;;  %v919_v4 = vadd.f32 %v3643_v20, %v918_v28  ;;  %v5339_v23 = vld [vmem:[%s6195_s1] sm:$0x1] }
 0x441   :  { %4479 = vrcp.f32 %v973_v27  ;;  %v974_v3 = vadd.f32 1.0, %v4460_v59  ;;  %v921_v7 = vpop.f32.mrb[31].mxu1  ;;  %v930_v35 = vadd.f32 %v4101_v2, %v3648_v25  ;;  %vm2436_vm5 = vcmp.gt.s32.totalorder %v5339_v23, 3 }
 0x442   :  { %v4462_v10 = vpop.eup %4461  ;;  %4481 = vrcp.f32 %v976_v15  ;;  %v922_v11 = vadd.f32 %v3644_v58, %v921_v7  ;;  %v3513_v59 = vsel %vm2436_vm5, 1.0, %v6200_v33  ;;  %vm2437_vm6 = vcmp.gt.s32.totalorder %v5339_v23, 4 }
 0x443   :  { %v4464_v36 = vpop.eup %4463  ;;  %4483 = vrcp.f32 %v974_v3  ;;  %v2528_v2 = vrot.slane %v3513_v59, %v5094_v30  ;;  %vm2438_vm7 = vcmp.gt.s32.totalorder %v5339_v23, 5 }
 0x444   :  { %v4466_v37 = vpop.eup %4465  ;;  %4485 = vtanh.f32 %v927_v34 }
 0x445   :  { %v4468_v38 = vpop.eup %4467  ;;  %4487 = vtanh.f32 %v919_v4 }
 0x446   :  { %v4470_v12 = vpop.eup %4469  ;;  %4489 = vtanh.f32 %v930_v35 }
 0x447   :  { %v4472_v1 = vpop.eup %4471  ;;  %4491 = vtanh.f32 %v922_v11  ;;  %v979_v42 = vadd.f32 1.0, %v4470_v12  ;;  %v3872_v12 = vld [vmem:[%s6194_s0 + $0x100] sm:$0xff]  }
 0x448   :  { %v4474_v39 = vpop.eup %4473  ;;  %v977_v44 = vadd.f32 1.0, %v4472_v1 }
 0x449   :  { %v4476_v21 = vpop.eup %4475  ;;  %v980_v47 = vadd.f32 1.0, %v4474_v39  ;;  %4493 = vrcp.f32 %v979_v42  ;;  %v3651_v39 = vunpack.c.l.bf16 %v3872_v12 }
 0x44a   :  { %v4478_v40 = vpop.eup %4477  ;;  %v978_v8 = vadd.f32 1.0, %v4476_v21  ;;  %4495 = vrcp.f32 %v977_v44 }
 0x44b   :  { %v4480_v41 = vpop.eup %4479  ;;  %v1011_v46 = vmul.f32 %v4478_v40, %v5217_v29  ;;  %4497 = vrcp.f32 %v980_v47 }
 0x44c   :  { %v4482_v43 = vpop.eup %4481  ;;  %v1009_v57 = vmul.f32 %v4480_v41, %v5219_v31  ;;  %4499 = vrcp.f32 %v978_v8  ;;  %v3652_v41 = vunpack.c.h.bf16 %v3872_v12  ;;  %v3874_v8 = vld [vmem:[%s6194_s0 + $0x110] sm:$0xff]  }
 0x44d   :  { %v4484_v45 = vpop.eup %4483  ;;  %v1012_v16 = vmul.f32 %v4482_v43, %v5222_v32 }
 0x44e   :  { %v4486_v56 = vpop.eup %4485  ;;  %v1010_v63 = vmul.f32 %v4484_v45, %v5225_v60 }
 0x44f   :  { %v4488_v13 = vpop.eup %4487  ;;  %v1015_v61 = vmul.f32 %v4486_v56, %v4462_v10 }
 0x450   :  { %v4490_v62 = vpop.eup %4489  ;;  %v1013_v0 = vmul.f32 %v4488_v13, %v4464_v36 }
 0x451   :  { %v4492_v5 = vpop.eup %4491  ;;  %v5324_v6 = vadd.f32 %v1015_v61, %v1011_v46  ;;  %v1016_v29 = vmul.f32 %v4490_v62, %v4466_v37  ;;  %v3875_v46 = vld [vmem:[%s6194_s0 + $0x118] sm:$0xff]  }
 0x452   :  { %v5326_v9 = vadd.f32 %v1013_v0, %v1009_v57  ;;  %v1014_v31 = vmul.f32 %v4492_v5, %v4468_v38  ;;  %v3873_v38 = vld [vmem:[%s6194_s0 + $0x108] sm:$0xff]   ;;  %v3663_v62 = vunpack.c.l.bf16 %v3875_v46  ;;  %v3659_v0 = vunpack.c.l.bf16 %v3874_v8 }
 0x453   :  { %4501 = vtanh.f32 %v5324_v6  ;;  %v5329_v14 = vadd.f32 %v1016_v29, %v1012_v16  ;;  %v4494_v60 = vpop.eup %4493  ;;  %v3655_v1 = vunpack.c.l.bf16 %v3873_v38  ;;  %v3656_v21 = vunpack.c.h.bf16 %v3873_v38 }
 0x454   :  { %4503 = vtanh.f32 %v5326_v9  ;;  %v5332_v32 = vadd.f32 %v1014_v31, %v1010_v63  ;;  %v4496_v17 = vpop.eup %4495  ;;  %v3664_v5 = vunpack.c.h.bf16 %v3875_v46  ;;  %v3660_v31 = vunpack.c.h.bf16 %v3874_v8 }
 0x455   :  { %4505 = vtanh.f32 %v5329_v14  ;;  %v4498_v18 = vpop.eup %4497 }
 0x456   :  { %4507 = vtanh.f32 %v5332_v32  ;;  %v4500_v19 = vpop.eup %4499 }
 0x45d   :  { %v4502_v20 = vpop.eup %4501 }
 0x45e   :  { %v4504_v22 = vpop.eup %4503  ;;  %v1027_v24 = vmul.f32 %v4502_v20, %v4494_v60  ;;  %v3877_v20 = vld [vmem:[%s6194_s0 + $0x128] sm:$0xff]  }
 0x45f   :  { %v4506_v25 = vpop.eup %4505  ;;  %v1025_v26 = vmul.f32 %v4504_v22, %v4496_v17  ;;  %v3671_v59 = vunpack.c.l.bf16 %v3877_v20 }
 0x460   :  { %v4508_v27 = vpop.eup %4507  ;;  %v1028_v28 = vmul.f32 %v4506_v25, %v4498_v18  ;;  %1032 = vst.msk [vmem:[#allocation2 + $0x70] sm:$0xff] %vm330_vm1, %v1027_v24 }
 0x461   :  { %v1026_v58 = vmul.f32 %v4508_v27, %v4500_v19  ;;  %1030 = vst.msk [vmem:[#allocation2 + $0x60] sm:$0xff] %vm330_vm1, %v1025_v26 }
 0x462   :  { %1033 = vst.msk [vmem:[#allocation2 + $0x78] sm:$0xff] %vm330_vm1, %v1028_v28  ;;  %v1035_v15 = vpack.c.bf16 %v1028_v28, %v1027_v24 }
 0x463   :  { %1031 = vst.msk [vmem:[#allocation2 + $0x68] sm:$0xff] %vm330_vm1, %v1026_v58  ;;  %v1034_v34 = vpack.c.bf16 %v1026_v58, %v1025_v26  ;;  %v3876_v26 = vld [vmem:[%s6194_s0 + $0x120] sm:$0xff]  }
 0x465   :  { %4102 = vmatprep.subr.bf16.mxu0 %v1034_v34 }
 0x466   :  { %4103 = vmatpush3.bf16.msra.mxu0 %v1034_v34  ;;  %v3667_v34 = vunpack.c.l.bf16 %v3876_v26 }
 0x467   :  { %4104 = vmatprep.subr.bf16.mxu0 %v1035_v15  ;;  %v2477_v3 = vld [vmem:[#allocation2 + $0x70] sm:$0xff] }
 0x468   :  { %v2475_v4 = vld [vmem:[#allocation2 + $0x60] sm:$0xff]  ;;  %v2577_v7 = vmul.f32 %v2528_v2, %v2477_v3  ;;  %v3672_v3 = vunpack.c.h.bf16 %v3877_v20 }
 0x469   :  { %v2575_v10 = vmul.f32 %v2528_v2, %v2475_v4  ;;  %v2478_v35 = vld [vmem:[#allocation2 + $0x78] sm:$0xff] }
 0x46a   :  { %v2476_v36 = vld [vmem:[#allocation2 + $0x68] sm:$0xff]  ;;  %v2578_v11 = vmul.f32 %v2528_v2, %v2478_v35  ;;  %2617 = vst.msk [vmem:[#allocation2 + $0x70] sm:$0xff] %vm330_vm1, %v2577_v7  ;;  %4105 = vmatpush3.bf16.msra.mxu0 %v1035_v15  ;;  %v3668_v35 = vunpack.c.h.bf16 %v3876_v26 }
 0x46b   :  { %v2576_v37 = vmul.f32 %v2528_v2, %v2476_v36  ;;  %2615 = vst.msk [vmem:[#allocation2 + $0x60] sm:$0xff] %vm330_vm1, %v2575_v10 }
 0x46c   :  { %2618 = vst.msk [vmem:[#allocation2 + $0x78] sm:$0xff] %vm330_vm1, %v2578_v11 }
 0x46d   :  { %2616 = vst.msk [vmem:[#allocation2 + $0x68] sm:$0xff] %vm330_vm1, %v2576_v37  ;;  %4107 = vmatmul.mubr.msk.bf16.vlgmr.msra.gmra.mrb[32].mxu0 %vm112_vm0, %v5243_v48 }
 0x46e   :  { %4110 = vmatprep.mubr.msk.bf16.mxu0 %vm112_vm0, %v5250_v49 }
 0x475   :  { %4111 = vmatmul.mubr.msk.bf16.gmra.mrb[36].mxu0 %vm112_vm0, %v5257_v50 }
 0x476   :  { %4114 = vmatprep.mubr.msk.bf16.mxu0 %vm112_vm0, %v5264_v51 }
 0x47d   :  { %4115 = vmatmul.mubr.msk.bf16.gmra.mrb[40].mxu0 %vm112_vm0, %v5271_v52 }
 0x47e   :  { %4118 = vmatprep.mubr.msk.bf16.mxu0 %vm112_vm0, %v5278_v53 }
 0x485   :  { %4119 = vmatmul.mubr.msk.bf16.gmra.mrb[44].mxu0 %vm112_vm0, %v5285_v54 }
 0x486   :  { %4146 = vmatprep.mubr.msk.bf16.mxu0 %vm112_vm0, %v5292_v55 }
 0x540   :  { %v4108_v40 = vpop.f32.mrb[32].mxu0 }
 0x541   :  { %v1112_v42 = vadd.f32 %v4108_v40, %v3655_v1  ;;  %v1103_v43 = vpop.f32.mrb[33].mxu0 }
 0x542   :  { %v1104_v44 = vadd.f32 %v3651_v39, %v1103_v43  ;;  %v4109_v45 = vpop.f32.mrb[34].mxu0 }
 0x543   :  { %v3320_v47 = vmul.f32 -1.442695, %v1112_v42  ;;  %v1115_v56 = vadd.f32 %v4109_v45, %v3656_v21  ;;  %v1106_v57 = vpop.f32.mrb[35].mxu0 }
 0x544   :  { %v3318_v13 = vmul.f32 -1.442695, %v1104_v44  ;;  %v1107_v16 = vadd.f32 %v3652_v41, %v1106_v57  ;;  %v3879_v44 = vld [vmem:[%s6194_s0 + $0x138] sm:$0xff]  }
 0x545   :  { %4509 = vpow2.f32 %v3320_v47  ;;  %v3321_v61 = vmul.f32 -1.442695, %v1115_v56  ;;  %v3878_v47 = vld [vmem:[%s6194_s0 + $0x130] sm:$0xff]   ;;  %v3679_v8 = vunpack.c.l.bf16 %v3879_v44 }
 0x546   :  { %4511 = vpow2.f32 %v3318_v13  ;;  %v3319_v63 = vmul.f32 -1.442695, %v1107_v16  ;;  %v3675_v16 = vunpack.c.l.bf16 %v3878_v47 }
 0x547   :  { %4513 = vpow2.f32 %v3321_v61 }
 0x548   :  { %4515 = vpow2.f32 %v3319_v63  ;;  %v4112_v29 = vpop.f32.mrb[36].mxu0 }
 0x549   :  { %v1128_v60 = vadd.f32 %v4112_v29, %v3663_v62  ;;  %v1119_v17 = vpop.f32.mrb[37].mxu0 }
 0x54a   :  { %v1120_v18 = vadd.f32 %v3659_v0, %v1119_v17  ;;  %v4113_v19 = vpop.f32.mrb[38].mxu0  ;;  %v3680_v0 = vunpack.c.h.bf16 %v3879_v44 }
 0x54b   :  { %v3324_v22 = vmul.f32 -1.442695, %v1128_v60  ;;  %v1131_v24 = vadd.f32 %v4113_v19, %v3664_v5  ;;  %v1122_v25 = vpop.f32.mrb[39].mxu0  ;;  %v3676_v60 = vunpack.c.h.bf16 %v3878_v47 }
 0x54c   :  { %v3322_v27 = vmul.f32 -1.442695, %v1120_v18  ;;  %v1123_v28 = vadd.f32 %v3660_v31, %v1122_v25 }
 0x54d   :  { %4517 = vpow2.f32 %v3324_v22  ;;  %v3325_v58 = vmul.f32 -1.442695, %v1131_v24 }
 0x54e   :  { %4519 = vpow2.f32 %v3322_v27  ;;  %v3323_v15 = vmul.f32 -1.442695, %v1123_v28 }
 0x54f   :  { %v4510_v2 = vpop.eup %4509  ;;  %4521 = vpow2.f32 %v3325_v58 }
 0x550   :  { %v4512_v4 = vpop.eup %4511  ;;  %v1204_v7 = vadd.f32 1.0, %v4510_v2  ;;  %4523 = vpow2.f32 %v3323_v15  ;;  %v4116_v10 = vpop.f32.mrb[40].mxu0 }
 0x551   :  { %v4514_v36 = vpop.eup %4513  ;;  %v1202_v11 = vadd.f32 1.0, %v4512_v4  ;;  %v1144_v37 = vadd.f32 %v4116_v10, %v3671_v59  ;;  %v1135_v38 = vpop.f32.mrb[41].mxu0 }
 0x552   :  { %v4516_v12 = vpop.eup %4515  ;;  %4525 = vrcp.f32 %v1204_v7  ;;  %v1205_v1 = vadd.f32 1.0, %v4514_v36  ;;  %v1136_v39 = vadd.f32 %v3667_v34, %v1135_v38  ;;  %v4117_v21 = vpop.f32.mrb[42].mxu0 }
 0x553   :  { %4527 = vrcp.f32 %v1202_v11  ;;  %v1203_v40 = vadd.f32 1.0, %v4516_v12  ;;  %v3328_v41 = vmul.f32 -1.442695, %v1144_v37  ;;  %v1147_v42 = vadd.f32 %v4117_v21, %v3672_v3  ;;  %v1138_v43 = vpop.f32.mrb[43].mxu0 }
 0x554   :  { %4529 = vrcp.f32 %v1205_v1  ;;  %v3326_v45 = vmul.f32 -1.442695, %v1136_v39  ;;  %v1139_v46 = vadd.f32 %v3668_v35, %v1138_v43 }
 0x555   :  { %4531 = vrcp.f32 %v1203_v40  ;;  %v3329_v56 = vmul.f32 -1.442695, %v1147_v42 }
 0x556   :  { %4533 = vpow2.f32 %v3328_v41  ;;  %v3327_v57 = vmul.f32 -1.442695, %v1139_v46 }
 0x557   :  { %v4518_v13 = vpop.eup %4517  ;;  %4535 = vpow2.f32 %v3326_v45 }
 0x558   :  { %v4520_v61 = vpop.eup %4519  ;;  %v1208_v62 = vadd.f32 1.0, %v4518_v13  ;;  %4537 = vpow2.f32 %v3329_v56  ;;  %v4120_v63 = vpop.f32.mrb[44].mxu0 }
 0x559   :  { %v4522_v5 = vpop.eup %4521  ;;  %v1206_v29 = vadd.f32 1.0, %v4520_v61  ;;  %4539 = vpow2.f32 %v3327_v57  ;;  %v1151_v31 = vpop.f32.mrb[45].mxu0  ;;  %v1160_v19 = vadd.f32 %v4120_v63, %v3679_v8 }
 0x55a   :  { %v4524_v17 = vpop.eup %4523  ;;  %4541 = vrcp.f32 %v1208_v62  ;;  %v1209_v18 = vadd.f32 1.0, %v4522_v5  ;;  %v4121_v20 = vpop.f32.mrb[46].mxu0  ;;  %v1152_v24 = vadd.f32 %v3675_v16, %v1151_v31 }
 0x55b   :  { %4543 = vrcp.f32 %v1206_v29  ;;  %v1207_v22 = vadd.f32 1.0, %v4524_v17  ;;  %v1154_v25 = vpop.f32.mrb[47].mxu0  ;;  %v1163_v27 = vadd.f32 %v4121_v20, %v3680_v0  ;;  %v3514_v17 = vsel %vm2437_vm6, 1.0, %v6200_v33 }
 0x55c   :  { %v4526_v26 = vpop.eup %4525  ;;  %4545 = vrcp.f32 %v1209_v18  ;;  %v1155_v58 = vadd.f32 %v3676_v60, %v1154_v25  ;;  %v2532_v20 = vrot.slane %v3514_v17, %v5094_v30 }
 0x55d   :  { %v4528_v28 = vpop.eup %4527  ;;  %4547 = vrcp.f32 %v1207_v22 }
 0x55e   :  { %v4530_v59 = vpop.eup %4529  ;;  %4549 = vtanh.f32 %v1160_v19 }
 0x55f   :  { %v4532_v15 = vpop.eup %4531  ;;  %4551 = vtanh.f32 %v1152_v24 }
 0x560   :  { %v4534_v34 = vpop.eup %4533  ;;  %4553 = vtanh.f32 %v1163_v27 }
 0x561   :  { %v4536_v2 = vpop.eup %4535  ;;  %4555 = vtanh.f32 %v1155_v58  ;;  %v1212_v35 = vadd.f32 1.0, %v4534_v34 }
 0x562   :  { %v4538_v3 = vpop.eup %4537  ;;  %v1210_v11 = vadd.f32 1.0, %v4536_v2 }
 0x563   :  { %v4540_v4 = vpop.eup %4539  ;;  %v1213_v12 = vadd.f32 1.0, %v4538_v3  ;;  %4557 = vrcp.f32 %v1212_v35  ;;  %v3882_v35 = vld [vmem:[%s6194_s0 + $0x150] sm:$0xff]  }
 0x564   :  { %v4542_v7 = vpop.eup %4541  ;;  %v1211_v21 = vadd.f32 1.0, %v4540_v4  ;;  %4559 = vrcp.f32 %v1210_v11 }
 0x565   :  { %v4544_v10 = vpop.eup %4543  ;;  %v1244_v38 = vmul.f32 %v4542_v7, %v5324_v6  ;;  %4561 = vrcp.f32 %v1213_v12 }
 0x566   :  { %v4546_v36 = vpop.eup %4545  ;;  %v1242_v39 = vmul.f32 %v4544_v10, %v5326_v9  ;;  %4563 = vrcp.f32 %v1211_v21 }
 0x567   :  { %v4548_v37 = vpop.eup %4547  ;;  %v1245_v41 = vmul.f32 %v4546_v36, %v5329_v14 }
 0x568   :  { %v4550_v1 = vpop.eup %4549  ;;  %v1243_v44 = vmul.f32 %v4548_v37, %v5332_v32 }
 0x569   :  { %v4552_v40 = vpop.eup %4551  ;;  %v1248_v42 = vmul.f32 %v4550_v1, %v4526_v26  ;;  %v3691_v1 = vunpack.c.l.bf16 %v3882_v35 }
 0x56a   :  { %v4554_v43 = vpop.eup %4553  ;;  %v1246_v45 = vmul.f32 %v4552_v40, %v4528_v28  ;;  %v3692_v40 = vunpack.c.h.bf16 %v3882_v35 }
 0x56b   :  { %v4556_v46 = vpop.eup %4555  ;;  %v5396_v47 = vadd.f32 %v1248_v42, %v1244_v38  ;;  %v1249_v6 = vmul.f32 %v4554_v43, %v4530_v59 }
 0x56c   :  { %v5398_v56 = vadd.f32 %v1246_v45, %v1242_v39  ;;  %v1247_v9 = vmul.f32 %v4556_v46, %v4532_v15  ;;  %v3885_v45 = vld [vmem:[%s6194_s0 + $0x168] sm:$0xff]  }
 0x56d   :  { %4565 = vtanh.f32 %v5396_v47  ;;  %v5401_v57 = vadd.f32 %v1249_v6, %v1245_v41  ;;  %v4558_v32 = vpop.eup %4557 }
 0x56e   :  { %4567 = vtanh.f32 %v5398_v56  ;;  %v5404_v14 = vadd.f32 %v1247_v9, %v1243_v44  ;;  %v4560_v8 = vpop.eup %4559 }
 0x56f   :  { %4569 = vtanh.f32 %v5401_v57  ;;  %v4562_v13 = vpop.eup %4561 }
 0x570   :  { %4571 = vtanh.f32 %v5404_v14  ;;  %v4564_v16 = vpop.eup %4563 }
 0x577   :  { %v4566_v61 = vpop.eup %4565 }
 0x578   :  { %v4568_v62 = vpop.eup %4567  ;;  %v1260_v63 = vmul.f32 %v4566_v61, %v4558_v32  ;;  %v3884_v32 = vld [vmem:[%s6194_s0 + $0x160] sm:$0xff]   ;;  %v3703_v61 = vunpack.c.l.bf16 %v3885_v45 }
 0x579   :  { %v4570_v0 = vpop.eup %4569  ;;  %v1258_v5 = vmul.f32 %v4568_v62, %v4560_v8  ;;  %v3700_v17 = vunpack.c.h.bf16 %v3884_v32 }
 0x57a   :  { %v4572_v29 = vpop.eup %4571  ;;  %v1261_v31 = vmul.f32 %v4570_v0, %v4562_v13  ;;  %1265 = vst.msk [vmem:[#allocation2 + $0x90] sm:$0xff] %vm330_vm1, %v1260_v63 }
 0x57b   :  { %v1259_v60 = vmul.f32 %v4572_v29, %v4564_v16  ;;  %1263 = vst.msk [vmem:[#allocation2 + $0x80] sm:$0xff] %vm330_vm1, %v1258_v5 }
 0x57c   :  { %1266 = vst.msk [vmem:[#allocation2 + $0x98] sm:$0xff] %vm330_vm1, %v1261_v31  ;;  %v1268_v18 = vpack.c.bf16 %v1261_v31, %v1260_v63  ;;  %v3699_v63 = vunpack.c.l.bf16 %v3884_v32 }
 0x57d   :  { %1264 = vst.msk [vmem:[#allocation2 + $0x88] sm:$0xff] %vm330_vm1, %v1259_v60  ;;  %v1267_v19 = vpack.c.bf16 %v1259_v60, %v1258_v5  ;;  %v3704_v5 = vunpack.c.h.bf16 %v3885_v45 }
 0x57f   :  { %4122 = vmatprep.subr.bf16.mxu1 %v1267_v19 }
 0x580   :  { %4123 = vmatpush3.bf16.msra.mxu1 %v1267_v19 }
 0x581   :  { %4124 = vmatprep.subr.bf16.mxu1 %v1268_v18  ;;  %v2481_v22 = vld [vmem:[#allocation2 + $0x90] sm:$0xff] }
 0x582   :  { %v2479_v24 = vld [vmem:[#allocation2 + $0x80] sm:$0xff]  ;;  %v2581_v25 = vmul.f32 %v2532_v20, %v2481_v22 }
 0x583   :  { %v2579_v26 = vmul.f32 %v2532_v20, %v2479_v24  ;;  %v2482_v27 = vld [vmem:[#allocation2 + $0x98] sm:$0xff] }
 0x584   :  { %v2480_v28 = vld [vmem:[#allocation2 + $0x88] sm:$0xff]  ;;  %v2582_v58 = vmul.f32 %v2532_v20, %v2482_v27  ;;  %2621 = vst.msk [vmem:[#allocation2 + $0x90] sm:$0xff] %vm330_vm1, %v2581_v25  ;;  %4125 = vmatpush3.bf16.msra.mxu1 %v1268_v18 }
 0x585   :  { %v2580_v59 = vmul.f32 %v2532_v20, %v2480_v28  ;;  %2619 = vst.msk [vmem:[#allocation2 + $0x80] sm:$0xff] %vm330_vm1, %v2579_v26 }
 0x586   :  { %2622 = vst.msk [vmem:[#allocation2 + $0x98] sm:$0xff] %vm330_vm1, %v2582_v58 }
 0x587   :  { %2620 = vst.msk [vmem:[#allocation2 + $0x88] sm:$0xff] %vm330_vm1, %v2580_v59  ;;  %4127 = vmatmul.mubr.msk.bf16.vlgmr.msra.gmra.mrb[32].mxu1 %vm112_vm0, %v5243_v48  ;;  %v3881_v48 = vld [vmem:[%s6194_s0 + $0x148] sm:$0xff]  }
 0x588   :  { %4130 = vmatprep.mubr.msk.bf16.mxu1 %vm112_vm0, %v5250_v49  ;;  %v3880_v49 = vld [vmem:[%s6194_s0 + $0x140] sm:$0xff]  }
 0x589   :  { %v3684_v34 = vunpack.c.h.bf16 %v3880_v49 }
 0x58f   :  { %4131 = vmatmul.mubr.msk.bf16.gmra.mrb[36].mxu1 %vm112_vm0, %v5257_v50  ;;  %v3687_v50 = vunpack.c.l.bf16 %v3881_v48 }
 0x590   :  { %4134 = vmatprep.mubr.msk.bf16.mxu1 %vm112_vm0, %v5264_v51  ;;  %v3683_v51 = vunpack.c.l.bf16 %v3880_v49  ;;  %v3887_v49 = vld [vmem:[%s6194_s0 + $0x178] sm:$0xff]  }
 0x597   :  { %4135 = vmatmul.mubr.msk.bf16.gmra.mrb[40].mxu1 %vm112_vm0, %v5271_v52  ;;  %v3688_v52 = vunpack.c.h.bf16 %v3881_v48 }
 0x598   :  { %4138 = vmatprep.mubr.msk.bf16.mxu1 %vm112_vm0, %v5278_v53 }
 0x59f   :  { %4139 = vmatmul.mubr.msk.bf16.gmra.mrb[44].mxu1 %vm112_vm0, %v5285_v54 }
 0x5a0   :  { %4166 = vmatprep.mubr.msk.bf16.mxu1 %vm112_vm0, %v5292_v55  ;;  %v3883_v55 = vld [vmem:[%s6194_s0 + $0x158] sm:$0xff]  }
 0x5a1   :  { %v3695_v38 = vunpack.c.l.bf16 %v3883_v55  ;;  %v3696_v39 = vunpack.c.h.bf16 %v3883_v55 }
 0x65a   :  { %v4128_v15 = vpop.f32.mrb[32].mxu1 }
 0x65b   :  { %v1345_v53 = vadd.f32 %v4128_v15, %v3687_v50  ;;  %v1336_v2 = vpop.f32.mrb[33].mxu1 }
 0x65c   :  { %v1337_v3 = vadd.f32 %v3683_v51, %v1336_v2  ;;  %v4129_v54 = vpop.f32.mrb[34].mxu1 }
 0x65d   :  { %v3356_v4 = vmul.f32 -1.442695, %v1345_v53  ;;  %v1348_v7 = vadd.f32 %v4129_v54, %v3688_v52  ;;  %v1339_v10 = vpop.f32.mrb[35].mxu1  ;;  %v3886_v52 = vld [vmem:[%s6194_s0 + $0x170] sm:$0xff]   ;;  %v3711_v53 = vunpack.c.l.bf16 %v3887_v49 }
 0x65e   :  { %v3354_v36 = vmul.f32 -1.442695, %v1337_v3  ;;  %v1340_v11 = vadd.f32 %v3684_v34, %v1339_v10  ;;  %v3707_v3 = vunpack.c.l.bf16 %v3886_v52 }
 0x65f   :  { %4573 = vpow2.f32 %v3356_v4  ;;  %v3357_v37 = vmul.f32 -1.442695, %v1348_v7  ;;  %v3712_v7 = vunpack.c.h.bf16 %v3887_v49 }
 0x660   :  { %4575 = vpow2.f32 %v3354_v36  ;;  %v3355_v12 = vmul.f32 -1.442695, %v1340_v11  ;;  %v3708_v11 = vunpack.c.h.bf16 %v3886_v52 }
 0x661   :  { %4577 = vpow2.f32 %v3357_v37 }
 0x662   :  { %4579 = vpow2.f32 %v3355_v12  ;;  %v4132_v21 = vpop.f32.mrb[36].mxu1 }
 0x663   :  { %v1361_v41 = vadd.f32 %v4132_v21, %v3695_v38  ;;  %v1352_v42 = vpop.f32.mrb[37].mxu1 }
 0x664   :  { %v1353_v43 = vadd.f32 %v3691_v1, %v1352_v42  ;;  %v4133_v44 = vpop.f32.mrb[38].mxu1 }
 0x665   :  { %v3360_v46 = vmul.f32 -1.442695, %v1361_v41  ;;  %v1364_v6 = vadd.f32 %v4133_v44, %v3696_v39  ;;  %v1355_v9 = vpop.f32.mrb[39].mxu1 }
 0x666   :  { %v3358_v8 = vmul.f32 -1.442695, %v1353_v43  ;;  %v1356_v13 = vadd.f32 %v3692_v40, %v1355_v9 }
 0x667   :  { %4581 = vpow2.f32 %v3360_v46  ;;  %v3361_v16 = vmul.f32 -1.442695, %v1364_v6 }
 0x668   :  { %4583 = vpow2.f32 %v3358_v8  ;;  %v3359_v62 = vmul.f32 -1.442695, %v1356_v13 }
 0x669   :  { %v4574_v0 = vpop.eup %4573  ;;  %4585 = vpow2.f32 %v3361_v16 }
 0x66a   :  { %v4576_v29 = vpop.eup %4575  ;;  %v1437_v31 = vadd.f32 1.0, %v4574_v0  ;;  %4587 = vpow2.f32 %v3359_v62  ;;  %v4136_v60 = vpop.f32.mrb[40].mxu1 }
 0x66b   :  { %v4578_v18 = vpop.eup %4577  ;;  %v1435_v19 = vadd.f32 1.0, %v4576_v29  ;;  %v1377_v20 = vadd.f32 %v4136_v60, %v3703_v61  ;;  %v1368_v22 = vpop.f32.mrb[41].mxu1 }
 0x66c   :  { %v4580_v24 = vpop.eup %4579  ;;  %4589 = vrcp.f32 %v1437_v31  ;;  %v1438_v25 = vadd.f32 1.0, %v4578_v18  ;;  %v1369_v26 = vadd.f32 %v3699_v63, %v1368_v22  ;;  %v4137_v27 = vpop.f32.mrb[42].mxu1 }
 0x66d   :  { %4591 = vrcp.f32 %v1435_v19  ;;  %v1436_v28 = vadd.f32 1.0, %v4580_v24  ;;  %v3364_v58 = vmul.f32 -1.442695, %v1377_v20  ;;  %v1380_v59 = vadd.f32 %v4137_v27, %v3704_v5  ;;  %v1371_v48 = vpop.f32.mrb[43].mxu1 }
 0x66e   :  { %4593 = vrcp.f32 %v1438_v25  ;;  %v3362_v50 = vmul.f32 -1.442695, %v1369_v26  ;;  %v1372_v51 = vadd.f32 %v3700_v17, %v1371_v48 }
 0x66f   :  { %4595 = vrcp.f32 %v1436_v28  ;;  %v3365_v15 = vmul.f32 -1.442695, %v1380_v59 }
 0x670   :  { %4597 = vpow2.f32 %v3364_v58  ;;  %v3363_v34 = vmul.f32 -1.442695, %v1372_v51 }
 0x671   :  { %v4582_v2 = vpop.eup %4581  ;;  %4599 = vpow2.f32 %v3362_v50 }
 0x672   :  { %v4584_v54 = vpop.eup %4583  ;;  %v1441_v55 = vadd.f32 1.0, %v4582_v2  ;;  %4601 = vpow2.f32 %v3365_v15  ;;  %v4140_v4 = vpop.f32.mrb[44].mxu1 }
 0x673   :  { %v4586_v10 = vpop.eup %4585  ;;  %v1439_v35 = vadd.f32 1.0, %v4584_v54  ;;  %4603 = vpow2.f32 %v3363_v34  ;;  %v1384_v36 = vpop.f32.mrb[45].mxu1  ;;  %v1393_v12 = vadd.f32 %v4140_v4, %v3711_v53  ;;  %v3515_v54 = vsel %vm2438_vm7, 1.0, %v6200_v33 }
 0x674   :  { %v4588_v37 = vpop.eup %4587  ;;  %4605 = vrcp.f32 %v1441_v55  ;;  %v1442_v38 = vadd.f32 1.0, %v4586_v10  ;;  %v4141_v1 = vpop.f32.mrb[46].mxu1  ;;  %v1385_v21 = vadd.f32 %v3707_v3, %v1384_v36  ;;  %v2536_v23 = vrot.slane %v3515_v54, %v5094_v30 }
 0x675   :  { %4607 = vrcp.f32 %v1439_v35  ;;  %v1440_v39 = vadd.f32 1.0, %v4588_v37  ;;  %v1387_v40 = vpop.f32.mrb[47].mxu1  ;;  %v1396_v42 = vadd.f32 %v4141_v1, %v3712_v7  ;;  %v5489_v1 = vld [vmem:[%s6192_s2 + $0x8] sm:$0xff]  }
 0x676   :  { %v4590_v41 = vpop.eup %4589  ;;  %4609 = vrcp.f32 %v1442_v38  ;;  %v1388_v44 = vadd.f32 %v3708_v11, %v1387_v40  ;;  %v5510_v40 = vld [vmem:[%s6192_s2 + $0x20] sm:$0xff]  }
 0x677   :  { %v4592_v43 = vpop.eup %4591  ;;  %4611 = vrcp.f32 %v1440_v39  ;;  %v5496_v39 = vld [vmem:[%s6192_s2 + $0x10] sm:$0xff]  }
 0x678   :  { %v4594_v45 = vpop.eup %4593  ;;  %4613 = vtanh.f32 %v1393_v12 }
 0x679   :  { %v4596_v46 = vpop.eup %4595  ;;  %4615 = vtanh.f32 %v1385_v21  ;;  %v5503_v21 = vld [vmem:[%s6192_s2 + $0x18] sm:$0xff]  }
 0x67a   :  { %v4598_v6 = vpop.eup %4597  ;;  %4617 = vtanh.f32 %v1396_v42  ;;  %v5524_v42 = vld [vmem:[%s6192_s2 + $0x30] sm:$0xff]  }
 0x67b   :  { %v4600_v9 = vpop.eup %4599  ;;  %4619 = vtanh.f32 %v1388_v44  ;;  %v1445_v61 = vadd.f32 1.0, %v4598_v6  ;;  %v5538_v44 = vld [vmem:[%s6192_s2] sm:$0xff]  }
 0x67c   :  { %v4602_v32 = vpop.eup %4601  ;;  %v1443_v63 = vadd.f32 1.0, %v4600_v9 }
 0x67d   :  { %v4604_v8 = vpop.eup %4603  ;;  %v1446_v29 = vadd.f32 1.0, %v4602_v32  ;;  %4621 = vrcp.f32 %v1445_v61 }
 0x67e   :  { %v4606_v13 = vpop.eup %4605  ;;  %v1444_v17 = vadd.f32 1.0, %v4604_v8  ;;  %4623 = vrcp.f32 %v1443_v63 }
 0x67f   :  { %v4608_v16 = vpop.eup %4607  ;;  %v1477_v5 = vmul.f32 %v4606_v13, %v5396_v47  ;;  %4625 = vrcp.f32 %v1446_v29 }
 0x680   :  { %v4610_v62 = vpop.eup %4609  ;;  %v1475_v60 = vmul.f32 %v4608_v16, %v5398_v56  ;;  %4627 = vrcp.f32 %v1444_v17 }
 0x681   :  { %v4612_v0 = vpop.eup %4611  ;;  %v1478_v19 = vmul.f32 %v4610_v62, %v5401_v57 }
 0x682   :  { %v4614_v31 = vpop.eup %4613  ;;  %v1476_v24 = vmul.f32 %v4612_v0, %v5404_v14  ;;  %v3891_v0 = vld [vmem:[%s6194_s0 + $0x198] sm:$0xff]  }
 0x683   :  { %v4616_v18 = vpop.eup %4615  ;;  %v1481_v20 = vmul.f32 %v4614_v31, %v4590_v41  ;;  %v5517_v41 = vld [vmem:[%s6192_s2 + $0x28] sm:$0xff]  }
 0x684   :  { %v4618_v22 = vpop.eup %4617  ;;  %v1479_v25 = vmul.f32 %v4616_v18, %v4592_v43  ;;  %v5531_v43 = vld [vmem:[%s6192_s2 + $0x38] sm:$0xff]  }
 0x685   :  { %v4620_v26 = vpop.eup %4619  ;;  %v5463_v27 = vadd.f32 %v1481_v20, %v1477_v5  ;;  %v1482_v47 = vmul.f32 %v4618_v22, %v4594_v45  ;;  %v3889_v45 = vld [vmem:[%s6194_s0 + $0x188] sm:$0xff]   ;;  %v3727_v20 = vunpack.c.l.bf16 %v3891_v0 }
 0x686   :  { %v5465_v28 = vadd.f32 %v1479_v25, %v1475_v60  ;;  %v1480_v56 = vmul.f32 %v4620_v26, %v4596_v46  ;;  %v3888_v46 = vld [vmem:[%s6194_s0 + $0x180] sm:$0xff]   ;;  %v3719_v6 = vunpack.c.l.bf16 %v3889_v45  ;;  %v3720_v32 = vunpack.c.h.bf16 %v3889_v45  ;;  %v3890_v60 = vld [vmem:[%s6194_s0 + $0x190] sm:$0xff]  }
 0x687   :  { %4629 = vtanh.f32 %v5463_v27  ;;  %v5468_v58 = vadd.f32 %v1482_v47, %v1478_v19  ;;  %v4622_v14 = vpop.eup %4621  ;;  %v3715_v9 = vunpack.c.l.bf16 %v3888_v46  ;;  %v3716_v13 = vunpack.c.h.bf16 %v3888_v46 }
 0x688   :  { %4631 = vtanh.f32 %v5465_v28  ;;  %v5471_v57 = vadd.f32 %v1480_v56, %v1476_v24  ;;  %v4624_v59 = vpop.eup %4623  ;;  %v3723_v24 = vunpack.c.l.bf16 %v3890_v60  ;;  %v3728_v25 = vunpack.c.h.bf16 %v3891_v0  ;;  %v3894_v0 = vld [vmem:[%s6194_s0 + $0x1b0] sm:$0xff]  }
 0x689   :  { %4633 = vtanh.f32 %v5468_v58  ;;  %v4626_v48 = vpop.eup %4625  ;;  %v3724_v47 = vunpack.c.h.bf16 %v3890_v60 }
 0x68a   :  { %4635 = vtanh.f32 %v5471_v57  ;;  %v4628_v49 = vpop.eup %4627 }
 0x691   :  { %v4630_v50 = vpop.eup %4629 }
 0x692   :  { %v4632_v51 = vpop.eup %4631  ;;  %v1493_v52 = vmul.f32 %v4630_v50, %v4622_v14 }
 0x693   :  { %v4634_v15 = vpop.eup %4633  ;;  %v1491_v34 = vmul.f32 %v4632_v51, %v4624_v59 }
 0x694   :  { %v4636_v53 = vpop.eup %4635  ;;  %v1494_v2 = vmul.f32 %v4634_v15, %v4626_v48  ;;  %1498 = vst.msk [vmem:[#allocation2 + $0xb0] sm:$0xff] %vm330_vm1, %v1493_v52  ;;  %v3892_v15 = vld [vmem:[%s6194_s0 + $0x1a0] sm:$0xff]  }
 0x695   :  { %v1492_v3 = vmul.f32 %v4636_v53, %v4628_v49  ;;  %1496 = vst.msk [vmem:[#allocation2 + $0xa0] sm:$0xff] %vm330_vm1, %v1491_v34  ;;  %v3893_v49 = vld [vmem:[%s6194_s0 + $0x1a8] sm:$0xff]  }
 0x696   :  { %1499 = vst.msk [vmem:[#allocation2 + $0xb8] sm:$0xff] %vm330_vm1, %v1494_v2  ;;  %v1501_v55 = vpack.c.bf16 %v1494_v2, %v1493_v52 }
 0x697   :  { %1497 = vst.msk [vmem:[#allocation2 + $0xa8] sm:$0xff] %vm330_vm1, %v1492_v3  ;;  %v1500_v4 = vpack.c.bf16 %v1492_v3, %v1491_v34  ;;  %v3735_v3 = vunpack.c.l.bf16 %v3893_v49 }
 0x699   :  { %4142 = vmatprep.subr.bf16.mxu0 %v1500_v4 }
 0x69a   :  { %4143 = vmatpush3.bf16.msra.mxu0 %v1500_v4 }
 0x69b   :  { %4144 = vmatprep.subr.bf16.mxu0 %v1501_v55  ;;  %v2485_v7 = vld [vmem:[#allocation2 + $0xb0] sm:$0xff] }
 0x69c   :  { %v2483_v10 = vld [vmem:[#allocation2 + $0xa0] sm:$0xff]  ;;  %v2585_v35 = vmul.f32 %v2536_v23, %v2485_v7 }
 0x69d   :  { %v2583_v36 = vmul.f32 %v2536_v23, %v2483_v10  ;;  %v2486_v11 = vld [vmem:[#allocation2 + $0xb8] sm:$0xff] }
 0x69e   :  { %v2484_v37 = vld [vmem:[#allocation2 + $0xa8] sm:$0xff]  ;;  %v2586_v38 = vmul.f32 %v2536_v23, %v2486_v11  ;;  %2625 = vst.msk [vmem:[#allocation2 + $0xb0] sm:$0xff] %vm330_vm1, %v2585_v35  ;;  %4145 = vmatpush3.bf16.msra.mxu0 %v1501_v55  ;;  %v3731_v55 = vunpack.c.l.bf16 %v3892_v15 }
 0x69f   :  { %v2584_v12 = vmul.f32 %v2536_v23, %v2484_v37  ;;  %2623 = vst.msk [vmem:[#allocation2 + $0xa0] sm:$0xff] %vm330_vm1, %v2583_v36  ;;  %v3736_v23 = vunpack.c.h.bf16 %v3893_v49  ;;  %v3732_v36 = vunpack.c.h.bf16 %v3892_v15 }
 0x6a0   :  { %2626 = vst.msk [vmem:[#allocation2 + $0xb8] sm:$0xff] %vm330_vm1, %v2586_v38 }
 0x6a1   :  { %2624 = vst.msk [vmem:[#allocation2 + $0xa8] sm:$0xff] %vm330_vm1, %v2584_v12  ;;  %4147 = vmatmul.mubr.msk.bf16.vlgmr.msra.gmra.mrb[48].mxu0 %vm112_vm0, %v5489_v1 }
 0x6a2   :  { %4150 = vmatprep.mubr.msk.bf16.mxu0 %vm112_vm0, %v5496_v39 }
 0x6a9   :  { %4151 = vmatmul.mubr.msk.bf16.gmra.mrb[52].mxu0 %vm112_vm0, %v5503_v21 }
 0x6aa   :  { %4154 = vmatprep.mubr.msk.bf16.mxu0 %vm112_vm0, %v5510_v40 }
 0x6b1   :  { %4155 = vmatmul.mubr.msk.bf16.gmra.mrb[56].mxu0 %vm112_vm0, %v5517_v41 }
 0x6b2   :  { %4158 = vmatprep.mubr.msk.bf16.mxu0 %vm112_vm0, %v5524_v42 }
 0x6b9   :  { %4159 = vmatmul.mubr.msk.bf16.gmra.mrb[60].mxu0 %vm112_vm0, %v5531_v43 }
 0x6ba   :  { %4186 = vmatprep.mubr.msk.bf16.mxu0 %vm112_vm0, %v5538_v44 }
 0x774   :  { %v4148_v8 = vpop.f32.mrb[48].mxu0 }
 0x775   :  { %v1578_v16 = vadd.f32 %v4148_v8, %v3719_v6  ;;  %v1569_v61 = vpop.f32.mrb[49].mxu0 }
 0x776   :  { %v1570_v62 = vadd.f32 %v3715_v9, %v1569_v61  ;;  %v4149_v63 = vpop.f32.mrb[50].mxu0  ;;  %v3895_v61 = vld [vmem:[%s6194_s0 + $0x1b8] sm:$0xff]  }
 0x777   :  { %v3392_v5 = vmul.f32 -1.442695, %v1578_v16  ;;  %v1581_v29 = vadd.f32 %v4149_v63, %v3720_v32  ;;  %v1572_v31 = vpop.f32.mrb[51].mxu0 }
 0x778   :  { %v3390_v17 = vmul.f32 -1.442695, %v1570_v62  ;;  %v1573_v18 = vadd.f32 %v3716_v13, %v1572_v31  ;;  %v3743_v31 = vunpack.c.l.bf16 %v3895_v61 }
 0x779   :  { %4637 = vpow2.f32 %v3392_v5  ;;  %v3393_v19 = vmul.f32 -1.442695, %v1581_v29 }
 0x77a   :  { %4639 = vpow2.f32 %v3390_v17  ;;  %v3391_v22 = vmul.f32 -1.442695, %v1573_v18  ;;  %v3739_v17 = vunpack.c.l.bf16 %v3894_v0 }
 0x77b   :  { %4641 = vpow2.f32 %v3393_v19 }
 0x77c   :  { %4643 = vpow2.f32 %v3391_v22  ;;  %v4152_v26 = vpop.f32.mrb[52].mxu0  ;;  %v3744_v22 = vunpack.c.h.bf16 %v3895_v61 }
 0x77d   :  { %v1594_v56 = vadd.f32 %v4152_v26, %v3727_v20  ;;  %v1585_v14 = vpop.f32.mrb[53].mxu0 }
 0x77e   :  { %v1586_v59 = vadd.f32 %v3723_v24, %v1585_v14  ;;  %v4153_v48 = vpop.f32.mrb[54].mxu0 }
 0x77f   :  { %v3396_v50 = vmul.f32 -1.442695, %v1594_v56  ;;  %v1597_v51 = vadd.f32 %v4153_v48, %v3728_v25  ;;  %v1588_v52 = vpop.f32.mrb[55].mxu0 }
 0x780   :  { %v3394_v34 = vmul.f32 -1.442695, %v1586_v59  ;;  %v1589_v53 = vadd.f32 %v3724_v47, %v1588_v52  ;;  %v3740_v47 = vunpack.c.h.bf16 %v3894_v0 }
 0x781   :  { %4645 = vpow2.f32 %v3396_v50  ;;  %v3397_v2 = vmul.f32 -1.442695, %v1597_v51 }
 0x782   :  { %4647 = vpow2.f32 %v3394_v34  ;;  %v3395_v54 = vmul.f32 -1.442695, %v1589_v53 }
 0x783   :  { %v4638_v4 = vpop.eup %4637  ;;  %4649 = vpow2.f32 %v3397_v2 }
 0x784   :  { %v4640_v7 = vpop.eup %4639  ;;  %v1670_v10 = vadd.f32 1.0, %v4638_v4  ;;  %4651 = vpow2.f32 %v3395_v54  ;;  %v4156_v35 = vpop.f32.mrb[56].mxu0 }
 0x785   :  { %v4642_v11 = vpop.eup %4641  ;;  %v1668_v37 = vadd.f32 1.0, %v4640_v7  ;;  %v1610_v38 = vadd.f32 %v4156_v35, %v3735_v3  ;;  %v1601_v12 = vpop.f32.mrb[57].mxu0 }
 0x786   :  { %v4644_v45 = vpop.eup %4643  ;;  %4653 = vrcp.f32 %v1670_v10  ;;  %v1671_v46 = vadd.f32 1.0, %v4642_v11  ;;  %v1602_v6 = vadd.f32 %v3731_v55, %v1601_v12  ;;  %v4157_v9 = vpop.f32.mrb[58].mxu0 }
 0x787   :  { %4655 = vrcp.f32 %v1668_v37  ;;  %v1669_v32 = vadd.f32 1.0, %v4644_v45  ;;  %v3400_v8 = vmul.f32 -1.442695, %v1610_v38  ;;  %v1613_v13 = vadd.f32 %v4157_v9, %v3736_v23  ;;  %v1604_v16 = vpop.f32.mrb[59].mxu0 }
 0x788   :  { %4657 = vrcp.f32 %v1671_v46  ;;  %v3398_v62 = vmul.f32 -1.442695, %v1602_v6  ;;  %v1605_v63 = vadd.f32 %v3732_v36, %v1604_v16 }
 0x789   :  { %4659 = vrcp.f32 %v1669_v32  ;;  %v3401_v5 = vmul.f32 -1.442695, %v1613_v13 }
 0x78a   :  { %4661 = vpow2.f32 %v3400_v8  ;;  %v3399_v29 = vmul.f32 -1.442695, %v1605_v63 }
 0x78b   :  { %v4646_v60 = vpop.eup %4645  ;;  %4663 = vpow2.f32 %v3398_v62 }
 0x78c   :  { %v4648_v18 = vpop.eup %4647  ;;  %v1674_v19 = vadd.f32 1.0, %v4646_v60  ;;  %4665 = vpow2.f32 %v3401_v5  ;;  %v4160_v20 = vpop.f32.mrb[60].mxu0 }
 0x78d   :  { %v4650_v24 = vpop.eup %4649  ;;  %v1672_v25 = vadd.f32 1.0, %v4648_v18  ;;  %4667 = vpow2.f32 %v3399_v29  ;;  %v1617_v26 = vpop.f32.mrb[61].mxu0  ;;  %v1626_v59 = vadd.f32 %v4160_v20, %v3743_v31 }
 0x78e   :  { %v4652_v56 = vpop.eup %4651  ;;  %4669 = vrcp.f32 %v1674_v19  ;;  %v1675_v14 = vadd.f32 1.0, %v4650_v24  ;;  %v4161_v48 = vpop.f32.mrb[62].mxu0  ;;  %v1618_v50 = vadd.f32 %v3739_v17, %v1617_v26  ;;  %v5585_v19 = vld [vmem:[%s6195_s1] sm:$0x1] }
 0x78f   :  { %4671 = vrcp.f32 %v1672_v25  ;;  %v1673_v49 = vadd.f32 1.0, %v4652_v56  ;;  %v1620_v51 = vpop.f32.mrb[63].mxu0  ;;  %v1629_v15 = vadd.f32 %v4161_v48, %v3744_v22  ;;  %vm2439_vm8 = vcmp.gt.s32.totalorder %v5585_v19, 6 }
 0x790   :  { %v4654_v52 = vpop.eup %4653  ;;  %4673 = vrcp.f32 %v1675_v14  ;;  %v1621_v53 = vadd.f32 %v3740_v47, %v1620_v51  ;;  %v3516_v56 = vsel %vm2439_vm8, 1.0, %v6200_v33  ;;  %vm2440_vm9 = vcmp.gt.s32.totalorder %v5585_v19, 7 }
 0x791   :  { %v4656_v34 = vpop.eup %4655  ;;  %4675 = vrcp.f32 %v1673_v49  ;;  %v2540_v48 = vrot.slane %v3516_v56, %v5094_v30  ;;  %vm2441_vm10 = vcmp.gt.s32.totalorder %v5585_v19, 8 }
 0x792   :  { %v4658_v2 = vpop.eup %4657  ;;  %4677 = vtanh.f32 %v1626_v59 }
 0x793   :  { %v4660_v3 = vpop.eup %4659  ;;  %4679 = vtanh.f32 %v1618_v50 }
 0x794   :  { %v4662_v54 = vpop.eup %4661  ;;  %4681 = vtanh.f32 %v1629_v15 }
 0x795   :  { %v4664_v55 = vpop.eup %4663  ;;  %4683 = vtanh.f32 %v1621_v53  ;;  %v1678_v35 = vadd.f32 1.0, %v4662_v54  ;;  %v3896_v54 = vld [vmem:[%s6194_s0 + $0x1c0] sm:$0xff]  }
 0x796   :  { %v4666_v4 = vpop.eup %4665  ;;  %v1676_v11 = vadd.f32 1.0, %v4664_v55 }
 0x797   :  { %v4668_v23 = vpop.eup %4667  ;;  %v1679_v12 = vadd.f32 1.0, %v4666_v4  ;;  %4685 = vrcp.f32 %v1678_v35  ;;  %v3747_v4 = vunpack.c.l.bf16 %v3896_v54 }
 0x798   :  { %v4670_v7 = vpop.eup %4669  ;;  %v1677_v6 = vadd.f32 1.0, %v4668_v23  ;;  %4687 = vrcp.f32 %v1676_v11 }
 0x799   :  { %v4672_v10 = vpop.eup %4671  ;;  %v1710_v38 = vmul.f32 %v4670_v7, %v5463_v27  ;;  %4689 = vrcp.f32 %v1679_v12 }
 0x79a   :  { %v4674_v36 = vpop.eup %4673  ;;  %v1708_v46 = vmul.f32 %v4672_v10, %v5465_v28  ;;  %4691 = vrcp.f32 %v1677_v6  ;;  %v3748_v10 = vunpack.c.h.bf16 %v3896_v54 }
 0x79b   :  { %v4676_v37 = vpop.eup %4675  ;;  %v1711_v32 = vmul.f32 %v4674_v36, %v5468_v58 }
 0x79c   :  { %v4678_v45 = vpop.eup %4677  ;;  %v1709_v16 = vmul.f32 %v4676_v37, %v5471_v57 }
 0x79d   :  { %v4680_v9 = vpop.eup %4679  ;;  %v1714_v8 = vmul.f32 %v4678_v45, %v4654_v52 }
 0x79e   :  { %v4682_v13 = vpop.eup %4681  ;;  %v1712_v61 = vmul.f32 %v4680_v9, %v4656_v34 }
 0x79f   :  { %v4684_v62 = vpop.eup %4683  ;;  %v5570_v63 = vadd.f32 %v1714_v8, %v1710_v38  ;;  %v1715_v27 = vmul.f32 %v4682_v13, %v4658_v2 }
 0x7a0   :  { %v5572_v0 = vadd.f32 %v1712_v61, %v1708_v46  ;;  %v1713_v28 = vmul.f32 %v4684_v62, %v4660_v3  ;;  %v3897_v3 = vld [vmem:[%s6194_s0 + $0x1c8] sm:$0xff]   ;;  %v3898_v46 = vld [vmem:[%s6194_s0 + $0x1d0] sm:$0xff]  }
 0x7a1   :  { %4693 = vtanh.f32 %v5570_v63  ;;  %v5575_v5 = vadd.f32 %v1715_v27, %v1711_v32  ;;  %v4686_v57 = vpop.eup %4685  ;;  %v3751_v55 = vunpack.c.l.bf16 %v3897_v3  ;;  %v3752_v23 = vunpack.c.h.bf16 %v3897_v3 }
 0x7a2   :  { %4695 = vtanh.f32 %v5572_v0  ;;  %v5578_v58 = vadd.f32 %v1713_v28, %v1709_v16  ;;  %v4688_v29 = vpop.eup %4687  ;;  %v3755_v16 = vunpack.c.l.bf16 %v3898_v46  ;;  %v3756_v27 = vunpack.c.h.bf16 %v3898_v46 }
 0x7a3   :  { %4697 = vtanh.f32 %v5575_v5  ;;  %v4690_v31 = vpop.eup %4689 }
 0x7a4   :  { %4699 = vtanh.f32 %v5578_v58  ;;  %v4692_v60 = vpop.eup %4691 }
 0x7ab   :  { %v4694_v17 = vpop.eup %4693 }
 0x7ac   :  { %v4696_v18 = vpop.eup %4695  ;;  %v1726_v20 = vmul.f32 %v4694_v17, %v4686_v57 }
 0x7ad   :  { %v4698_v22 = vpop.eup %4697  ;;  %v1724_v24 = vmul.f32 %v4696_v18, %v4688_v29 }
 0x7ae   :  { %v4700_v25 = vpop.eup %4699  ;;  %v1727_v26 = vmul.f32 %v4698_v22, %v4690_v31  ;;  %1731 = vst.msk [vmem:[#allocation2 + $0xd0] sm:$0xff] %vm330_vm1, %v1726_v20  ;;  %v3900_v22 = vld [vmem:[%s6194_s0 + $0x1e0] sm:$0xff]  }
 0x7af   :  { %v1725_v47 = vmul.f32 %v4700_v25, %v4692_v60  ;;  %1729 = vst.msk [vmem:[#allocation2 + $0xc0] sm:$0xff] %vm330_vm1, %v1724_v24  ;;  %v3901_v60 = vld [vmem:[%s6194_s0 + $0x1e8] sm:$0xff]  }
 0x7b0   :  { %1732 = vst.msk [vmem:[#allocation2 + $0xd8] sm:$0xff] %vm330_vm1, %v1727_v26  ;;  %v1734_v14 = vpack.c.bf16 %v1727_v26, %v1726_v20 }
 0x7b1   :  { %1730 = vst.msk [vmem:[#allocation2 + $0xc8] sm:$0xff] %vm330_vm1, %v1725_v47  ;;  %v1733_v59 = vpack.c.bf16 %v1725_v47, %v1724_v24  ;;  %v3767_v47 = vunpack.c.l.bf16 %v3901_v60 }
 0x7b3   :  { %4162 = vmatprep.subr.bf16.mxu1 %v1733_v59 }
 0x7b4   :  { %4163 = vmatpush3.bf16.msra.mxu1 %v1733_v59 }
 0x7b5   :  { %4164 = vmatprep.subr.bf16.mxu1 %v1734_v14  ;;  %v2489_v49 = vld [vmem:[#allocation2 + $0xd0] sm:$0xff] }
 0x7b6   :  { %v2487_v50 = vld [vmem:[#allocation2 + $0xc0] sm:$0xff]  ;;  %v2589_v51 = vmul.f32 %v2540_v48, %v2489_v49 }
 0x7b7   :  { %v2587_v52 = vmul.f32 %v2540_v48, %v2487_v50  ;;  %v2490_v15 = vld [vmem:[#allocation2 + $0xd8] sm:$0xff] }
 0x7b8   :  { %v2488_v34 = vld [vmem:[#allocation2 + $0xc8] sm:$0xff]  ;;  %v2590_v53 = vmul.f32 %v2540_v48, %v2490_v15  ;;  %2629 = vst.msk [vmem:[#allocation2 + $0xd0] sm:$0xff] %vm330_vm1, %v2589_v51  ;;  %4165 = vmatpush3.bf16.msra.mxu1 %v1734_v14  ;;  %v3763_v14 = vunpack.c.l.bf16 %v3900_v22 }
 0x7b9   :  { %v2588_v2 = vmul.f32 %v2540_v48, %v2488_v34  ;;  %2627 = vst.msk [vmem:[#allocation2 + $0xc0] sm:$0xff] %vm330_vm1, %v2587_v52  ;;  %v3768_v48 = vunpack.c.h.bf16 %v3901_v60  ;;  %v3764_v52 = vunpack.c.h.bf16 %v3900_v22 }
 0x7ba   :  { %2630 = vst.msk [vmem:[#allocation2 + $0xd8] sm:$0xff] %vm330_vm1, %v2590_v53 }
 0x7bb   :  { %2628 = vst.msk [vmem:[#allocation2 + $0xc8] sm:$0xff] %vm330_vm1, %v2588_v2  ;;  %4167 = vmatmul.mubr.msk.bf16.vlgmr.msra.gmra.mrb[48].mxu1 %vm112_vm0, %v5489_v1 }
 0x7bc   :  { %4170 = vmatprep.mubr.msk.bf16.mxu1 %vm112_vm0, %v5496_v39 }
 0x7c3   :  { %4171 = vmatmul.mubr.msk.bf16.gmra.mrb[52].mxu1 %vm112_vm0, %v5503_v21 }
 0x7c4   :  { %4174 = vmatprep.mubr.msk.bf16.mxu1 %vm112_vm0, %v5510_v40 }
 0x7cb   :  { %4175 = vmatmul.mubr.msk.bf16.gmra.mrb[56].mxu1 %vm112_vm0, %v5517_v41 }
 0x7cc   :  { %4178 = vmatprep.mubr.msk.bf16.mxu1 %vm112_vm0, %v5524_v42 }
 0x7d3   :  { %4179 = vmatmul.mubr.msk.bf16.gmra.mrb[60].mxu1 %vm112_vm0, %v5531_v43 }
 0x7d4   :  { %4206 = vmatprep.mubr.msk.bf16.mxu1 %vm112_vm0, %v5538_v44  ;;  %v3899_v44 = vld [vmem:[%s6194_s0 + $0x1d8] sm:$0xff]  }
 0x7d5   :  { %v3759_v8 = vunpack.c.l.bf16 %v3899_v44  ;;  %v3760_v61 = vunpack.c.h.bf16 %v3899_v44  ;;  %v3902_v44 = vld [vmem:[%s6194_s0 + $0x1f0] sm:$0xff]  }
 0x88e   :  { %v4168_v7 = vpop.f32.mrb[48].mxu1 }
 0x88f   :  { %v1811_v35 = vadd.f32 %v4168_v7, %v3751_v55  ;;  %v1802_v36 = vpop.f32.mrb[49].mxu1 }
 0x890   :  { %v1803_v11 = vadd.f32 %v3747_v4, %v1802_v36  ;;  %v4169_v37 = vpop.f32.mrb[50].mxu1  ;;  %v3903_v36 = vld [vmem:[%s6194_s0 + $0x1f8] sm:$0xff]  }
 0x891   :  { %v3428_v38 = vmul.f32 -1.442695, %v1811_v35  ;;  %v1814_v12 = vadd.f32 %v4169_v37, %v3752_v23  ;;  %v1805_v45 = vpop.f32.mrb[51].mxu1 }
 0x892   :  { %v3426_v6 = vmul.f32 -1.442695, %v1803_v11  ;;  %v1806_v9 = vadd.f32 %v3748_v10, %v1805_v45  ;;  %v3775_v45 = vunpack.c.l.bf16 %v3903_v36 }
 0x893   :  { %4701 = vpow2.f32 %v3428_v38  ;;  %v3429_v32 = vmul.f32 -1.442695, %v1814_v12 }
 0x894   :  { %4703 = vpow2.f32 %v3426_v6  ;;  %v3427_v13 = vmul.f32 -1.442695, %v1806_v9  ;;  %v3771_v6 = vunpack.c.l.bf16 %v3902_v44 }
 0x895   :  { %4705 = vpow2.f32 %v3429_v32 }
 0x896   :  { %4707 = vpow2.f32 %v3427_v13  ;;  %v4172_v62 = vpop.f32.mrb[52].mxu1  ;;  %v3776_v13 = vunpack.c.h.bf16 %v3903_v36 }
 0x897   :  { %v1827_v28 = vadd.f32 %v4172_v62, %v3759_v8  ;;  %v1818_v57 = vpop.f32.mrb[53].mxu1 }
 0x898   :  { %v1819_v29 = vadd.f32 %v3755_v16, %v1818_v57  ;;  %v4173_v31 = vpop.f32.mrb[54].mxu1 }
 0x899   :  { %v3432_v17 = vmul.f32 -1.442695, %v1827_v28  ;;  %v1830_v18 = vadd.f32 %v4173_v31, %v3760_v61  ;;  %v1821_v20 = vpop.f32.mrb[55].mxu1 }
 0x89a   :  { %v3430_v24 = vmul.f32 -1.442695, %v1819_v29  ;;  %v1822_v25 = vadd.f32 %v3756_v27, %v1821_v20  ;;  %v3772_v27 = vunpack.c.h.bf16 %v3902_v44 }
 0x89b   :  { %4709 = vpow2.f32 %v3432_v17  ;;  %v3433_v26 = vmul.f32 -1.442695, %v1830_v18 }
 0x89c   :  { %4711 = vpow2.f32 %v3430_v24  ;;  %v3431_v56 = vmul.f32 -1.442695, %v1822_v25 }
 0x89d   :  { %v4702_v59 = vpop.eup %4701  ;;  %4713 = vpow2.f32 %v3433_v26 }
 0x89e   :  { %v4704_v49 = vpop.eup %4703  ;;  %v1903_v50 = vadd.f32 1.0, %v4702_v59  ;;  %4715 = vpow2.f32 %v3431_v56  ;;  %v4176_v51 = vpop.f32.mrb[56].mxu1 }
 0x89f   :  { %v4706_v15 = vpop.eup %4705  ;;  %v1901_v34 = vadd.f32 1.0, %v4704_v49  ;;  %v1843_v53 = vadd.f32 %v4176_v51, %v3767_v47  ;;  %v1834_v2 = vpop.f32.mrb[57].mxu1 }
 0x8a0   :  { %v4708_v3 = vpop.eup %4707  ;;  %4717 = vrcp.f32 %v1903_v50  ;;  %v1904_v54 = vadd.f32 1.0, %v4706_v15  ;;  %v1835_v55 = vadd.f32 %v3763_v14, %v1834_v2  ;;  %v4177_v4 = vpop.f32.mrb[58].mxu1 }
 0x8a1   :  { %4719 = vrcp.f32 %v1901_v34  ;;  %v1902_v23 = vadd.f32 1.0, %v4708_v3  ;;  %v3436_v7 = vmul.f32 -1.442695, %v1843_v53  ;;  %v1846_v10 = vadd.f32 %v4177_v4, %v3768_v48  ;;  %v1837_v35 = vpop.f32.mrb[59].mxu1 }
 0x8a2   :  { %4721 = vrcp.f32 %v1904_v54  ;;  %v3434_v11 = vmul.f32 -1.442695, %v1835_v55  ;;  %v1838_v37 = vadd.f32 %v3764_v52, %v1837_v35 }
 0x8a3   :  { %4723 = vrcp.f32 %v1902_v23  ;;  %v3437_v38 = vmul.f32 -1.442695, %v1846_v10 }
 0x8a4   :  { %4725 = vpow2.f32 %v3436_v7  ;;  %v3435_v12 = vmul.f32 -1.442695, %v1838_v37 }
 0x8a5   :  { %v4710_v46 = vpop.eup %4709  ;;  %4727 = vpow2.f32 %v3434_v11 }
 0x8a6   :  { %v4712_v9 = vpop.eup %4711  ;;  %v1907_v32 = vadd.f32 1.0, %v4710_v46  ;;  %4729 = vpow2.f32 %v3437_v38  ;;  %v4180_v8 = vpop.f32.mrb[60].mxu1 }
 0x8a7   :  { %v4714_v16 = vpop.eup %4713  ;;  %v1905_v61 = vadd.f32 1.0, %v4712_v9  ;;  %4731 = vpow2.f32 %v3435_v12  ;;  %v1850_v62 = vpop.f32.mrb[61].mxu1  ;;  %v1859_v29 = vadd.f32 %v4180_v8, %v3775_v45 }
 0x8a8   :  { %v4716_v28 = vpop.eup %4715  ;;  %4733 = vrcp.f32 %v1907_v32  ;;  %v1908_v57 = vadd.f32 1.0, %v4714_v16  ;;  %v4181_v31 = vpop.f32.mrb[62].mxu1  ;;  %v1851_v17 = vadd.f32 %v3771_v6, %v1850_v62 }
 0x8a9   :  { %4735 = vrcp.f32 %v1905_v61  ;;  %v1906_v60 = vadd.f32 1.0, %v4716_v28  ;;  %v1853_v18 = vpop.f32.mrb[63].mxu1  ;;  %v1862_v22 = vadd.f32 %v4181_v31, %v3776_v13 }
 0x8aa   :  { %v4718_v20 = vpop.eup %4717  ;;  %4737 = vrcp.f32 %v1908_v57  ;;  %v1854_v25 = vadd.f32 %v3772_v27, %v1853_v18  ;;  %v3517_v27 = vsel %vm2440_vm9, 1.0, %v6200_v33 }
 0x8ab   :  { %v4720_v24 = vpop.eup %4719  ;;  %4739 = vrcp.f32 %v1906_v60 }
 0x8ac   :  { %v4722_v26 = vpop.eup %4721  ;;  %4741 = vtanh.f32 %v1859_v29  ;;  %v2544_v29 = vrot.slane %v3517_v27, %v5094_v30 }
 0x8ad   :  { %v4724_v47 = vpop.eup %4723  ;;  %4743 = vtanh.f32 %v1851_v17 }
 0x8ae   :  { %v4726_v56 = vpop.eup %4725  ;;  %4745 = vtanh.f32 %v1862_v22 }
 0x8af   :  { %v4728_v14 = vpop.eup %4727  ;;  %4747 = vtanh.f32 %v1854_v25  ;;  %v1911_v51 = vadd.f32 1.0, %v4726_v56 }
 0x8b0   :  { %v4730_v59 = vpop.eup %4729  ;;  %v1909_v15 = vadd.f32 1.0, %v4728_v14 }
 0x8b1   :  { %v4732_v48 = vpop.eup %4731  ;;  %v1912_v2 = vadd.f32 1.0, %v4730_v59  ;;  %4749 = vrcp.f32 %v1911_v51 }
 0x8b2   :  { %v4734_v49 = vpop.eup %4733  ;;  %v1910_v55 = vadd.f32 1.0, %v4732_v48  ;;  %4751 = vrcp.f32 %v1909_v15  ;;  %v3907_v48 = vld [vmem:[%s6194_s0 + $0x218] sm:$0xff]  }
 0x8b3   :  { %v4736_v50 = vpop.eup %4735  ;;  %v1943_v53 = vmul.f32 %v4734_v49, %v5570_v63  ;;  %4753 = vrcp.f32 %v1912_v2  ;;  %v3791_v2 = vunpack.c.l.bf16 %v3907_v48 }
 0x8b4   :  { %v4738_v52 = vpop.eup %4737  ;;  %v1941_v54 = vmul.f32 %v4736_v50, %v5572_v0  ;;  %4755 = vrcp.f32 %v1910_v55  ;;  %v3792_v55 = vunpack.c.h.bf16 %v3907_v48 }
 0x8b5   :  { %v4740_v34 = vpop.eup %4739  ;;  %v1944_v23 = vmul.f32 %v4738_v52, %v5575_v5  ;;  %v3906_v52 = vld [vmem:[%s6194_s0 + $0x210] sm:$0xff]  }
 0x8b6   :  { %v4742_v3 = vpop.eup %4741  ;;  %v1942_v35 = vmul.f32 %v4740_v34, %v5578_v58 }
 0x8b7   :  { %v4744_v4 = vpop.eup %4743  ;;  %v1947_v7 = vmul.f32 %v4742_v3, %v4718_v20 }
 0x8b8   :  { %v4746_v10 = vpop.eup %4745  ;;  %v1945_v36 = vmul.f32 %v4744_v4, %v4720_v24 }
 0x8b9   :  { %v4748_v11 = vpop.eup %4747  ;;  %v5642_v37 = vadd.f32 %v1947_v7, %v1943_v53  ;;  %v1948_v63 = vmul.f32 %v4746_v10, %v4722_v26 }
 0x8ba   :  { %v5644_v44 = vadd.f32 %v1945_v36, %v1941_v54  ;;  %v1946_v0 = vmul.f32 %v4748_v11, %v4724_v47  ;;  %v3787_v54 = vunpack.c.l.bf16 %v3906_v52  ;;  %v3909_v11 = vld [vmem:[%s6194_s0 + $0x228] sm:$0xff]  }
 0x8bb   :  { %4757 = vtanh.f32 %v5642_v37  ;;  %v5647_v38 = vadd.f32 %v1948_v63, %v1944_v23  ;;  %v4750_v58 = vpop.eup %4749  ;;  %v3788_v23 = vunpack.c.h.bf16 %v3906_v52 }
 0x8bc   :  { %4759 = vtanh.f32 %v5644_v44  ;;  %v5650_v5 = vadd.f32 %v1946_v0, %v1942_v35  ;;  %v4752_v12 = vpop.eup %4751 }
 0x8bd   :  { %4761 = vtanh.f32 %v5647_v38  ;;  %v4754_v45 = vpop.eup %4753 }
 0x8be   :  { %4763 = vtanh.f32 %v5650_v5  ;;  %v4756_v46 = vpop.eup %4755 }
 0x8c5   :  { %v4758_v6 = vpop.eup %4757 }
 0x8c6   :  { %v4760_v9 = vpop.eup %4759  ;;  %v1959_v32 = vmul.f32 %v4758_v6, %v4750_v58 }
 0x8c7   :  { %v4762_v8 = vpop.eup %4761  ;;  %v1957_v13 = vmul.f32 %v4760_v9, %v4752_v12  ;;  %v3908_v12 = vld [vmem:[%s6194_s0 + $0x220] sm:$0xff]   ;;  %v3799_v9 = vunpack.c.l.bf16 %v3909_v11 }
 0x8c8   :  { %v4764_v16 = vpop.eup %4763  ;;  %v1960_v61 = vmul.f32 %v4762_v8, %v4754_v45  ;;  %1964 = vst.msk [vmem:[#allocation2 + $0xf0] sm:$0xff] %vm330_vm1, %v1959_v32  ;;  %v3795_v8 = vunpack.c.l.bf16 %v3908_v12 }
 0x8c9   :  { %v1958_v62 = vmul.f32 %v4764_v16, %v4756_v46  ;;  %1962 = vst.msk [vmem:[#allocation2 + $0xe0] sm:$0xff] %vm330_vm1, %v1957_v13  ;;  %v3800_v16 = vunpack.c.h.bf16 %v3909_v11 }
 0x8ca   :  { %1965 = vst.msk [vmem:[#allocation2 + $0xf8] sm:$0xff] %vm330_vm1, %v1960_v61  ;;  %v1967_v28 = vpack.c.bf16 %v1960_v61, %v1959_v32 }
 0x8cb   :  { %1963 = vst.msk [vmem:[#allocation2 + $0xe8] sm:$0xff] %vm330_vm1, %v1958_v62  ;;  %v1966_v57 = vpack.c.bf16 %v1958_v62, %v1957_v13 }
 0x8cd   :  { %4182 = vmatprep.subr.bf16.mxu0 %v1966_v57 }
 0x8ce   :  { %4183 = vmatpush3.bf16.msra.mxu0 %v1966_v57 }
 0x8cf   :  { %4184 = vmatprep.subr.bf16.mxu0 %v1967_v28  ;;  %v2493_v31 = vld [vmem:[#allocation2 + $0xf0] sm:$0xff] }
 0x8d0   :  { %v2491_v60 = vld [vmem:[#allocation2 + $0xe0] sm:$0xff]  ;;  %v2593_v17 = vmul.f32 %v2544_v29, %v2493_v31 }
 0x8d1   :  { %v2591_v18 = vmul.f32 %v2544_v29, %v2491_v60  ;;  %v2494_v20 = vld [vmem:[#allocation2 + $0xf8] sm:$0xff] }
 0x8d2   :  { %v2492_v22 = vld [vmem:[#allocation2 + $0xe8] sm:$0xff]  ;;  %v2594_v24 = vmul.f32 %v2544_v29, %v2494_v20  ;;  %2633 = vst.msk [vmem:[#allocation2 + $0xf0] sm:$0xff] %vm330_vm1, %v2593_v17  ;;  %4185 = vmatpush3.bf16.msra.mxu0 %v1967_v28  ;;  %v3796_v28 = vunpack.c.h.bf16 %v3908_v12 }
 0x8d3   :  { %v2592_v25 = vmul.f32 %v2544_v29, %v2492_v22  ;;  %2631 = vst.msk [vmem:[#allocation2 + $0xe0] sm:$0xff] %vm330_vm1, %v2591_v18 }
 0x8d4   :  { %2634 = vst.msk [vmem:[#allocation2 + $0xf8] sm:$0xff] %vm330_vm1, %v2594_v24 }
 0x8d5   :  { %2632 = vst.msk [vmem:[#allocation2 + $0xe8] sm:$0xff] %vm330_vm1, %v2592_v25  ;;  %4187 = vmatmul.mubr.msk.bf16.vlgmr.msra.gmra.mrb[64].mxu0 %vm112_vm0, %v5489_v1  ;;  %v3073_v1 = vld [vmem:[%s6196_s5] sm:$0x7] }
 0x8d6   :  { %4190 = vmatprep.mubr.msk.bf16.mxu0 %vm112_vm0, %v5496_v39  ;;  %3076 = vperm.xlu0 %4243, %v3073_v1   ;;  %v3905_v39 = vld [vmem:[%s6194_s0 + $0x208] sm:$0xff]  }
 0x8d7   :  { %v3784_v26 = vunpack.c.h.bf16 %v3905_v39 }
 0x8dd   :  { %4191 = vmatmul.mubr.msk.bf16.gmra.mrb[68].mxu0 %vm112_vm0, %v5503_v21  ;;  %v3904_v21 = vld [vmem:[%s6194_s0 + $0x200] sm:$0xff]  }
 0x8de   :  { %4194 = vmatprep.mubr.msk.bf16.mxu0 %vm112_vm0, %v5510_v40  ;;  %v3783_v40 = vunpack.c.l.bf16 %v3905_v39  ;;  %v3780_v47 = vunpack.c.h.bf16 %v3904_v21 }
 0x8e5   :  { %4195 = vmatmul.mubr.msk.bf16.gmra.mrb[72].mxu0 %vm112_vm0, %v5517_v41  ;;  %v3779_v41 = vunpack.c.l.bf16 %v3904_v21  ;;  %v3911_v21 = vld [vmem:[%s6194_s0 + $0x238] sm:$0xff]  }
 0x8e6   :  { %4198 = vmatprep.mubr.msk.bf16.mxu0 %vm112_vm0, %v5524_v42 }
 0x8ed   :  { %4199 = vmatmul.mubr.msk.bf16.gmra.mrb[76].mxu0 %vm112_vm0, %v5531_v43 }
 0x9a8   :  { %v4188_v42 = vpop.f32.mrb[64].mxu0 }
 0x9a9   :  { %v2044_v56 = vadd.f32 %v4188_v42, %v3783_v40  ;;  %v2035_v43 = vpop.f32.mrb[65].mxu0 }
 0x9aa   :  { %v2036_v14 = vadd.f32 %v3779_v41, %v2035_v43  ;;  %v4189_v59 = vpop.f32.mrb[66].mxu0 }
 0x9ab   :  { %v3464_v49 = vmul.f32 -1.442695, %v2044_v56  ;;  %v2047_v50 = vadd.f32 %v4189_v59, %v3784_v26  ;;  %v2038_v51 = vpop.f32.mrb[67].mxu0  ;;  %v3910_v26 = vld [vmem:[%s6194_s0 + $0x230] sm:$0xff]   ;;  %v3807_v56 = vunpack.c.l.bf16 %v3911_v21 }
 0x9ac   :  { %v3462_v15 = vmul.f32 -1.442695, %v2036_v14  ;;  %v2039_v34 = vadd.f32 %v3780_v47, %v2038_v51  ;;  %v3803_v14 = vunpack.c.l.bf16 %v3910_v26 }
 0x9ad   :  { %4765 = vpow2.f32 %v3464_v49  ;;  %v3465_v53 = vmul.f32 -1.442695, %v2047_v50  ;;  %v3808_v50 = vunpack.c.h.bf16 %v3911_v21 }
 0x9ae   :  { %4767 = vpow2.f32 %v3462_v15  ;;  %v3463_v3 = vmul.f32 -1.442695, %v2039_v34  ;;  %v3804_v34 = vunpack.c.h.bf16 %v3910_v26 }
 0x9af   :  { %4769 = vpow2.f32 %v3465_v53 }
 0x9b0   :  { %4771 = vpow2.f32 %v3463_v3  ;;  %v4192_v4 = vpop.f32.mrb[68].mxu0 }
 0x9b1   :  { %v2060_v7 = vadd.f32 %v4192_v4, %v3791_v2  ;;  %v2051_v10 = vpop.f32.mrb[69].mxu0 }
 0x9b2   :  { %v2052_v35 = vadd.f32 %v3787_v54, %v2051_v10  ;;  %v4193_v36 = vpop.f32.mrb[70].mxu0 }
 0x9b3   :  { %v3468_v63 = vmul.f32 -1.442695, %v2060_v7  ;;  %v2063_v0 = vadd.f32 %v4193_v36, %v3792_v55  ;;  %v2054_v58 = vpop.f32.mrb[71].mxu0 }
 0x9b4   :  { %v3466_v45 = vmul.f32 -1.442695, %v2052_v35  ;;  %v2055_v46 = vadd.f32 %v3788_v23, %v2054_v58 }
 0x9b5   :  { %4773 = vpow2.f32 %v3468_v63  ;;  %v3469_v6 = vmul.f32 -1.442695, %v2063_v0 }
 0x9b6   :  { %4775 = vpow2.f32 %v3466_v45  ;;  %v3467_v32 = vmul.f32 -1.442695, %v2055_v46 }
 0x9b7   :  { %v4766_v13 = vpop.eup %4765  ;;  %4777 = vpow2.f32 %v3469_v6 }
 0x9b8   :  { %v4768_v61 = vpop.eup %4767  ;;  %v2136_v62 = vadd.f32 1.0, %v4766_v13  ;;  %4779 = vpow2.f32 %v3467_v32  ;;  %v4196_v27 = vpop.f32.mrb[72].mxu0 }
 0x9b9   :  { %v4770_v57 = vpop.eup %4769  ;;  %v2134_v29 = vadd.f32 1.0, %v4768_v61  ;;  %v2076_v31 = vadd.f32 %v4196_v27, %v3799_v9  ;;  %v2067_v60 = vpop.f32.mrb[73].mxu0 }
 0x9ba   :  { %v4772_v17 = vpop.eup %4771  ;;  %4781 = vrcp.f32 %v2136_v62  ;;  %v2137_v18 = vadd.f32 1.0, %v4770_v57  ;;  %v2068_v20 = vadd.f32 %v3795_v8, %v2067_v60  ;;  %v4197_v22 = vpop.f32.mrb[74].mxu0 }
 0x9bb   :  { %4783 = vrcp.f32 %v2134_v29  ;;  %v2135_v24 = vadd.f32 1.0, %v4772_v17  ;;  %v3472_v25 = vmul.f32 -1.442695, %v2076_v31  ;;  %v2079_v1 = vadd.f32 %v4197_v22, %v3800_v16  ;;  %v2070_v39 = vpop.f32.mrb[75].mxu0 }
 0x9bc   :  { %4785 = vrcp.f32 %v2137_v18  ;;  %v3470_v40 = vmul.f32 -1.442695, %v2068_v20  ;;  %v2071_v41 = vadd.f32 %v3796_v28, %v2070_v39 }
 0x9bd   :  { %4787 = vrcp.f32 %v2135_v24  ;;  %v3473_v42 = vmul.f32 -1.442695, %v2079_v1 }
 0x9be   :  { %4789 = vpow2.f32 %v3472_v25  ;;  %v3471_v47 = vmul.f32 -1.442695, %v2071_v41 }
 0x9bf   :  { %v4774_v43 = vpop.eup %4773  ;;  %4791 = vpow2.f32 %v3470_v40 }
 0x9c0   :  { %v4776_v59 = vpop.eup %4775  ;;  %v2140_v48 = vadd.f32 1.0, %v4774_v43  ;;  %4793 = vpow2.f32 %v3473_v42  ;;  %v4200_v49 = vpop.f32.mrb[76].mxu0 }
 0x9c1   :  { %v4778_v51 = vpop.eup %4777  ;;  %v2138_v52 = vadd.f32 1.0, %v4776_v59  ;;  %4795 = vpow2.f32 %v3471_v47  ;;  %v2083_v15 = vpop.f32.mrb[77].mxu0  ;;  %v2092_v3 = vadd.f32 %v4200_v49, %v3807_v56  ;;  %v3518_v59 = vsel %vm2441_vm10, 1.0, %v6200_v33 }
 0x9c2   :  { %v4780_v53 = vpop.eup %4779  ;;  %4797 = vrcp.f32 %v2140_v48  ;;  %v2141_v2 = vadd.f32 1.0, %v4778_v51  ;;  %v4201_v54 = vpop.f32.mrb[78].mxu0  ;;  %v2084_v4 = vadd.f32 %v3803_v14, %v2083_v15  ;;  %v2548_v19 = vrot.slane %v3518_v59, %v5094_v30 }
 0x9c3   :  { %4799 = vrcp.f32 %v2138_v52  ;;  %v2139_v55 = vadd.f32 1.0, %v4780_v53  ;;  %v2086_v23 = vpop.f32.mrb[79].mxu0  ;;  %v2095_v10 = vadd.f32 %v4201_v54, %v3808_v50  ;;  %v4933_v54 = vld [vmem:[%s6192_s2 + $0x8] sm:$0xff]  }
 0x9c4   :  { %v4782_v7 = vpop.eup %4781  ;;  %4801 = vrcp.f32 %v2141_v2  ;;  %v2087_v36 = vadd.f32 %v3804_v34, %v2086_v23  ;;  %v4936_v23 = vld [vmem:[%s6192_s2 + $0x20] sm:$0xff]  }
 0x9c5   :  { %v4784_v35 = vpop.eup %4783  ;;  %4803 = vrcp.f32 %v2139_v55  ;;  %v4934_v55 = vld [vmem:[%s6192_s2 + $0x10] sm:$0xff]  }
 0x9c6   :  { %v4786_v11 = vpop.eup %4785  ;;  %4805 = vtanh.f32 %v2092_v3 }
 0x9c7   :  { %v4788_v63 = vpop.eup %4787  ;;  %4807 = vtanh.f32 %v2084_v4  ;;  %v4935_v4 = vld [vmem:[%s6192_s2 + $0x18] sm:$0xff]  }
 0x9c8   :  { %v4790_v0 = vpop.eup %4789  ;;  %4809 = vtanh.f32 %v2095_v10  ;;  %v4938_v10 = vld [vmem:[%s6192_s2 + $0x30] sm:$0xff]  }
 0x9c9   :  { %v4792_v58 = vpop.eup %4791  ;;  %4811 = vtanh.f32 %v2087_v36  ;;  %v2144_v9 = vadd.f32 1.0, %v4790_v0  ;;  %v6199_v36 = vmov 0.0|0.0  }
 0x9ca   :  { %v4794_v12 = vpop.eup %4793  ;;  %v2142_v8 = vadd.f32 1.0, %v4792_v58  ;;  %4233 = vmatprep.subr.bf16.mxu0 %v6199_v36 }
 0x9cb   :  { %v4796_v45 = vpop.eup %4795  ;;  %v2145_v61 = vadd.f32 1.0, %v4794_v12  ;;  %4813 = vrcp.f32 %v2144_v9 }
 0x9cc   :  { %v4798_v46 = vpop.eup %4797  ;;  %v2143_v28 = vadd.f32 1.0, %v4796_v45  ;;  %4815 = vrcp.f32 %v2142_v8 }
 0x9cd   :  { %v4800_v6 = vpop.eup %4799  ;;  %v2176_v16 = vmul.f32 %v4798_v46, %v5642_v37  ;;  %4817 = vrcp.f32 %v2145_v61 }
 0x9ce   :  { %v4802_v32 = vpop.eup %4801  ;;  %v2174_v27 = vmul.f32 %v4800_v6, %v5644_v44  ;;  %4819 = vrcp.f32 %v2143_v28 }
 0x9cf   :  { %v4804_v13 = vpop.eup %4803  ;;  %v2177_v29 = vmul.f32 %v4802_v32, %v5647_v38 }
 0x9d0   :  { %v4806_v62 = vpop.eup %4805  ;;  %v2175_v17 = vmul.f32 %v4804_v13, %v5650_v5  ;;  %v3915_v13 = vld [vmem:[%s6194_s0 + $0x258] sm:$0xff]  }
 0x9d1   :  { %v4808_v57 = vpop.eup %4807  ;;  %v2180_v31 = vmul.f32 %v4806_v62, %v4782_v7  ;;  %v4937_v7 = vld [vmem:[%s6192_s2 + $0x28] sm:$0xff]  }
 0x9d2   :  { %v4810_v60 = vpop.eup %4809  ;;  %v2178_v18 = vmul.f32 %v4808_v57, %v4784_v35  ;;  %v4939_v35 = vld [vmem:[%s6192_s2 + $0x38] sm:$0xff]  }
 0x9d3   :  { %v4812_v20 = vpop.eup %4811  ;;  %v5710_v22 = vadd.f32 %v2180_v31, %v2176_v16  ;;  %v2181_v37 = vmul.f32 %v4810_v60, %v4786_v11  ;;  %v3913_v11 = vld [vmem:[%s6194_s0 + $0x248] sm:$0xff]   ;;  %v3823_v31 = vunpack.c.l.bf16 %v3915_v13 }
 0x9d4   :  { %v5712_v24 = vadd.f32 %v2178_v18, %v2174_v27  ;;  %v2179_v44 = vmul.f32 %v4812_v20, %v4788_v63  ;;  %v3912_v63 = vld [vmem:[%s6194_s0 + $0x240] sm:$0xff]   ;;  %v3815_v0 = vunpack.c.l.bf16 %v3913_v11  ;;  %v3816_v12 = vunpack.c.h.bf16 %v3913_v11  ;;  %v3914_v27 = vld [vmem:[%s6194_s0 + $0x250] sm:$0xff]  }
 0x9d5   :  { %4821 = vtanh.f32 %v5710_v22  ;;  %v5715_v25 = vadd.f32 %v2181_v37, %v2177_v29  ;;  %v4814_v5 = vpop.eup %4813  ;;  %v3811_v58 = vunpack.c.l.bf16 %v3912_v63  ;;  %v3812_v46 = vunpack.c.h.bf16 %v3912_v63  ;;  %v3919_v63 = vld [vmem:[%s6194_s0 + $0x278] sm:$0xff]  }
 0x9d6   :  { %4823 = vtanh.f32 %v5712_v24  ;;  %v5718_v38 = vadd.f32 %v2179_v44, %v2175_v17  ;;  %v4816_v1 = vpop.eup %4815  ;;  %v3819_v17 = vunpack.c.l.bf16 %v3914_v27  ;;  %v3824_v18 = vunpack.c.h.bf16 %v3915_v13 }
 0x9d7   :  { %4825 = vtanh.f32 %v5715_v25  ;;  %v4818_v39 = vpop.eup %4817  ;;  %v3820_v37 = vunpack.c.h.bf16 %v3914_v27 }
 0x9d8   :  { %4827 = vtanh.f32 %v5718_v38  ;;  %v4820_v21 = vpop.eup %4819 }
 0x9df   :  { %v4822_v40 = vpop.eup %4821 }
 0x9e0   :  { %v4824_v41 = vpop.eup %4823  ;;  %v2192_v26 = vmul.f32 %v4822_v40, %v4814_v5 }
 0x9e1   :  { %v4826_v42 = vpop.eup %4825  ;;  %v2190_v47 = vmul.f32 %v4824_v41, %v4816_v1 }
 0x9e2   :  { %v4828_v56 = vpop.eup %4827  ;;  %v2193_v43 = vmul.f32 %v4826_v42, %v4818_v39  ;;  %2197 = vst.msk [vmem:[#allocation2 + $0x110] sm:$0xff] %vm330_vm1, %v2192_v26  ;;  %v3916_v42 = vld [vmem:[%s6194_s0 + $0x260] sm:$0xff]  }
 0x9e3   :  { %v2191_v14 = vmul.f32 %v4828_v56, %v4820_v21  ;;  %2195 = vst.msk [vmem:[#allocation2 + $0x100] sm:$0xff] %vm330_vm1, %v2190_v47  ;;  %v3917_v21 = vld [vmem:[%s6194_s0 + $0x268] sm:$0xff]  }
 0x9e4   :  { %2198 = vst.msk [vmem:[#allocation2 + $0x118] sm:$0xff] %vm330_vm1, %v2193_v43  ;;  %v2200_v48 = vpack.c.bf16 %v2193_v43, %v2192_v26 }
 0x9e5   :  { %2196 = vst.msk [vmem:[#allocation2 + $0x108] sm:$0xff] %vm330_vm1, %v2191_v14  ;;  %v2199_v49 = vpack.c.bf16 %v2191_v14, %v2190_v47  ;;  %v3831_v14 = vunpack.c.l.bf16 %v3917_v21 }
 0x9e7   :  { %4202 = vmatprep.subr.bf16.mxu1 %v2199_v49 }
 0x9e8   :  { %4203 = vmatpush3.bf16.msra.mxu1 %v2199_v49 }
 0x9e9   :  { %4204 = vmatprep.subr.bf16.mxu1 %v2200_v48  ;;  %v2497_v50 = vld [vmem:[#allocation2 + $0x110] sm:$0xff] }
 0x9ea   :  { %v2495_v51 = vld [vmem:[#allocation2 + $0x100] sm:$0xff]  ;;  %v2597_v52 = vmul.f32 %v2548_v19, %v2497_v50 }
 0x9eb   :  { %v2595_v15 = vmul.f32 %v2548_v19, %v2495_v51  ;;  %v2498_v34 = vld [vmem:[#allocation2 + $0x118] sm:$0xff] }
 0x9ec   :  { %v2496_v53 = vld [vmem:[#allocation2 + $0x108] sm:$0xff]  ;;  %v2598_v2 = vmul.f32 %v2548_v19, %v2498_v34  ;;  %2637 = vst.msk [vmem:[#allocation2 + $0x110] sm:$0xff] %vm330_vm1, %v2597_v52  ;;  %4205 = vmatpush3.bf16.msra.mxu1 %v2200_v48  ;;  %v3827_v48 = vunpack.c.l.bf16 %v3916_v42 }
 0x9ed   :  { %v2596_v3 = vmul.f32 %v2548_v19, %v2496_v53  ;;  %2635 = vst.msk [vmem:[#allocation2 + $0x100] sm:$0xff] %vm330_vm1, %v2595_v15  ;;  %v3832_v19 = vunpack.c.h.bf16 %v3917_v21  ;;  %v3828_v15 = vunpack.c.h.bf16 %v3916_v42  ;;  %v5792_v42 = vpop.permute.xlu1 %2699 }
 0x9ee   :  { %2638 = vst.msk [vmem:[#allocation2 + $0x118] sm:$0xff] %vm330_vm1, %v2598_v2 }
 0x9ef   :  { %2636 = vst.msk [vmem:[#allocation2 + $0x108] sm:$0xff] %vm330_vm1, %v2596_v3  ;;  %4207 = vmatmul.mubr.msk.bf16.vlgmr.msra.gmra.mrb[64].mxu1 %vm112_vm0, %v4933_v54 }
 0x9f0   :  { %4210 = vmatprep.mubr.msk.bf16.mxu1 %vm112_vm0, %v4934_v55 }
 0x9f7   :  { %4211 = vmatmul.mubr.msk.bf16.gmra.mrb[68].mxu1 %vm112_vm0, %v4935_v4 }
 0x9f8   :  { %4214 = vmatprep.mubr.msk.bf16.mxu1 %vm112_vm0, %v4936_v23 }
 0x9ff   :  { %4215 = vmatmul.mubr.msk.bf16.gmra.mrb[72].mxu1 %vm112_vm0, %v4937_v7 }
 0xa00   :  { %4218 = vmatprep.mubr.msk.bf16.mxu1 %vm112_vm0, %v4938_v10 }
 0xa07   :  { %4219 = vmatmul.mubr.msk.bf16.gmra.mrb[76].mxu1 %vm112_vm0, %v4939_v35 }
 0xac2   :  { %v4208_v45 = vpop.f32.mrb[64].mxu1 }
 0xac3   :  { %v2277_v6 = vadd.f32 %v4208_v45, %v3815_v0  ;;  %v2268_v9 = vpop.f32.mrb[65].mxu1 }
 0xac4   :  { %v2269_v32 = vadd.f32 %v3811_v58, %v2268_v9  ;;  %v4209_v8 = vpop.f32.mrb[66].mxu1 }
 0xac5   :  { %v3500_v16 = vmul.f32 -1.442695, %v2277_v6  ;;  %v2280_v61 = vadd.f32 %v4209_v8, %v3816_v12  ;;  %v2271_v62 = vpop.f32.mrb[67].mxu1  ;;  %v3918_v12 = vld [vmem:[%s6194_s0 + $0x270] sm:$0xff]   ;;  %v3839_v6 = vunpack.c.l.bf16 %v3919_v63 }
 0xac6   :  { %v3498_v28 = vmul.f32 -1.442695, %v2269_v32  ;;  %v2272_v57 = vadd.f32 %v3812_v46, %v2271_v62  ;;  %v5786_v32 = vpop.permute.xlu0 %2689  ;;  %v3835_v8 = vunpack.c.l.bf16 %v3918_v12  ;;  %v3840_v62 = vunpack.c.h.bf16 %v3919_v63 }
 0xac7   :  { %4829 = vpow2.f32 %v3500_v16  ;;  %v3501_v29 = vmul.f32 -1.442695, %v2280_v61 }
 0xac8   :  { %4831 = vpow2.f32 %v3498_v28  ;;  %v3499_v60 = vmul.f32 -1.442695, %v2272_v57 }
 0xac9   :  { %4833 = vpow2.f32 %v3501_v29  ;;  %v3836_v29 = vunpack.c.h.bf16 %v3918_v12 }
 0xaca   :  { %4835 = vpow2.f32 %v3499_v60  ;;  %v4212_v20 = vpop.f32.mrb[68].mxu1  ;;  %v5788_v21 = vpop.permute.xlu0 %2694 }
 0xacb   :  { %v2293_v44 = vadd.f32 %v4212_v20, %v3823_v31  ;;  %v2284_v5 = vpop.f32.mrb[69].mxu1 }
 0xacc   :  { %v2285_v1 = vadd.f32 %v3819_v17, %v2284_v5  ;;  %v4213_v39 = vpop.f32.mrb[70].mxu1 }
 0xacd   :  { %v3504_v40 = vmul.f32 -1.442695, %v2293_v44  ;;  %v2296_v41 = vadd.f32 %v4213_v39, %v3824_v18  ;;  %v2287_v26 = vpop.f32.mrb[71].mxu1 }
 0xace   :  { %v3502_v47 = vmul.f32 -1.442695, %v2285_v1  ;;  %v2288_v56 = vadd.f32 %v3820_v37, %v2287_v26 }
 0xacf   :  { %4837 = vpow2.f32 %v3504_v40  ;;  %v3505_v43 = vmul.f32 -1.442695, %v2296_v41  ;;  %v5790_v41 = vld [vmem:[#allocation2 + $0x8] sm:$0xff] }
 0xad0   :  { %4839 = vpow2.f32 %v3502_v47  ;;  %v3503_v59 = vmul.f32 -1.442695, %v2288_v56  ;;  %v5794_v56 = vld [vmem:[#allocation2 + $0x10] sm:$0xff] }
 0xad1   :  { %v4830_v49 = vpop.eup %4829  ;;  %4841 = vpow2.f32 %v3505_v43  ;;  %v5796_v43 = vld [vmem:[#allocation2] sm:$0xff] }
 0xad2   :  { %v4832_v50 = vpop.eup %4831  ;;  %v2369_v51 = vadd.f32 1.0, %v4830_v49  ;;  %4843 = vpow2.f32 %v3503_v59  ;;  %v4216_v52 = vpop.f32.mrb[72].mxu1  ;;  %v2708_v59 = vmul.f32 %v5788_v21, %v5790_v41  ;;  %v5800_v49 = vld [vmem:[#allocation2 + $0x28] sm:$0xff] }
 0xad3   :  { %v4834_v34 = vpop.eup %4833  ;;  %v2367_v53 = vadd.f32 1.0, %v4832_v50  ;;  %v2309_v2 = vadd.f32 %v4216_v52, %v3831_v14  ;;  %v2300_v3 = vpop.f32.mrb[73].mxu1  ;;  %v2709_v50 = vmul.f32 %v5792_v42, %v5794_v56 }
 0xad4   :  { %v4836_v54 = vpop.eup %4835  ;;  %4845 = vrcp.f32 %v2369_v51  ;;  %v2370_v55 = vadd.f32 1.0, %v4834_v34  ;;  %v2301_v4 = vadd.f32 %v3827_v48, %v2300_v3  ;;  %v4217_v23 = vpop.f32.mrb[74].mxu1  ;;  %v2707_v51 = vmul.f32 %v5786_v32, %v5796_v43 }
 0xad5   :  { %4847 = vrcp.f32 %v2367_v53  ;;  %v2368_v7 = vadd.f32 1.0, %v4836_v54  ;;  %v3508_v10 = vmul.f32 -1.442695, %v2309_v2  ;;  %v2312_v35 = vadd.f32 %v4217_v23, %v3832_v19  ;;  %v2303_v11 = vpop.f32.mrb[75].mxu1  ;;  %v5808_v53 = vpop.permute.xlu1 %2704  ;;  %v5810_v2 = vld [vmem:[#allocation2 + $0x18] sm:$0xff]  ;;  %v5815_v23 = vld [vmem:[#allocation2 + $0x30] sm:$0xff] }
 0xad6   :  { %4849 = vrcp.f32 %v2370_v55  ;;  %v3506_v0 = vmul.f32 -1.442695, %v2301_v4  ;;  %v2304_v58 = vadd.f32 %v3828_v15, %v2303_v11  ;;  %v5806_v15 = vld [vmem:[#allocation2 + $0x20] sm:$0xff]  ;;  %6218 = vst [vmem:[#allocation3_spill] sm:$0xff] %v5810_v2  ;;  %v2712_v3 = vmul.f32 %v5788_v21, %v5800_v49  ;;  %v5818_v11 = vld [vmem:[#allocation2 + $0x48] sm:$0xff] }
 0xad7   :  { %4851 = vrcp.f32 %v2368_v7  ;;  %v3509_v45 = vmul.f32 -1.442695, %v2312_v35  ;;  %v2748_v54 = vsel %vm330_vm1, %v2708_v59, 0.0  ;;  %v2711_v63 = vmul.f32 %v5786_v32, %v5806_v15 }
 0xad8   :  { %4853 = vpow2.f32 %v3508_v10  ;;  %v3507_v46 = vmul.f32 -1.442695, %v2304_v58  ;;  %v2750_v10 = vsel %vm330_vm1, %v2709_v50, 0.0  ;;  %v2710_v12 = vmul.f32 %v5808_v53, %v5810_v2  ;;  %v5966_v2 = vld [vmem:[#allocation2 + $0xf8] sm:$0xff] }
 0xad9   :  { %v4838_v9 = vpop.eup %4837  ;;  %4855 = vpow2.f32 %v3506_v0  ;;  %v2747_v0 = vsel %vm330_vm1, %v2707_v51, 0.0  ;;  %6230 = vst [vmem:[#allocation14_spill] sm:$0xff] %v5966_v2 }
 0xada   :  { %v4840_v13 = vpop.eup %4839  ;;  %v2373_v16 = vadd.f32 1.0, %v4838_v9  ;;  %4857 = vpow2.f32 %v3509_v45  ;;  %v4220_v61 = vpop.f32.mrb[76].mxu1 }
 0xadb   :  { %v4842_v27 = vpop.eup %4841  ;;  %v2371_v28 = vadd.f32 1.0, %v4840_v13  ;;  %4859 = vpow2.f32 %v3507_v46  ;;  %v2316_v57 = vpop.f32.mrb[77].mxu1  ;;  %v2325_v17 = vadd.f32 %v4220_v61, %v3839_v6  ;;  %v2749_v6 = vadd.f32 %v2748_v54, %v2747_v0  ;;  %v5860_v54 = vld [vmem:[#allocation2 + $0x88] sm:$0xff]  ;;  %v5869_v0 = vld [vmem:[#allocation2 + $0x70] sm:$0xff] }
 0xadc   :  { %v4844_v31 = vpop.eup %4843  ;;  %4861 = vrcp.f32 %v2373_v16  ;;  %v2374_v60 = vadd.f32 1.0, %v4842_v27  ;;  %v4221_v18 = vpop.f32.mrb[78].mxu1  ;;  %v2317_v37 = vadd.f32 %v3835_v8, %v2316_v57  ;;  %v5827_v16 = vld [vmem:[#allocation2 + $0x40] sm:$0xff]  ;;  %v2713_v61 = vmul.f32 %v5792_v42, %v5815_v23  ;;  %6221 = vst [vmem:[#allocation6_spill] sm:$0xff] %v5869_v0 }
 0xadd   :  { %4863 = vrcp.f32 %v2371_v28  ;;  %v2372_v20 = vadd.f32 1.0, %v4844_v31  ;;  %v2319_v44 = vpop.f32.mrb[79].mxu1  ;;  %v2328_v1 = vadd.f32 %v4221_v18, %v3840_v62  ;;  %v2761_v62 = vsel %vm330_vm1, %v2712_v3, 0.0  ;;  %v5858_v3 = vld [vmem:[#allocation2 + $0x80] sm:$0xff] }
 0xade   :  { %v4846_v5 = vpop.eup %4845  ;;  %4865 = vrcp.f32 %v2374_v60  ;;  %v2320_v40 = vadd.f32 %v3836_v29, %v2319_v44  ;;  %v2760_v60 = vsel %vm330_vm1, %v2711_v63, 0.0  ;;  %v2751_v59 = vadd.f32 %v2750_v10, %v2749_v6 }
 0xadf   :  { %v4848_v39 = vpop.eup %4847  ;;  %4867 = vrcp.f32 %v2372_v20  ;;  %v2752_v10 = vsel %vm330_vm1, %v2710_v12, 0.0  ;;  %v5882_v12 = vld [vmem:[#allocation2 + $0xc8] sm:$0xff] }
 0xae0   :  { %v4850_v26 = vpop.eup %4849  ;;  %4869 = vtanh.f32 %v2325_v17 }
 0xae1   :  { %v4852_v47 = vpop.eup %4851  ;;  %4871 = vtanh.f32 %v2317_v37  ;;  %v5837_v37 = vld [vmem:[#allocation2 + $0x38] sm:$0xff] }
 0xae2   :  { %v4854_v14 = vpop.eup %4853  ;;  %4873 = vtanh.f32 %v2328_v1  ;;  %6219 = vst [vmem:[#allocation4_spill] sm:$0xff] %v5837_v37  ;;  %v5841_v1 = vld [vmem:[#allocation2 + $0x50] sm:$0xff]  ;;  %v2714_v50 = vmul.f32 %v5808_v53, %v5837_v37 }
 0xae3   :  { %v4856_v48 = vpop.eup %4855  ;;  %4875 = vtanh.f32 %v2320_v40  ;;  %v2377_v4 = vadd.f32 1.0, %v4854_v14  ;;  %v5843_v40 = vld [vmem:[#allocation2 + $0x68] sm:$0xff]  ;;  %v5845_v14 = vld [vmem:[#allocation2 + $0x58] sm:$0xff]  ;;  %v2717_v51 = vmul.f32 %v5792_v42, %v5841_v1 }
 0xae4   :  { %v4858_v19 = vpop.eup %4857  ;;  %v2375_v35 = vadd.f32 1.0, %v4856_v48  ;;  %6220 = vst [vmem:[#allocation5_spill] sm:$0xff] %v5845_v14  ;;  %v2765_v6 = vsel %vm330_vm1, %v2714_v50, 0.0 }
 0xae5   :  { %v4860_v52 = vpop.eup %4859  ;;  %v2378_v46 = vadd.f32 1.0, %v4858_v19  ;;  %4877 = vrcp.f32 %v2377_v4  ;;  %v5848_v19 = vld [vmem:[#allocation2 + $0x60] sm:$0xff] }
 0xae6   :  { %v4862_v34 = vpop.eup %4861  ;;  %v2376_v13 = vadd.f32 1.0, %v4860_v52  ;;  %4879 = vrcp.f32 %v2375_v35  ;;  %v2720_v52 = vmul.f32 %v5788_v21, %v5843_v40  ;;  %v5865_v35 = vld [vmem:[#allocation2 + $0xa8] sm:$0xff]  ;;  %v2719_v63 = vmul.f32 %v5786_v32, %v5848_v19 }
 0xae7   :  { %v4864_v55 = vpop.eup %4863  ;;  %v2409_v45 = vmul.f32 %v4862_v34, %v5710_v22  ;;  %v2716_v22 = vmul.f32 %v5788_v21, %v5818_v11  ;;  %4881 = vrcp.f32 %v2378_v46  ;;  %v5875_v46 = vadd.f32 %v2752_v10, %v2751_v59  ;;  %v5916_v59 = vld [vmem:[#allocation2 + $0xc0] sm:$0xff] }
 0xae8   :  { %v4866_v7 = vpop.eup %4865  ;;  %v2407_v8 = vmul.f32 %v4864_v55, %v5712_v24  ;;  %4883 = vrcp.f32 %v2376_v13  ;;  %v2718_v55 = vmul.f32 %v5808_v53, %v5845_v14  ;;  %v5880_v13 = vld [vmem:[#allocation2 + $0xa0] sm:$0xff]  ;;  %v5950_v14 = vld [vmem:[#allocation2 + $0xd0] sm:$0xff] }
 0xae9   :  { %v4868_v58 = vpop.eup %4867  ;;  %v2410_v28 = vmul.f32 %v4866_v7, %v5715_v25  ;;  %v2715_v25 = vmul.f32 %v5786_v32, %v5827_v16  ;;  %v2727_v50 = vmul.f32 %v5786_v32, %v5880_v13 }
 0xaea   :  { %v4870_v9 = vpop.eup %4869  ;;  %v2408_v31 = vmul.f32 %v4868_v58, %v5718_v38  ;;  %v2762_v38 = vadd.f32 %v2761_v62, %v2760_v60  ;;  %v5871_v58 = vld [vmem:[#allocation2 + $0x78] sm:$0xff]  ;;  %v2724_v62 = vmul.f32 %v5788_v21, %v5860_v54 }
 0xaeb   :  { %v4872_v27 = vpop.eup %4871  ;;  %v2413_v57 = vmul.f32 %v4870_v9, %v4846_v5  ;;  %v2773_v34 = vsel %vm330_vm1, %v2715_v25, 0.0  ;;  %6222 = vst [vmem:[#allocation7_spill] sm:$0xff] %v5871_v58  ;;  %v5907_v25 = vmul.f32 %v5792_v42, %v5869_v0  ;;  %v6228_v0 = vmov 0.0  }
 0xaec   :  { %v4874_v29 = vpop.eup %4873  ;;  %v2411_v24 = vmul.f32 %v4872_v27, %v4848_v39  ;;  %v2776_v27 = vsel %vm330_vm1, %v2717_v51, 0.0  ;;  %v2800_v10 = vsel %vm330_vm1, %v2724_v62, 0.0  ;;  %4230 = vmatprep.mubr.msk.f32.mxu0 %vm4944_vm12, %v6228_v0 }
 0xaed   :  { %v4876_v17 = vpop.eup %4875  ;;  %v2417_v18 = vadd.f32 %v2413_v57, %v2409_v45  ;;  %v2414_v20 = vmul.f32 %v4874_v29, %v4850_v26  ;;  %v2774_v26 = vsel %vm330_vm1, %v2716_v22, 0.0  ;;  %v5873_v45 = vld [vmem:[#allocation2 + $0xe8] sm:$0xff]  ;;  %v5890_v22 = vld [vmem:[#allocation2 + $0xe0] sm:$0xff] }
 0xaee   :  { %v2415_v44 = vadd.f32 %v2411_v24, %v2407_v8  ;;  %v2412_v5 = vmul.f32 %v4876_v17, %v4852_v47  ;;  %v2763_v47 = vsel %vm330_vm1, %v2713_v61, 0.0  ;;  %v2775_v7 = vadd.f32 %v2774_v26, %v2773_v34  ;;  %v5878_v8 = vld [vmem:[#allocation2 + $0x90] sm:$0xff]  ;;  %v5892_v29 = vld [vmem:[#allocation2 + $0x108] sm:$0xff]  ;;  %v5918_v26 = vld [vmem:[#allocation2 + $0x100] sm:$0xff] }
 0xaef   :  { %4885 = vtanh.f32 %v2417_v18  ;;  %v2418_v39 = vadd.f32 %v2414_v20, %v2410_v28  ;;  %v2764_v4 = vadd.f32 %v2763_v47, %v2762_v38  ;;  %v4878_v9 = vpop.eup %4877  ;;  %6223 = vst [vmem:[#allocation8_spill] sm:$0xff] %v5878_v8  ;;  %v2723_v61 = vmul.f32 %v5786_v32, %v5858_v3  ;;  %v5903_v20 = vld [vmem:[#allocation2 + $0xb0] sm:$0xff] }
 0xaf0   :  { %4887 = vtanh.f32 %v2415_v44  ;;  %v2416_v48 = vadd.f32 %v2412_v5, %v2408_v31  ;;  %v2787_v28 = vsel %vm330_vm1, %v2720_v52, 0.0  ;;  %v4880_v57 = vpop.eup %4879  ;;  %v2728_v31 = vmul.f32 %v5788_v21, %v5865_v35  ;;  %6224 = vst [vmem:[#allocation9_spill] sm:$0xff] %v5903_v20  ;;  %v5928_v34 = vld [vmem:[#allocation2 + $0xf0] sm:$0xff] }
 0xaf1   :  { %4889 = vtanh.f32 %v2418_v39  ;;  %v5896_v24 = vadd.f32 %v2765_v6, %v2764_v4  ;;  %v5898_v60 = vadd.f32 %v2776_v27, %v2775_v7  ;;  %v5901_v17 = vsel %vm330_vm1, %v2718_v55, 0.0  ;;  %v4882_v18 = vpop.eup %4881  ;;  %6225 = vst [vmem:[#allocation10_spill] sm:$0xff] %v5928_v34  ;;  %v4940_v27 = vld [vmem:[%s6195_s1] sm:$0x1] }
 0xaf2   :  { %4891 = vtanh.f32 %v2416_v48  ;;  %v5911_v44 = vmul.f32 %v5808_v53, %v5871_v58  ;;  %v2736_v5 = vmul.f32 %v5788_v21, %v5873_v45  ;;  %v2786_v38 = vsel %vm330_vm1, %v2719_v63, 0.0  ;;  %v4884_v39 = vpop.eup %4883  ;;  %v5942_v58 = vld [vmem:[#allocation2 + $0x98] sm:$0xff] }
 0xaf3   :  { %v2725_v48 = vmul.f32 %v5792_v42, %v5878_v8  ;;  %v2732_v47 = vmul.f32 %v5788_v21, %v5882_v12  ;;  %v5926_v51 = vadd.f32 %v2787_v28, %v2786_v38  ;;  %v2735_v55 = vmul.f32 %v5786_v32, %v5890_v22  ;;  %6226 = vst [vmem:[#allocation11_spill] sm:$0xff] %v5942_v58 }
 0xaf4   :  { %v2740_v4 = vmul.f32 %v5788_v21, %v5892_v29  ;;  %v2799_v7 = vsel %vm330_vm1, %v2723_v61, 0.0  ;;  %vm2442_vm11 = vcmp.gt.s32.totalorder %v4940_v27, 9  ;;  %v2729_v28 = vmul.f32 %v5792_v42, %v5903_v20  ;;  %v5952_v20 = vld [vmem:[#allocation2 + $0x110] sm:$0xff] }
 0xaf5   :  { %v2813_v38 = vsel %vm330_vm1, %v2728_v31, 0.0  ;;  %v2731_v61 = vmul.f32 %v5786_v32, %v5916_v59  ;;  %v2839_v62 = vsel %vm330_vm1, %v2736_v5, 0.0  ;;  %6227 = vst [vmem:[#allocation12_spill] sm:$0xff] %v5952_v20  ;;  %v2812_v31 = vsel %vm330_vm1, %v2727_v50, 0.0 }
 0xaf6   :  { %v3519_v37 = vsel %vm2442_vm11, 1.0, %v6228_v0  ;;  %v2726_v50 = vmul.f32 %v5808_v53, %v5942_v58  ;;  %v5980_v58 = vld [vmem:[#allocation2 + $0x118] sm:$0xff] }
 0xaf7   :  { %6232 = vst [vmem:[#allocation16_spill] sm:$0xff] %v5980_v58 }
 0xaf9   :  { %v4886_v52 = vpop.eup %4885 }
 0xafa   :  { %v4888_v63 = vpop.eup %4887  ;;  %v2425_v6 = vmul.f32 %v4886_v52, %v4878_v9  ;;  %v2739_v9 = vmul.f32 %v5786_v32, %v5918_v26 }
 0xafb   :  { %v4890_v36 = vpop.eup %4889  ;;  %v2423_v33 = vmul.f32 %v4888_v63, %v4880_v57  ;;  %v2737_v57 = vmul.f32 %v5792_v42, %v5928_v34  ;;  %v2826_v63 = vsel %vm330_vm1, %v2732_v47, 0.0  ;;  %v2801_v47 = vadd.f32 %v2800_v10, %v2799_v7 }
 0xafc   :  { %v4892_v52 = vpop.eup %4891  ;;  %2430 = vst.msk [vmem:[#allocation2 + $0x130] sm:$0xff] %vm330_vm1, %v2425_v6  ;;  %v2426_v8 = vmul.f32 %v4890_v36, %v4882_v18  ;;  %v2838_v6 = vsel %vm330_vm1, %v2735_v55, 0.0  ;;  %v2852_v36 = vsel %vm330_vm1, %v2740_v4, 0.0  ;;  %v5964_v18 = vld [vmem:[#allocation2 + $0xb8] sm:$0xff]  ;;  %v2814_v34 = vadd.f32 %v2813_v38, %v2812_v31 }
 0xafd   :  { %2428 = vst.msk [vmem:[#allocation2 + $0x120] sm:$0xff] %vm330_vm1, %v2423_v33  ;;  %v2424_v5 = vmul.f32 %v4892_v52, %v4884_v39  ;;  %6229 = vst [vmem:[#allocation13_spill] sm:$0xff] %v5964_v18  ;;  %v2840_v27 = vadd.f32 %v2839_v62, %v2838_v6  ;;  %v2733_v33 = vmul.f32 %v5792_v42, %v5950_v14  ;;  %v2851_v55 = vsel %vm330_vm1, %v2739_v9, 0.0  ;;  %v5978_v52 = vld [vmem:[#allocation2 + $0xd8] sm:$0xff] }
 0xafe   :  { %2431 = vst.msk [vmem:[#allocation2 + $0x138] sm:$0xff] %vm330_vm1, %v2426_v8  ;;  %v2741_v39 = vmul.f32 %v5792_v42, %v5952_v20  ;;  %v2825_v8 = vsel %vm330_vm1, %v2731_v61, 0.0  ;;  %v2552_v4 = vrot.slane %v3519_v37, %v5094_v30  ;;  %6231 = vst [vmem:[#allocation15_spill] sm:$0xff] %v5978_v52  ;;  %v2802_v7 = vsel %vm330_vm1, %v2725_v48, 0.0 }
 0xaff   :  { %2429 = vst.msk [vmem:[#allocation2 + $0x128] sm:$0xff] %vm330_vm1, %v2424_v5  ;;  %v2827_v10 = vadd.f32 %v2826_v63, %v2825_v8  ;;  %v2853_v38 = vadd.f32 %v2852_v36, %v2851_v55  ;;  %v2730_v62 = vmul.f32 %v5808_v53, %v5964_v18  ;;  %v2738_v31 = vmul.f32 %v5808_v53, %v5966_v2 }
 0xb00   :  { %v2815_v61 = vsel %vm330_vm1, %v2729_v28, 0.0  ;;  %v2841_v9 = vsel %vm330_vm1, %v2737_v57, 0.0  ;;  %v2789_v30 = vsel %vm330_vm1, %v5907_v25, 0.0  ;;  %v2803_v37 = vadd.f32 %v2802_v7, %v2801_v47 }
 0xb01   :  { %v2816_v5 = vadd.f32 %v2815_v61, %v2814_v34  ;;  %v2842_v6 = vadd.f32 %v2841_v9, %v2840_v27  ;;  %v2734_v48 = vmul.f32 %v5808_v53, %v5978_v52  ;;  %v2742_v63 = vmul.f32 %v5808_v53, %v5980_v58 }
 0xb02   :  { %v2828_v36 = vsel %vm330_vm1, %v2733_v33, 0.0  ;;  %v2854_v8 = vsel %vm330_vm1, %v2741_v39, 0.0  ;;  %v2790_v57 = vadd.f32 %v2789_v30, %v5926_v51  ;;  %v2804_v27 = vsel %vm330_vm1, %v2726_v50, 0.0 }
 0xb03   :  { %v2501_v20 = vld [vmem:[#allocation2 + $0x130] sm:$0xff]  ;;  %v2829_v2 = vadd.f32 %v2828_v36, %v2827_v10  ;;  %v2855_v25 = vadd.f32 %v2854_v8, %v2853_v38  ;;  %v2817_v7 = vsel %vm330_vm1, %v2730_v62, 0.0  ;;  %v2843_v61 = vsel %vm330_vm1, %v2738_v31, 0.0 }
 0xb04   :  { %v2601_v28 = vmul.f32 %v2552_v4, %v2501_v20  ;;  %v2499_v55 = vld [vmem:[#allocation2 + $0x120] sm:$0xff]  ;;  %v2805_v58 = vadd.f32 %v2804_v27, %v2803_v37  ;;  %v2818_v39 = vadd.f32 %v2817_v7, %v2816_v5  ;;  %v2844_v20 = vadd.f32 %v2843_v61, %v2842_v6 }
 0xb05   :  { %v2599_v47 = vmul.f32 %v2552_v4, %v2499_v55  ;;  %v2502_v34 = vld [vmem:[#allocation2 + $0x138] sm:$0xff]  ;;  %v2791_v10 = vsel %vm330_vm1, %v5911_v44, 0.0  ;;  %v2830_v38 = vsel %vm330_vm1, %v2734_v48, 0.0  ;;  %v2856_v50 = vsel %vm330_vm1, %v2742_v63, 0.0 }
 0xb06   :  { %2641 = vst.msk [vmem:[#allocation2 + $0x130] sm:$0xff] %vm330_vm1, %v2601_v28  ;;  %v2602_v9 = vmul.f32 %v2552_v4, %v2502_v34  ;;  %v2500_v33 = vld [vmem:[#allocation2 + $0x128] sm:$0xff]  ;;  %v2792_v62 = vadd.f32 %v2791_v10, %v2790_v57  ;;  %v2831_v31 = vadd.f32 %v2830_v38, %v2829_v2  ;;  %v2857_v30 = vadd.f32 %v2856_v50, %v2855_v25 }
 0xb07   :  { %2639 = vst.msk [vmem:[#allocation2 + $0x120] sm:$0xff] %vm330_vm1, %v2599_v47  ;;  %v2600_v51 = vmul.f32 %v2552_v4, %v2500_v33  ;;  %v2779_v37 = vadd.f32 %v5901_v17, %v5898_v60  ;;  %v2754_v4 = vrot.slane %v5875_v46, 4  ;;  %v2806_v44 = vrot.slane %v2805_v58, 4 }
 0xb08   :  { %2642 = vst.msk [vmem:[#allocation2 + $0x138] sm:$0xff] %vm330_vm1, %v2602_v9  ;;  %v2819_v5 = vrot.slane %v2818_v39, 4  ;;  %v2845_v6 = vrot.slane %v2844_v20, 4  ;;  %v2767_v48 = vrot.slane %v5896_v24, 4  ;;  %v2793_v63 = vrot.slane %v2792_v62, 4 }
 0xb09   :  { %2640 = vst.msk [vmem:[#allocation2 + $0x128] sm:$0xff] %vm330_vm1, %v2600_v51  ;;  %v2832_v36 = vrot.slane %v2831_v31, 4  ;;  %v2858_v8 = vrot.slane %v2857_v30, 4  ;;  %v2780_v2 = vrot.slane %v2779_v37, 4  ;;  %v2755_v60 = vadd.f32 %v2754_v4, %v5875_v46 }
 0xb0a   :  { %v2807_v17 = vadd.f32 %v2806_v44, %v2805_v58  ;;  %v2820_v57 = vadd.f32 %v2819_v5, %v2818_v39  ;;  %v2846_v0 = vadd.f32 %v2845_v6, %v2844_v20  ;;  %v2768_v47 = vadd.f32 %v2767_v48, %v5896_v24 }
 0xb0b   :  { %v2794_v7 = vadd.f32 %v2793_v63, %v2792_v62  ;;  %v2833_v61 = vadd.f32 %v2832_v36, %v2831_v31  ;;  %v2859_v9 = vadd.f32 %v2858_v8, %v2857_v30  ;;  %v2781_v46 = vadd.f32 %v2780_v2, %v2779_v37 }
 0xb0c   :  { %v2756_v39 = vrot.slane %v2755_v60, 2  ;;  %v2808_v20 = vrot.slane %v2807_v17, 2  ;;  %v2821_v51 = vrot.slane %v2820_v57, 2  ;;  %v2769_v10 = vrot.slane %v2768_v47, 2 }
 0xb0d   :  { %v6016_v55 = vld [vmem:[#allocation2 + $0x130] sm:$0xff]  ;;  %v2795_v62 = vrot.slane %v2794_v7, 2  ;;  %v2834_v31 = vrot.slane %v2833_v61, 2  ;;  %v2860_v30 = vrot.slane %v2859_v9, 2  ;;  %v2782_v4 = vrot.slane %v2781_v46, 2 }
 0xb0e   :  { %v6014_v28 = vld [vmem:[#allocation2 + $0x120] sm:$0xff]  ;;  %6233 = vst [vmem:[#allocation17_spill] sm:$0xff] %v6016_v55  ;;  %v2745_v58 = vmul.f32 %v5792_v42, %v6016_v55  ;;  %v2809_v37 = vadd.f32 %v2808_v20, %v2807_v17  ;;  %v2822_v44 = vadd.f32 %v2821_v51, %v2820_v57  ;;  %v2757_v48 = vadd.f32 %v2756_v39, %v2755_v60 }
 0xb0f   :  { %v2743_v25 = vmul.f32 %v5786_v32, %v6014_v28  ;;  %v6024_v27 = vld [vmem:[#allocation2 + $0x138] sm:$0xff]  ;;  %v2847_v32 = vrot.slane %v2846_v0, 2  ;;  %v2770_v63 = vadd.f32 %v2769_v10, %v2768_v47  ;;  %v2796_v36 = vadd.f32 %v2795_v62, %v2794_v7 }
 0xb10   :  { %v6022_v34 = vld [vmem:[#allocation2 + $0x128] sm:$0xff]  ;;  %6234 = vst [vmem:[#allocation18_spill] sm:$0xff] %v6024_v27  ;;  %v2746_v24 = vmul.f32 %v5808_v53, %v6024_v27  ;;  %v2867_v42 = vsel %vm330_vm1, %v2745_v58, 0.0  ;;  %v2835_v8 = vadd.f32 %v2834_v31, %v2833_v61  ;;  %v2861_v2 = vadd.f32 %v2860_v30, %v2859_v9 }
 0xb11   :  { %v2744_v33 = vmul.f32 %v5788_v21, %v6022_v34  ;;  %v2864_v38 = vsel %vm330_vm1, %v2743_v25, 0.0  ;;  %v2848_v5 = vadd.f32 %v2847_v32, %v2846_v0  ;;  %v2810_v27 = vrot.slane %v2809_v37, 1 }
 0xb12   :  { %v2869_v53 = vsel %vm330_vm1, %v2746_v24, 0.0  ;;  %v2823_v55 = vrot.slane %v2822_v44, 1  ;;  %v2771_v18 = vrot.slane %v2770_v63, 1  ;;  %v2797_v58 = vrot.slane %v2796_v36, 1 }
 0xb13   :  { %v2865_v50 = vsel %vm330_vm1, %v2744_v33, 0.0  ;;  %v2783_v33 = vadd.f32 %v2782_v4, %v2781_v46  ;;  %v2849_v52 = vrot.slane %v2848_v5, 1  ;;  %v2836_v17 = vrot.slane %v2835_v8, 1 }
 0xb14   :  { %v2866_v21 = vadd.f32 %v2865_v50, %v2864_v38  ;;  %v2758_v50 = vrot.slane %v2757_v48, 1  ;;  %v2862_v57 = vrot.slane %v2861_v2, 1  ;;  %v2811_v60 = vadd.f32 %v2810_v27, %v2809_v37 }
 0xb15   :  { %v2784_v20 = vrot.slane %v2783_v33, 1  ;;  %v2824_v47 = vadd.f32 %v2823_v55, %v2822_v44  ;;  %v2850_v39 = vadd.f32 %v2849_v52, %v2848_v5  ;;  %v2772_v61 = vadd.f32 %v2771_v18, %v2770_v63 }
 0xb16   :  { %v2868_v6 = vadd.f32 %v2867_v42, %v2866_v21  ;;  %v2759_v7 = vadd.f32 %v2758_v50, %v2757_v48  ;;  %v2798_v9 = vadd.f32 %v2797_v58, %v2796_v36  ;;  %v2837_v32 = vadd.f32 %v2836_v17, %v2835_v8 }
 0xb17   :  { %v2863_v46 = vadd.f32 %v2862_v57, %v2861_v2  ;;  %v2785_v10 = vadd.f32 %v2784_v20, %v2783_v33  ;;  %v2881_v31 = vsel %vm330_vm1, %v2811_v60, -inf  ;;  %v2883_v30 = vsel %vm330_vm1, %v2824_v47, -inf }
 0xb18   :  { %v2870_v25 = vadd.f32 %v2869_v53, %v2868_v6  ;;  %v2887_v21 = vsel %vm330_vm1, %v2850_v39, -inf  ;;  %v2877_v4 = vsel %vm330_vm1, %v2759_v7, -inf  ;;  %v2878_v55 = vsel %vm330_vm1, %v2772_v61, -inf }
 0xb19   :  { %v2880_v27 = vsel %vm330_vm1, %v2798_v9, -inf  ;;  %v2885_v18 = vsel %vm330_vm1, %v2837_v32, -inf  ;;  %v2889_v42 = vsel %vm330_vm1, %v2863_v46, -inf  ;;  %v2882_v37 = vmax.f32 %v2877_v4, %v2881_v31 }
 0xb1a   :  { %v2871_v38 = vrot.slane %v2870_v25, 4  ;;  %v2884_v44 = vmax.f32 %v2878_v55, %v2883_v30  ;;  %v2888_v5 = vmax.f32 %v2880_v27, %v2887_v21  ;;  %v2879_v6 = vsel %vm330_vm1, %v2785_v10, -inf }
 0xb1b   :  { %v2886_v63 = vmax.f32 %v2879_v6, %v2885_v18  ;;  %v2890_v53 = vmax.f32 %v2882_v37, %v2889_v42 }
 0xb1c   :  { %v2872_v0 = vadd.f32 %v2871_v38, %v2870_v25 }
 0xb1d   :  { %v2894_v2 = vmax.f32 %v2886_v63, %v2888_v5 }
 0xb1e   :  { %v2873_v51 = vrot.slane %v2872_v0, 2 }
 0xb20   :  { %v2874_v24 = vadd.f32 %v2873_v51, %v2872_v0 }
 0xb22   :  { %v2875_v62 = vrot.slane %v2874_v24, 1 }
 0xb24   :  { %v2876_v52 = vadd.f32 %v2875_v62, %v2874_v24 }
 0xb26   :  { %v2891_v48 = vsel %vm330_vm1, %v2876_v52, -inf }
 0xb27   :  { %v2892_v36 = vmax.f32 %v2884_v44, %v2891_v48 }
 0xb29   :  { %v2893_v8 = vmax.f32 %v2890_v53, %v2892_v36 }
 0xb2b   :  { %v2895_v25 = vmax.f32 %v2893_v8, %v2894_v2 }
 0xb2d   :  { %v2896_v33 = vsub.f32 %v2759_v7, %v2895_v25  ;;  %v2897_v38 = vsub.f32 %v2772_v61, %v2895_v25  ;;  %v2898_v50 = vsub.f32 %v2785_v10, %v2895_v25  ;;  %v2899_v58 = vsub.f32 %v2798_v9, %v2895_v25 }
 0xb2e   :  { %v2900_v17 = vsub.f32 %v2811_v60, %v2895_v25  ;;  %v2901_v20 = vsub.f32 %v2824_v47, %v2895_v25  ;;  %v2902_v62 = vsub.f32 %v2837_v32, %v2895_v25  ;;  %v2903_v30 = vsub.f32 %v2850_v39, %v2895_v25 }
 0xb2f   :  { %v2906_v57 = vmul.f32 1.442695, %v2896_v33  ;;  %v2908_v0 = vmul.f32 1.442695, %v2897_v38  ;;  %v2910_v51 = vmul.f32 1.442695, %v2898_v50  ;;  %v2904_v4 = vsub.f32 %v2863_v46, %v2895_v25 }
 0xb30   :  { %v2912_v24 = vmul.f32 1.442695, %v2899_v58  ;;  %v2914_v31 = vmul.f32 1.442695, %v2900_v17  ;;  %v2916_v21 = vmul.f32 1.442695, %v2901_v20  ;;  %v2905_v61 = vsub.f32 %v2876_v52, %v2895_v25 }
 0xb31   :  { %4893 = vpow2.f32 %v2906_v57  ;;  %v2918_v7 = vmul.f32 1.442695, %v2902_v62  ;;  %v2920_v9 = vmul.f32 1.442695, %v2903_v30  ;;  %v2922_v60 = vmul.f32 1.442695, %v2904_v4 }
 0xb32   :  { %4895 = vpow2.f32 %v2908_v0  ;;  %v2924_v55 = vmul.f32 1.442695, %v2905_v61 }
 0xb33   :  { %4897 = vpow2.f32 %v2910_v51 }
 0xb34   :  { %4899 = vpow2.f32 %v2912_v24 }
 0xb35   :  { %4901 = vpow2.f32 %v2914_v31 }
 0xb36   :  { %4903 = vpow2.f32 %v2916_v21 }
 0xb37   :  { %4905 = vpow2.f32 %v2918_v7 }
 0xb38   :  { %4907 = vpow2.f32 %v2920_v9 }
 0xb39   :  { %4909 = vpow2.f32 %v2922_v60 }
 0xb3a   :  { %4911 = vpow2.f32 %v2924_v55 }
 0xb3b   :  { %v4894_v10 = vpop.eup %4893 }
 0xb3c   :  { %v4896_v47 = vpop.eup %4895  ;;  %v2926_v32 = vsel %vm330_vm1, %v4894_v10, 0.0 }
 0xb3d   :  { %v4898_v27 = vpop.eup %4897  ;;  %v2927_v18 = vsel %vm330_vm1, %v4896_v47, 0.0 }
 0xb3e   :  { %v4900_v39 = vpop.eup %4899  ;;  %v2928_v42 = vadd.f32 %v2927_v18, %v2926_v32  ;;  %v2929_v46 = vsel %vm330_vm1, %v4898_v27, 0.0 }
 0xb3f   :  { %v4902_v37 = vpop.eup %4901  ;;  %v2931_v44 = vsel %vm330_vm1, %v4900_v39, 0.0 }
 0xb40   :  { %v2930_v52 = vadd.f32 %v2929_v46, %v2928_v42  ;;  %v4904_v5 = vpop.eup %4903  ;;  %v2933_v48 = vsel %vm330_vm1, %v4902_v37, 0.0 }
 0xb41   :  { %v4906_v63 = vpop.eup %4905  ;;  %v2935_v36 = vsel %vm330_vm1, %v4904_v5, 0.0 }
 0xb42   :  { %v2932_v6 = vadd.f32 %v2931_v44, %v2930_v52  ;;  %v4908_v8 = vpop.eup %4907  ;;  %v2937_v25 = vsel %vm330_vm1, %v4906_v63, 0.0 }
 0xb43   :  { %v4910_v33 = vpop.eup %4909  ;;  %v2939_v50 = vsel %vm330_vm1, %v4908_v8, 0.0 }
 0xb44   :  { %v2934_v53 = vadd.f32 %v2933_v48, %v2932_v6  ;;  %v4912_v58 = vpop.eup %4911  ;;  %v2941_v57 = vsel %vm330_vm1, %v4910_v33, 0.0 }
 0xb45   :  { %v2943_v20 = vsel %vm330_vm1, %v4912_v58, 0.0 }
 0xb46   :  { %v2936_v2 = vadd.f32 %v2935_v36, %v2934_v53 }
 0xb48   :  { %v2938_v38 = vadd.f32 %v2937_v25, %v2936_v2 }
 0xb4a   :  { %v2940_v17 = vadd.f32 %v2939_v50, %v2938_v38 }
 0xb4c   :  { %v2942_v0 = vadd.f32 %v2941_v57, %v2940_v17 }
 0xb4e   :  { %v2944_v51 = vadd.f32 %v2943_v20, %v2942_v0 }
 0xb50   :  { %4913 = vrcp.f32 %v2944_v51 }
 0xb5a   :  { %v4914_v24 = vpop.eup %4913 }
 0xb5b   :  { %v2946_v62 = vmul.f32 %v4914_v24, %v4894_v10  ;;  %v2947_v31 = vmul.f32 %v4914_v24, %v4896_v47  ;;  %v6056_v30 = vmul.f32 %v4914_v24, %v4898_v27  ;;  %v6058_v21 = vmul.f32 %v4914_v24, %v4900_v39 }
 0xb5c   :  { %v6062_v61 = vmul.f32 %v4914_v24, %v4902_v37  ;;  %v6066_v60 = vmul.f32 %v4914_v24, %v4904_v5  ;;  %v6070_v47 = vmul.f32 %v4914_v24, %v4906_v63  ;;  %v6076_v27 = vmul.f32 %v4914_v24, %v4908_v8 }
 0xb5d   :  { %v2956_v4 = vmul.f32 %v2946_v62, %v5796_v43  ;;  %v2960_v7 = vmul.f32 %v2947_v31, %v5806_v15  ;;  %v2964_v9 = vmul.f32 %v6056_v30, %v5827_v16  ;;  %v2957_v55 = vmul.f32 %v2946_v62, %v5790_v41 }
 0xb5e   :  { %v2961_v10 = vmul.f32 %v2947_v31, %v5800_v49  ;;  %v2968_v32 = vmul.f32 %v6058_v21, %v5848_v19  ;;  %v6078_v18 = vmul.f32 %v4914_v24, %v4910_v33  ;;  %v2965_v16 = vmul.f32 %v6056_v30, %v5818_v11 }
 0xb5f   :  { %v2996_v43 = vsel %vm330_vm1, %v2956_v4, 0.0  ;;  %v2997_v15 = vsel %vm330_vm1, %v2960_v7, 0.0  ;;  %v6082_v41 = vmul.f32 %v4914_v24, %v4912_v58  ;;  %v2969_v49 = vmul.f32 %v6058_v21, %v5843_v40  ;;  %v6235_v4 = vld [vmem:[#allocation3_spill] sm:$0xff]  ;;  %v6236_v7 = vld [vmem:[#allocation4_spill] sm:$0xff] }
 0xb60   :  { %v2998_v39 = vadd.f32 %v2997_v15, %v2996_v43  ;;  %v2972_v19 = vmul.f32 %v6062_v61, %v5858_v3  ;;  %v2999_v42 = vsel %vm330_vm1, %v2964_v9, 0.0  ;;  %v2973_v46 = vmul.f32 %v6062_v61, %v5860_v54 }
 0xb61   :  { %v3015_v52 = vsel %vm330_vm1, %v2957_v55, 0.0  ;;  %v3016_v44 = vsel %vm330_vm1, %v2961_v10, 0.0  ;;  %v2976_v11 = vmul.f32 %v6066_v60, %v5880_v13  ;;  %v2977_v5 = vmul.f32 %v6066_v60, %v5865_v35  ;;  %v6237_v10 = vld [vmem:[#allocation6_spill] sm:$0xff] }
 0xb62   :  { %v3000_v37 = vadd.f32 %v2999_v42, %v2998_v39  ;;  %v3001_v40 = vsel %vm330_vm1, %v2968_v32, 0.0  ;;  %v3017_v6 = vadd.f32 %v3016_v44, %v3015_v52  ;;  %v2980_v3 = vmul.f32 %v6070_v47, %v5916_v59  ;;  %v6238_v42 = vld [vmem:[#allocation5_spill] sm:$0xff] }
 0xb63   :  { %v2981_v54 = vmul.f32 %v6070_v47, %v5882_v12  ;;  %v3018_v63 = vsel %vm330_vm1, %v2965_v16, 0.0  ;;  %v2984_v53 = vmul.f32 %v6076_v27, %v5890_v22  ;;  %v2988_v13 = vmul.f32 %v6078_v18, %v5918_v26 }
 0xb64   :  { %v3002_v48 = vadd.f32 %v3001_v40, %v3000_v37  ;;  %v3003_v35 = vsel %vm330_vm1, %v2972_v19, 0.0  ;;  %v3019_v36 = vadd.f32 %v3018_v63, %v3017_v6  ;;  %v2985_v8 = vmul.f32 %v6076_v27, %v5873_v45  ;;  %v6241_v6 = vld [vmem:[#allocation9_spill] sm:$0xff] }
 0xb65   :  { %v2992_v59 = vmul.f32 %v6082_v41, %v6014_v28  ;;  %v3020_v12 = vsel %vm330_vm1, %v2969_v49, 0.0  ;;  %v2989_v25 = vmul.f32 %v6078_v18, %v5892_v29  ;;  %v2993_v22 = vmul.f32 %v6082_v41, %v6022_v34 }
 0xb66   :  { %v3004_v2 = vadd.f32 %v3003_v35, %v3002_v48  ;;  %v3005_v26 = vsel %vm330_vm1, %v2976_v11, 0.0  ;;  %v3021_v33 = vadd.f32 %v3020_v12, %v3019_v36  ;;  %v3022_v50 = vsel %vm330_vm1, %v2973_v46, 0.0  ;;  %v6239_v46 = vld [vmem:[#allocation8_spill] sm:$0xff]  ;;  %v6240_v11 = vld [vmem:[#allocation7_spill] sm:$0xff] }
 0xb67   :  { %v2958_v45 = vmul.f32 %v2946_v62, %v5794_v56  ;;  %v2962_v58 = vmul.f32 %v2947_v31, %v5815_v23  ;;  %v3007_v28 = vsel %vm330_vm1, %v2980_v3, 0.0  ;;  %v3009_v17 = vsel %vm330_vm1, %v2984_v53, 0.0  ;;  %v6242_v36 = vld [vmem:[#allocation11_spill] sm:$0xff] }
 0xb68   :  { %v3006_v38 = vadd.f32 %v3005_v26, %v3004_v2  ;;  %v3011_v57 = vsel %vm330_vm1, %v2988_v13, 0.0  ;;  %v3023_v29 = vadd.f32 %v3022_v50, %v3021_v33  ;;  %v3013_v34 = vsel %vm330_vm1, %v2992_v59, 0.0  ;;  %v6243_v26 = vld [vmem:[#allocation13_spill] sm:$0xff] }
 0xb69   :  { %v3024_v20 = vsel %vm330_vm1, %v2977_v5, 0.0  ;;  %v2966_v51 = vmul.f32 %v6056_v30, %v5841_v1  ;;  %v3026_v56 = vsel %vm330_vm1, %v2981_v54, 0.0  ;;  %v2959_v23 = vmul.f32 %v2946_v62, %v6235_v4 }
 0xb6a   :  { %v3008_v0 = vadd.f32 %v3007_v28, %v3006_v38  ;;  %v3025_v24 = vadd.f32 %v3024_v20, %v3023_v29  ;;  %v2963_v9 = vmul.f32 %v2947_v31, %v6236_v7  ;;  %v2970_v32 = vmul.f32 %v6058_v21, %v6237_v10  ;;  %v6244_v38 = vld [vmem:[#allocation10_spill] sm:$0xff]  ;;  %v6246_v29 = vld [vmem:[#allocation12_spill] sm:$0xff] }
 0xb6b   :  { %v3034_v43 = vsel %vm330_vm1, %v2958_v45, 0.0  ;;  %v3035_v15 = vsel %vm330_vm1, %v2962_v58, 0.0  ;;  %v3028_v39 = vsel %vm330_vm1, %v2985_v8, 0.0  ;;  %v3030_v1 = vsel %vm330_vm1, %v2989_v25, 0.0 }
 0xb6c   :  { %v3010_v55 = vadd.f32 %v3009_v17, %v3008_v0  ;;  %v3027_v16 = vadd.f32 %v3026_v56, %v3025_v24  ;;  %v3036_v49 = vadd.f32 %v3035_v15, %v3034_v43  ;;  %v2967_v62 = vmul.f32 %v6056_v30, %v6238_v42  ;;  %v6245_v17 = vld [vmem:[#allocation15_spill] sm:$0xff]  ;;  %v6248_v56 = vld [vmem:[#allocation14_spill] sm:$0xff] }
 0xb6d   :  { %v2974_v31 = vmul.f32 %v6062_v61, %v6239_v46  ;;  %v3037_v37 = vsel %vm330_vm1, %v2966_v51, 0.0  ;;  %v3032_v44 = vsel %vm330_vm1, %v2993_v22, 0.0  ;;  %v2971_v5 = vmul.f32 %v6058_v21, %v6240_v11  ;;  %v3072_v11 = vld [vmem:[%s6197_s4] sm:$0x7] }
 0xb6e   :  { %v3012_v19 = vadd.f32 %v3011_v57, %v3010_v55  ;;  %v3029_v52 = vadd.f32 %v3028_v39, %v3027_v16  ;;  %v3038_v40 = vadd.f32 %v3037_v37, %v3036_v49  ;;  %v2978_v3 = vmul.f32 %v6066_v60, %v6241_v6  ;;  %v6249_v55 = vld [vmem:[#allocation16_spill] sm:$0xff]  ;;  %v6251_v49 = vld [vmem:[#allocation18_spill] sm:$0xff] }
 0xb6f   :  { %v3039_v54 = vsel %vm330_vm1, %v2970_v32, 0.0  ;;  %v3053_v48 = vsel %vm330_vm1, %v2959_v23, 0.0  ;;  %v3054_v30 = vsel %vm330_vm1, %v2963_v9, 0.0  ;;  %v2975_v8 = vmul.f32 %v6062_v61, %v6242_v36  ;;  %v6250_v32 = vld [vmem:[#allocation17_spill] sm:$0xff] }
 0xb70   :  { %v3014_v63 = vadd.f32 %v3013_v34, %v3012_v19  ;;  %v3031_v53 = vadd.f32 %v3030_v1, %v3029_v52  ;;  %v3040_v13 = vadd.f32 %v3039_v54, %v3038_v40  ;;  %v3055_v35 = vadd.f32 %v3054_v30, %v3053_v48 }
 0xb71   :  { %v2982_v21 = vmul.f32 %v6070_v47, %v5950_v14  ;;  %v3041_v59 = vsel %vm330_vm1, %v2974_v31, 0.0  ;;  %v3056_v2 = vsel %vm330_vm1, %v2967_v62, 0.0  ;;  %v2979_v33 = vmul.f32 %v6066_v60, %v6243_v26 }
 0xb72   :  { %v3033_v12 = vadd.f32 %v3032_v44, %v3031_v53  ;;  %v3042_v25 = vadd.f32 %v3041_v59, %v3040_v13  ;;  %v3057_v22 = vadd.f32 %v3056_v2, %v3055_v35  ;;  %v2986_v50 = vmul.f32 %v6076_v27, %v6244_v38 }
 0xb73   :  { %v3043_v45 = vsel %vm330_vm1, %v2978_v3, 0.0  ;;  %v3058_v61 = vsel %vm330_vm1, %v2971_v5, 0.0  ;;  %v2983_v57 = vmul.f32 %v6070_v47, %v6245_v17  ;;  %v2990_v0 = vmul.f32 %v6078_v18, %v6246_v29 }
 0xb74   :  { %v4234_v58 = vpack.c.bf16 %v3033_v12, %v3014_v63  ;;  %v3044_v28 = vadd.f32 %v3043_v45, %v3042_v25  ;;  %v3059_v14 = vadd.f32 %v3058_v61, %v3057_v22  ;;  %v3045_v34 = vsel %vm330_vm1, %v2982_v21, 0.0 }
 0xb75   :  { %v3060_v60 = vsel %vm330_vm1, %v2975_v8, 0.0  ;;  %v6247_v24 = vmov 0.0|0.0   ;;  %v2987_v4 = vmul.f32 %v6076_v27, %v6248_v56  ;;  %v3047_v23 = vsel %vm330_vm1, %v2986_v50, 0.0 }
 0xb76   :  { %4235 = vmatpush3.bf16.msra.mxu0 %v4234_v58  ;;  %v3046_v20 = vadd.f32 %v3045_v34, %v3044_v28  ;;  %v3061_v51 = vadd.f32 %v3060_v60, %v3059_v14  ;;  %v3062_v7 = vsel %vm330_vm1, %v2979_v33, 0.0  ;;  %v2991_v10 = vmul.f32 %v6078_v18, %v6249_v55 }
 0xb77   :  { %4236 = vmatprep.subr.bf16.mxu0 %v6247_v24  ;;  %v2994_v43 = vmul.f32 %v6082_v41, %v6250_v32  ;;  %v3049_v15 = vsel %vm330_vm1, %v2990_v0, 0.0  ;;  %v3064_v16 = vsel %vm330_vm1, %v2983_v57, 0.0  ;;  %v2995_v27 = vmul.f32 %v6082_v41, %v6251_v49  ;;  %v3077_v41 = vpop.permute.xlu0 %3076 }
 0xb78   :  { %v3048_v47 = vadd.f32 %v3047_v23, %v3046_v20  ;;  %v3063_v9 = vadd.f32 %v3062_v7, %v3061_v51  ;;  %v3066_v19 = vsel %vm330_vm1, %v2987_v4, 0.0  ;;  %v3068_v46 = vsel %vm330_vm1, %v2991_v10, 0.0 }
 0xb79   :  { %v3051_v62 = vsel %vm330_vm1, %v2994_v43, 0.0  ;;  %v3070_v37 = vsel %vm330_vm1, %v2995_v27, 0.0 }
 0xb7a   :  { %v3050_v39 = vadd.f32 %v3049_v15, %v3048_v47  ;;  %v3065_v1 = vadd.f32 %v3064_v16, %v3063_v9 }
 0xb7c   :  { %v3067_v42 = vadd.f32 %v3066_v19, %v3065_v1  ;;  %v3052_v18 = vadd.f32 %v3051_v62, %v3050_v39 }
 0xb7e   :  { %v3069_v31 = vadd.f32 %v3068_v46, %v3067_v42 }
 0xb80   :  { %v3071_v52 = vadd.f32 %v3070_v37, %v3069_v31 }
 0xb82   :  { %v4237_v44 = vpack.c.bf16 %v3071_v52, %v3052_v18 }
 0xb84   :  { %4238 = vmatpush3.bf16.msra.mxu0 %v4237_v44 }
 0xb87   :  { %4231 = vmatmul.mubr.msk.f32.vlgmr.msra.gmra.mrb[80].mxu0 %vm112_vm0, %v3072_v11 }
 0xc5a   :  { %v3148_v5 = vpop.f32.mrb[80].mxu0 }
 0xc5b   :  { %v3149_v40 = vadd.f32 %v3148_v5, %v3077_v41  ;;  %v4232_v6 = vpop.f32.mrb[81].mxu0 }
 0xc5d   :  { %3153 = vst.msk [vmem:[%s6198_s6] sm:$0x7] %vm3152_vm13, %v3149_v40 }

</bundles_post_ra>
